<compile_context>
chip_gen: v6e
topology: v6e:2x2x1
jax: 0.10.0
libtpu: 0.0.40
codegen_flags: <defaults>
</compile_context>

<pallas_src>
import functools

import jax
import jax.numpy as jnp
import numpy as np
from jax import lax
from jax.experimental import pallas as pl
from jax.experimental.pallas import tpu as pltpu

COMPUTE_DTYPE = jnp.bfloat16   # MXU input dtype (accumulation stays f32)
CIN_PAD = 8                    # pad the 3 input channels -> 8 (layer-1 K = 128)
K_SIZE = 4                     # conv kernel size of every layer


def _round_up(x, m):
    return (x + m - 1) // m * m


# ----------------------------------------------------------------------------
# Pallas kernel: tiled, K-accumulated  out = act(X @ W + b)
# ----------------------------------------------------------------------------
def _matmul_kernel(x_ref, w_ref, b_ref, o_ref, acc_ref, *, activation):
    @pl.when(pl.program_id(2) == 0)
    def _():
        acc_ref[...] = jnp.zeros_like(acc_ref)

    acc_ref[...] += jnp.dot(x_ref[...], w_ref[...],
                            preferred_element_type=jnp.float32)

    @pl.when(pl.program_id(2) == pl.num_programs(2) - 1)
    def _():
        out = acc_ref[...] + b_ref[...]           # (1, tn) broadcasts over rows
        if activation == "relu":
            out = jnp.maximum(out, 0.0)
        elif activation == "sigmoid":
            out = jax.nn.sigmoid(out)
        o_ref[...] = out.astype(o_ref.dtype)


def fused_matmul_bias_act(x, w, b, activation):
    """act(x @ w + b). x:[M,K], w:[K,N], b:[N] (f32) -> [M,N] f32."""
    M, K = x.shape
    K2, N = w.shape
    assert K == K2 and b.shape == (N,)

    # Lane/sublane-friendly padded problem + tile sizes (bigger tiles scale with
    # batch; at small M each dim collapses to a single full block).
    tm = min(256, _round_up(M, 8))
    tk = min(512, _round_up(K, 128))
    tn = min(512, _round_up(N, 128))
    Mp = _round_up(M, tm)
    Kp = _round_up(K, tk)
    Np = _round_up(N, tn)

    xp = jnp.pad(x, ((0, Mp - M), (0, Kp - K))).astype(COMPUTE_DTYPE)
    wp = jnp.pad(w, ((0, Kp - K), (0, Np - N))).astype(COMPUTE_DTYPE)
    bp = jnp.pad(b, (0, Np - N)).astype(jnp.float32).reshape(1, Np)

    grid = (Mp // tm, Np // tn, Kp // tk)
    kernel = functools.partial(_matmul_kernel, activation=activation)

    out = pl.pallas_call(
        kernel,
        out_shape=jax.ShapeDtypeStruct((Mp, Np), jnp.float32),
        grid_spec=pltpu.PrefetchScalarGridSpec(
            num_scalar_prefetch=0,
            grid=grid,
            in_specs=[
                pl.BlockSpec((tm, tk), lambda i, j, k: (i, k)),
                pl.BlockSpec((tk, tn), lambda i, j, k: (k, j)),
                pl.BlockSpec((1, tn), lambda i, j, k: (0, j)),
            ],
            out_specs=pl.BlockSpec((tm, tn), lambda i, j, k: (i, j)),
            scratch_shapes=[pltpu.VMEM((tm, tn), jnp.float32)],
        ),
        compiler_params=pltpu.CompilerParams(
            dimension_semantics=("parallel", "parallel", "arbitrary"),
            vmem_limit_bytes=48 << 20,
        ),
    )(xp, wp, bp)
    return out[:M, :N]


# ----------------------------------------------------------------------------
# NHWC glue: transpose-free im2col, conv / sub-pixel transposed conv wrappers
# ----------------------------------------------------------------------------
# TODO(synk): the im2col slab build and sub-pixel output interleave are still
# XLA glue; they could be folded into the kernel (taps as a grid axis) or the
# whole 8-layer net fused into one VMEM-resident pallas_call.
def _im2col_nhwc(x, k, stride):
    """x: already-padded NHWC. -> ([N*Ho*Wo, k*k*C], Ho, Wo); rows ordered
    (kh, kw) tap-major, channel-minor. No transposes, only slices + concat."""
    n, h, w, c = x.shape
    ho = (h - k) // stride + 1
    wo = (w - k) // stride + 1
    cols = []
    for i in range(k):
        for j in range(k):
            cols.append(x[:, i:i + stride * (ho - 1) + 1:stride,
                             j:j + stride * (wo - 1) + 1:stride, :])
    p = jnp.concatenate(cols, axis=-1)                # [N, Ho, Wo, k*k*C]
    return p.reshape(n * ho * wo, k * k * c), ho, wo


def conv2d_s2(x, w_mat, b, activation):
    """Conv2d(k=4, stride=2, pad=1) in NHWC. w_mat: [16*Cin, Cout]."""
    n = x.shape[0]
    xp = jnp.pad(x, ((0, 0), (1, 1), (1, 1), (0, 0)))
    cols, ho, wo = _im2col_nhwc(xp, K_SIZE, 2)
    out = fused_matmul_bias_act(cols, w_mat, b, activation)
    return out.reshape(n, ho, wo, -1)                 # already NHWC


def conv_transpose2d_subpixel(x, w_mat, b4, activation):
    """ConvTranspose2d(k=4, stride=2, pad=1) in NHWC via sub-pixel decomposition.

    y[2q+rh, 2p+rw] = sum_{di,dj in {0,1}} xpad[q+rh+di, p+rw+dj]
                                           . W[kh=(3-rh)-2*di, kw=(3-rw)-2*dj]
    i.e. one stride-1 2x2 conv over the 1-padded input emitting 4*Cout channels
    (one group per output parity), interleaved into the 2x spatial grid.
    """
    n, h, w, _ = x.shape
    cout = w_mat.shape[1] // 4
    xp = jnp.pad(x, ((0, 0), (1, 1), (1, 1), (0, 0)))
    cols, ho, wo = _im2col_nhwc(xp, 2, 1)             # ho = h+1, wo = w+1
    out = fused_matmul_bias_act(cols, w_mat, b4, activation)
    out = out.reshape(n, ho, wo, 4, cout)
    y = jnp.zeros((n, 2 * h, 2 * w, cout), out.dtype)
    for rh in range(2):
        for rw in range(2):
            g = rh * 2 + rw
            y = y.at[:, rh::2, rw::2, :].set(out[:, rh:rh + h, rw:rw + w, g, :])
    return y


# ----------------------------------------------------------------------------
# Parameters: init (PyTorch layout) + one-time repacking for the kernels
# ----------------------------------------------------------------------------
ENC_CHANNELS = [(3, 64), (64, 128), (128, 256), (256, 512)]
DEC_CHANNELS = [(512, 256), (256, 128), (128, 64), (64, 3)]


def init_params(key):
    params = {"enc": [], "dec": []}
    for cin, cout in ENC_CHANNELS:
        key, kw, kb = jax.random.split(key, 3)
        scale = 1.0 / np.sqrt(cin * K_SIZE * K_SIZE)
        w = jax.random.normal(kw, (cout, cin, K_SIZE, K_SIZE), jnp.float32) * scale
        b = jax.random.normal(kb, (cout,), jnp.float32) * scale
        params["enc"].append((w, b))
    for cin, cout in DEC_CHANNELS:
        key, kw, kb = jax.random.split(key, 3)
        scale = 1.0 / np.sqrt(cin * K_SIZE * K_SIZE)
        w = jax.random.normal(kw, (cin, cout, K_SIZE, K_SIZE), jnp.float32) * scale
        b = jax.random.normal(kb, (cout,), jnp.float32) * scale
        params["dec"].append((w, b))
    return params


def _prep_conv_weight(w):
    """[Cout, Cin, kh, kw] -> [kh*kw*Cin, Cout] matching _im2col_nhwc rows."""
    cout = w.shape[0]
    return w.transpose(2, 3, 1, 0).reshape(-1, cout)


def _prep_deconv_weight(w):
    """[Cin, Cout, 4, 4] -> [4*Cin, 4*Cout] sub-pixel matrix.
    rows: (di,dj) tap-major, cin-minor; cols: (rh,rw) parity-major, cout-minor;
    entry = w[cin, cout, (3-rh)-2*di, (3-rw)-2*dj]."""
    row_blocks = []
    for di in range(2):
        for dj in range(2):
            col_blocks = []
            for rh in range(2):
                for rw in range(2):
                    kh = (3 - rh) - 2 * di
                    kw = (3 - rw) - 2 * dj
                    col_blocks.append(w[:, :, kh, kw])        # [Cin, Cout]
            row_blocks.append(jnp.concatenate(col_blocks, axis=1))
    return jnp.concatenate(row_blocks, axis=0)


def prepare_params(params):
    """One-time (hoisted) weight repacking — no per-forward reshapes."""
    enc = []
    for li, (w, b) in enumerate(params["enc"]):
        if li == 0:   # pad Cin 3 -> 8 so the first matmul has K = 16*8 = 128
            w = jnp.pad(w, ((0, 0), (0, CIN_PAD - w.shape[1]), (0, 0), (0, 0)))
        enc.append((_prep_conv_weight(w), b))
    dec = []
    for (w, b) in params["dec"]:
        dec.append((_prep_deconv_weight(w), jnp.tile(b, 4)))
    return {"enc": enc, "dec": dec}


# ----------------------------------------------------------------------------
# Forward (NCHW in/out, NHWC inside)
# ----------------------------------------------------------------------------
def denoising_autoencoder(prepped, x_nchw):
    h = x_nchw.transpose(0, 2, 3, 1)                               # entry: -> NHWC
    h = jnp.pad(h, ((0, 0), (0, 0), (0, 0), (0, CIN_PAD - h.shape[-1])))
    for (w_mat, b) in prepped["enc"]:
        h = conv2d_s2(h, w_mat, b, "relu")
    n_dec = len(prepped["dec"])
    for li, (w_mat, b4) in enumerate(prepped["dec"]):
        act = "sigmoid" if li == n_dec - 1 else "relu"
        h = conv_transpose2d_subpixel(h, w_mat, b4, act)
    return h.transpose(0, 3, 1, 2)                                 # exit: -> NCHW


# ----------------------------------------------------------------------------
# Pure-XLA reference (same bf16-input / f32-accumulate numerics as the kernel)
# ----------------------------------------------------------------------------
def _ref_conv2d(x, w, b, activation):
    y = lax.conv_general_dilated(
        x.astype(COMPUTE_DTYPE), w.astype(COMPUTE_DTYPE),
        window_strides=(2, 2), padding=((1, 1), (1, 1)),
        dimension_numbers=("NCHW", "OIHW", "NCHW"),
        preferred_element_type=jnp.float32)
    y = y + b[None, :, None, None]
    return jnp.maximum(y, 0.0) if activation == "relu" else jax.nn.sigmoid(y)


def _ref_conv_transpose2d(x, w, b, activation):
    w_eq = jnp.flip(w, axis=(2, 3)).transpose(1, 0, 2, 3)
    y = lax.conv_general_dilated(
        x.astype(COMPUTE_DTYPE), w_eq.astype(COMPUTE_DTYPE),
        window_strides=(1, 1), padding=((2, 2), (2, 2)),
        lhs_dilation=(2, 2), dimension_numbers=("NCHW", "OIHW", "NCHW"),
        preferred_element_type=jnp.float32)
    y = y + b[None, :, None, None]
    return jnp.maximum(y, 0.0) if activation == "relu" else jax.nn.sigmoid(y)


def reference_forward(params, x):
    h = x
    for (w, b) in params["enc"]:
        h = _ref_conv2d(h, w, b, "relu")
    for li, (w, b) in enumerate(params["dec"]):
        act = "sigmoid" if li == len(params["dec"]) - 1 else "relu"
        h = _ref_conv_transpose2d(h, w, b, act)
    return h


if __name__ == "__main__":
    key = jax.random.PRNGKey(0)
    key, kx = jax.random.split(key)
    # Spatial 16 so the 4 stride-2 encoder convs bottom out at 1x1x512.
    x = jax.random.normal(kx, (2, 3, 16, 16), jnp.float32)
    params = init_params(key)
    prepped = prepare_params(params)

    fwd = jax.jit(denoising_autoencoder)
    out = jax.block_until_ready(fwd(prepped, x))
    assert out.shape == (2, 3, 16, 16), out.shape
    assert bool(jnp.all(jnp.isfinite(out)))

    ref = jax.block_until_ready(jax.jit(reference_forward)(params, x))
    np.testing.assert_allclose(np.asarray(out), np.asarray(ref),
                               rtol=1e-2, atol=1e-2)
    print("KERNEL_OK")
</pallas_src>

<mosaic_0001>
module attributes {stable_mosaic.version = 11 : i64} {
  func.func @_matmul_kernel(%arg0: i32, %arg1: i32, %arg2: i32, %arg3: memref<128x128xbf16, #tpu.memory_space<vmem>>, %arg4: memref<128x128xbf16, #tpu.memory_space<vmem>>, %arg5: memref<1x128xf32, #tpu.memory_space<vmem>>, %arg6: memref<128x128xf32, #tpu.memory_space<vmem>>, %arg7: memref<128x128xf32, #tpu.memory_space<vmem>>) attributes {dimension_semantics = [#tpu.dimension_semantics<parallel>, #tpu.dimension_semantics<parallel>, #tpu.dimension_semantics<arbitrary>], iteration_bounds = array<i64: 1, 1, 1>, scalar_prefetch = 0 : i64, scratch_operands = 1 : i64, tpu.core_type = #tpu.core_type<tc>, window_params = [{transform_indices = @transform_0, window_bounds = array<i64: 128, 128>}, {transform_indices = @transform_1, window_bounds = array<i64: 128, 128>}, {transform_indices = @transform_2, window_bounds = array<i64: 1, 128>}, {transform_indices = @transform_3, window_bounds = array<i64: 128, 128>}]} {
    %c0_i32 = arith.constant 0 : i32
    %0 = arith.cmpi eq, %arg2, %c0_i32 : i32
    %1 = arith.extui %0 : i1 to i32
    %c0_i32_0 = arith.constant 0 : i32
    %2 = arith.cmpi ne, %1, %c0_i32_0 : i32
    scf.if %2 {
      %cst_10 = arith.constant 0.000000e+00 : f32
      %12 = vector.broadcast %cst_10 : f32 to vector<128x128xf32>
      %c0_11 = arith.constant 0 : index
      %c0_12 = arith.constant 0 : index
      %13 = vector.load %arg7[%c0_11, %c0_12] : memref<128x128xf32, #tpu.memory_space<vmem>>, vector<128x128xf32>
      tpu.vector_store %arg7[%c0_11, %c0_12], %12 {strides = array<i32>} : memref<128x128xf32, #tpu.memory_space<vmem>>, vector<128x128xf32>,
    } else {
    }
    %c0 = arith.constant 0 : index
    %c0_1 = arith.constant 0 : index
    %3 = vector.load %arg7[%c0, %c0_1] : memref<128x128xf32, #tpu.memory_space<vmem>>, vector<128x128xf32>
    %c0_2 = arith.constant 0 : index
    %c0_3 = arith.constant 0 : index
    %4 = vector.load %arg3[%c0_2, %c0_3] : memref<128x128xbf16, #tpu.memory_space<vmem>>, vector<128x128xbf16>
    %c0_4 = arith.constant 0 : index
    %c0_5 = arith.constant 0 : index
    %5 = vector.load %arg4[%c0_4, %c0_5] : memref<128x128xbf16, #tpu.memory_space<vmem>>, vector<128x128xbf16>
    %cst = arith.constant dense<0.000000e+00> : vector<128x128xf32>
    %6 = tpu.matmul %4, %5, %cst {dimension_numbers = #tpu.dot_dimension_numbers<[1], [0], [0], [1], [0, 0, 1, 1], [], []>} : vector<128x128xbf16>, vector<128x128xbf16>, vector<128x128xf32> -> vector<128x128xf32>
    %7 = arith.addf %3, %6 : vector<128x128xf32>
    %c0_6 = arith.constant 0 : index
    %c0_7 = arith.constant 0 : index
    %8 = vector.load %arg7[%c0_6, %c0_7] : memref<128x128xf32, #tpu.memory_space<vmem>>, vector<128x128xf32>
    tpu.vector_store %arg7[%c0_6, %c0_7], %7 {strides = array<i32>} : memref<128x128xf32, #tpu.memory_space<vmem>>, vector<128x128xf32>,
    %c0_i32_8 = arith.constant 0 : i32
    %9 = arith.cmpi eq, %arg2, %c0_i32_8 : i32
    %10 = arith.extui %9 : i1 to i32
    %c0_i32_9 = arith.constant 0 : i32
    %11 = arith.cmpi ne, %10, %c0_i32_9 : i32
    scf.if %11 {
      %c0_10 = arith.constant 0 : index
      %c0_11 = arith.constant 0 : index
      %12 = vector.load %arg7[%c0_10, %c0_11] : memref<128x128xf32, #tpu.memory_space<vmem>>, vector<128x128xf32>
      %c0_12 = arith.constant 0 : index
      %c0_13 = arith.constant 0 : index
      %13 = vector.load %arg5[%c0_12, %c0_13] : memref<1x128xf32, #tpu.memory_space<vmem>>, vector<1x128xf32>
      %14 = vector.broadcast %13 : vector<1x128xf32> to vector<128x128xf32>
      %15 = arith.addf %12, %14 : vector<128x128xf32>
      %cst_14 = arith.constant 0.000000e+00 : f32
      %16 = vector.broadcast %cst_14 : f32 to vector<128x128xf32>
      %17 = arith.maximumf %15, %16 : vector<128x128xf32>
      %c0_15 = arith.constant 0 : index
      %c0_16 = arith.constant 0 : index
      %18 = vector.load %arg6[%c0_15, %c0_16] : memref<128x128xf32, #tpu.memory_space<vmem>>, vector<128x128xf32>
      tpu.vector_store %arg6[%c0_15, %c0_16], %17 {strides = array<i32>} : memref<128x128xf32, #tpu.memory_space<vmem>>, vector<128x128xf32>,
    } else {
    }
    return
  }
  func.func @transform_0(%arg0: i32, %arg1: i32, %arg2: i32) -> (i32, i32) {
    %c0_i32 = arith.constant 0 : i32
    return %arg0, %arg2 : i32, i32
  }
  func.func @transform_1(%arg0: i32, %arg1: i32, %arg2: i32) -> (i32, i32) {
    %c0_i32 = arith.constant 0 : i32
    return %arg2, %arg1 : i32, i32
  }
  func.func @transform_2(%arg0: i32, %arg1: i32, %arg2: i32) -> (i32, i32) {
    %c0_i32 = arith.constant 0 : i32
    %c0_i32_0 = arith.constant 0 : i32
    return %c0_i32, %arg1 : i32, i32
  }
  func.func @transform_3(%arg0: i32, %arg1: i32, %arg2: i32) -> (i32, i32) {
    %c0_i32 = arith.constant 0 : i32
    return %arg0, %arg1 : i32, i32
  }
}

module attributes {stable_mosaic.version = 11 : i64} {
  func.func @_matmul_kernel(%arg0: i32, %arg1: i32, %arg2: i32, %arg3: memref<32x512xbf16, #tpu.memory_space<vmem>>, %arg4: memref<512x128xbf16, #tpu.memory_space<vmem>>, %arg5: memref<1x128xf32, #tpu.memory_space<vmem>>, %arg6: memref<32x128xf32, #tpu.memory_space<vmem>>, %arg7: memref<32x128xf32, #tpu.memory_space<vmem>>) attributes {dimension_semantics = [#tpu.dimension_semantics<parallel>, #tpu.dimension_semantics<parallel>, #tpu.dimension_semantics<arbitrary>], iteration_bounds = array<i64: 1, 1, 2>, scalar_prefetch = 0 : i64, scratch_operands = 1 : i64, tpu.core_type = #tpu.core_type<tc>, window_params = [{transform_indices = @transform_0, window_bounds = array<i64: 32, 512>}, {transform_indices = @transform_1, window_bounds = array<i64: 512, 128>}, {transform_indices = @transform_2, window_bounds = array<i64: 1, 128>}, {transform_indices = @transform_3, window_bounds = array<i64: 32, 128>}]} {
    %c0_i32 = arith.constant 0 : i32
    %0 = arith.cmpi eq, %arg2, %c0_i32 : i32
    %1 = arith.extui %0 : i1 to i32
    %c0_i32_0 = arith.constant 0 : i32
    %2 = arith.cmpi ne, %1, %c0_i32_0 : i32
    scf.if %2 {
      %cst_9 = arith.constant 0.000000e+00 : f32
      %12 = vector.broadcast %cst_9 : f32 to vector<32x128xf32>
      %c0_10 = arith.constant 0 : index
      %c0_11 = arith.constant 0 : index
      %13 = vector.load %arg7[%c0_10, %c0_11] : memref<32x128xf32, #tpu.memory_space<vmem>>, vector<32x128xf32>
      tpu.vector_store %arg7[%c0_10, %c0_11], %12 {strides = array<i32>} : memref<32x128xf32, #tpu.memory_space<vmem>>, vector<32x128xf32>,
    } else {
    }
    %c0 = arith.constant 0 : index
    %c0_1 = arith.constant 0 : index
    %3 = vector.load %arg7[%c0, %c0_1] : memref<32x128xf32, #tpu.memory_space<vmem>>, vector<32x128xf32>
    %c0_2 = arith.constant 0 : index
    %c0_3 = arith.constant 0 : index
    %4 = vector.load %arg3[%c0_2, %c0_3] : memref<32x512xbf16, #tpu.memory_space<vmem>>, vector<32x512xbf16>
    %c0_4 = arith.constant 0 : index
    %c0_5 = arith.constant 0 : index
    %5 = vector.load %arg4[%c0_4, %c0_5] : memref<512x128xbf16, #tpu.memory_space<vmem>>, vector<512x128xbf16>
    %cst = arith.constant dense<0.000000e+00> : vector<32x128xf32>
    %6 = tpu.matmul %4, %5, %cst {dimension_numbers = #tpu.dot_dimension_numbers<[1], [0], [0], [1], [0, 0, 1, 1], [], []>} : vector<32x512xbf16>, vector<512x128xbf16>, vector<32x128xf32> -> vector<32x128xf32>
    %7 = arith.addf %3, %6 : vector<32x128xf32>
    %c0_6 = arith.constant 0 : index
    %c0_7 = arith.constant 0 : index
    %8 = vector.load %arg7[%c0_6, %c0_7] : memref<32x128xf32, #tpu.memory_space<vmem>>, vector<32x128xf32>
    tpu.vector_store %arg7[%c0_6, %c0_7], %7 {strides = array<i32>} : memref<32x128xf32, #tpu.memory_space<vmem>>, vector<32x128xf32>,
    %c1_i32 = arith.constant 1 : i32
    %9 = arith.cmpi eq, %arg2, %c1_i32 : i32
    %10 = arith.extui %9 : i1 to i32
    %c0_i32_8 = arith.constant 0 : i32
    %11 = arith.cmpi ne, %10, %c0_i32_8 : i32
    scf.if %11 {
      %c0_9 = arith.constant 0 : index
      %c0_10 = arith.constant 0 : index
      %12 = vector.load %arg7[%c0_9, %c0_10] : memref<32x128xf32, #tpu.memory_space<vmem>>, vector<32x128xf32>
      %c0_11 = arith.constant 0 : index
      %c0_12 = arith.constant 0 : index
      %13 = vector.load %arg5[%c0_11, %c0_12] : memref<1x128xf32, #tpu.memory_space<vmem>>, vector<1x128xf32>
      %14 = vector.broadcast %13 : vector<1x128xf32> to vector<32x128xf32>
      %15 = arith.addf %12, %14 : vector<32x128xf32>
      %cst_13 = arith.constant 0.000000e+00 : f32
      %16 = vector.broadcast %cst_13 : f32 to vector<32x128xf32>
      %17 = arith.maximumf %15, %16 : vector<32x128xf32>
      %c0_14 = arith.constant 0 : index
      %c0_15 = arith.constant 0 : index
      %18 = vector.load %arg6[%c0_14, %c0_15] : memref<32x128xf32, #tpu.memory_space<vmem>>, vector<32x128xf32>
      tpu.vector_store %arg6[%c0_14, %c0_15], %17 {strides = array<i32>} : memref<32x128xf32, #tpu.memory_space<vmem>>, vector<32x128xf32>,
    } else {
    }
    return
  }
  func.func @transform_0(%arg0: i32, %arg1: i32, %arg2: i32) -> (i32, i32) {
    %c0_i32 = arith.constant 0 : i32
    return %arg0, %arg2 : i32, i32
  }
  func.func @transform_1(%arg0: i32, %arg1: i32, %arg2: i32) -> (i32, i32) {
    %c0_i32 = arith.constant 0 : i32
    return %arg2, %arg1 : i32, i32
  }
  func.func @transform_2(%arg0: i32, %arg1: i32, %arg2: i32) -> (i32, i32) {
    %c0_i32 = arith.constant 0 : i32
    %c0_i32_0 = arith.constant 0 : i32
    return %c0_i32, %arg1 : i32, i32
  }
  func.func @transform_3(%arg0: i32, %arg1: i32, %arg2: i32) -> (i32, i32) {
    %c0_i32 = arith.constant 0 : i32
    return %arg0, %arg1 : i32, i32
  }
}

module attributes {stable_mosaic.version = 11 : i64} {
  func.func @_matmul_kernel(%arg0: i32, %arg1: i32, %arg2: i32, %arg3: memref<8x512xbf16, #tpu.memory_space<vmem>>, %arg4: memref<512x256xbf16, #tpu.memory_space<vmem>>, %arg5: memref<1x256xf32, #tpu.memory_space<vmem>>, %arg6: memref<8x256xf32, #tpu.memory_space<vmem>>, %arg7: memref<8x256xf32, #tpu.memory_space<vmem>>) attributes {dimension_semantics = [#tpu.dimension_semantics<parallel>, #tpu.dimension_semantics<parallel>, #tpu.dimension_semantics<arbitrary>], iteration_bounds = array<i64: 1, 1, 4>, scalar_prefetch = 0 : i64, scratch_operands = 1 : i64, tpu.core_type = #tpu.core_type<tc>, window_params = [{transform_indices = @transform_0, window_bounds = array<i64: 8, 512>}, {transform_indices = @transform_1, window_bounds = array<i64: 512, 256>}, {transform_indices = @transform_2, window_bounds = array<i64: 1, 256>}, {transform_indices = @transform_3, window_bounds = array<i64: 8, 256>}]} {
    %c0_i32 = arith.constant 0 : i32
    %0 = arith.cmpi eq, %arg2, %c0_i32 : i32
    %1 = arith.extui %0 : i1 to i32
    %c0_i32_0 = arith.constant 0 : i32
    %2 = arith.cmpi ne, %1, %c0_i32_0 : i32
    scf.if %2 {
      %cst_9 = arith.constant 0.000000e+00 : f32
      %12 = vector.broadcast %cst_9 : f32 to vector<8x256xf32>
      %c0_10 = arith.constant 0 : index
      %c0_11 = arith.constant 0 : index
      %13 = vector.load %arg7[%c0_10, %c0_11] : memref<8x256xf32, #tpu.memory_space<vmem>>, vector<8x256xf32>
      tpu.vector_store %arg7[%c0_10, %c0_11], %12 {strides = array<i32>} : memref<8x256xf32, #tpu.memory_space<vmem>>, vector<8x256xf32>,
    } else {
    }
    %c0 = arith.constant 0 : index
    %c0_1 = arith.constant 0 : index
    %3 = vector.load %arg7[%c0, %c0_1] : memref<8x256xf32, #tpu.memory_space<vmem>>, vector<8x256xf32>
    %c0_2 = arith.constant 0 : index
    %c0_3 = arith.constant 0 : index
    %4 = vector.load %arg3[%c0_2, %c0_3] : memref<8x512xbf16, #tpu.memory_space<vmem>>, vector<8x512xbf16>
    %c0_4 = arith.constant 0 : index
    %c0_5 = arith.constant 0 : index
    %5 = vector.load %arg4[%c0_4, %c0_5] : memref<512x256xbf16, #tpu.memory_space<vmem>>, vector<512x256xbf16>
    %cst = arith.constant dense<0.000000e+00> : vector<8x256xf32>
    %6 = tpu.matmul %4, %5, %cst {dimension_numbers = #tpu.dot_dimension_numbers<[1], [0], [0], [1], [0, 0, 1, 1], [], []>} : vector<8x512xbf16>, vector<512x256xbf16>, vector<8x256xf32> -> vector<8x256xf32>
    %7 = arith.addf %3, %6 : vector<8x256xf32>
    %c0_6 = arith.constant 0 : index
    %c0_7 = arith.constant 0 : index
    %8 = vector.load %arg7[%c0_6, %c0_7] : memref<8x256xf32, #tpu.memory_space<vmem>>, vector<8x256xf32>
    tpu.vector_store %arg7[%c0_6, %c0_7], %7 {strides = array<i32>} : memref<8x256xf32, #tpu.memory_space<vmem>>, vector<8x256xf32>,
    %c3_i32 = arith.constant 3 : i32
    %9 = arith.cmpi eq, %arg2, %c3_i32 : i32
    %10 = arith.extui %9 : i1 to i32
    %c0_i32_8 = arith.constant 0 : i32
    %11 = arith.cmpi ne, %10, %c0_i32_8 : i32
    scf.if %11 {
      %c0_9 = arith.constant 0 : index
      %c0_10 = arith.constant 0 : index
      %12 = vector.load %arg7[%c0_9, %c0_10] : memref<8x256xf32, #tpu.memory_space<vmem>>, vector<8x256xf32>
      %c0_11 = arith.constant 0 : index
      %c0_12 = arith.constant 0 : index
      %13 = vector.load %arg5[%c0_11, %c0_12] : memref<1x256xf32, #tpu.memory_space<vmem>>, vector<1x256xf32>
      %14 = vector.broadcast %13 : vector<1x256xf32> to vector<8x256xf32>
      %15 = arith.addf %12, %14 : vector<8x256xf32>
      %cst_13 = arith.constant 0.000000e+00 : f32
      %16 = vector.broadcast %cst_13 : f32 to vector<8x256xf32>
      %17 = arith.maximumf %15, %16 : vector<8x256xf32>
      %c0_14 = arith.constant 0 : index
      %c0_15 = arith.constant 0 : index
      %18 = vector.load %arg6[%c0_14, %c0_15] : memref<8x256xf32, #tpu.memory_space<vmem>>, vector<8x256xf32>
      tpu.vector_store %arg6[%c0_14, %c0_15], %17 {strides = array<i32>} : memref<8x256xf32, #tpu.memory_space<vmem>>, vector<8x256xf32>,
    } else {
    }
    return
  }
  func.func @transform_0(%arg0: i32, %arg1: i32, %arg2: i32) -> (i32, i32) {
    %c0_i32 = arith.constant 0 : i32
    return %arg0, %arg2 : i32, i32
  }
  func.func @transform_1(%arg0: i32, %arg1: i32, %arg2: i32) -> (i32, i32) {
    %c0_i32 = arith.constant 0 : i32
    return %arg2, %arg1 : i32, i32
  }
  func.func @transform_2(%arg0: i32, %arg1: i32, %arg2: i32) -> (i32, i32) {
    %c0_i32 = arith.constant 0 : i32
    %c0_i32_0 = arith.constant 0 : i32
    return %c0_i32, %arg1 : i32, i32
  }
  func.func @transform_3(%arg0: i32, %arg1: i32, %arg2: i32) -> (i32, i32) {
    %c0_i32 = arith.constant 0 : i32
    return %arg0, %arg1 : i32, i32
  }
}

module attributes {stable_mosaic.version = 11 : i64} {
  func.func @_matmul_kernel(%arg0: i32, %arg1: i32, %arg2: i32, %arg3: memref<8x512xbf16, #tpu.memory_space<vmem>>, %arg4: memref<512x512xbf16, #tpu.memory_space<vmem>>, %arg5: memref<1x512xf32, #tpu.memory_space<vmem>>, %arg6: memref<8x512xf32, #tpu.memory_space<vmem>>, %arg7: memref<8x512xf32, #tpu.memory_space<vmem>>) attributes {dimension_semantics = [#tpu.dimension_semantics<parallel>, #tpu.dimension_semantics<parallel>, #tpu.dimension_semantics<arbitrary>], iteration_bounds = array<i64: 1, 1, 8>, scalar_prefetch = 0 : i64, scratch_operands = 1 : i64, tpu.core_type = #tpu.core_type<tc>, window_params = [{transform_indices = @transform_0, window_bounds = array<i64: 8, 512>}, {transform_indices = @transform_1, window_bounds = array<i64: 512, 512>}, {transform_indices = @transform_2, window_bounds = array<i64: 1, 512>}, {transform_indices = @transform_3, window_bounds = array<i64: 8, 512>}]} {
    %c0_i32 = arith.constant 0 : i32
    %0 = arith.cmpi eq, %arg2, %c0_i32 : i32
    %1 = arith.extui %0 : i1 to i32
    %c0_i32_0 = arith.constant 0 : i32
    %2 = arith.cmpi ne, %1, %c0_i32_0 : i32
    scf.if %2 {
      %cst_9 = arith.constant 0.000000e+00 : f32
      %12 = vector.broadcast %cst_9 : f32 to vector<8x512xf32>
      %c0_10 = arith.constant 0 : index
      %c0_11 = arith.constant 0 : index
      %13 = vector.load %arg7[%c0_10, %c0_11] : memref<8x512xf32, #tpu.memory_space<vmem>>, vector<8x512xf32>
      tpu.vector_store %arg7[%c0_10, %c0_11], %12 {strides = array<i32>} : memref<8x512xf32, #tpu.memory_space<vmem>>, vector<8x512xf32>,
    } else {
    }
    %c0 = arith.constant 0 : index
    %c0_1 = arith.constant 0 : index
    %3 = vector.load %arg7[%c0, %c0_1] : memref<8x512xf32, #tpu.memory_space<vmem>>, vector<8x512xf32>
    %c0_2 = arith.constant 0 : index
    %c0_3 = arith.constant 0 : index
    %4 = vector.load %arg3[%c0_2, %c0_3] : memref<8x512xbf16, #tpu.memory_space<vmem>>, vector<8x512xbf16>
    %c0_4 = arith.constant 0 : index
    %c0_5 = arith.constant 0 : index
    %5 = vector.load %arg4[%c0_4, %c0_5] : memref<512x512xbf16, #tpu.memory_space<vmem>>, vector<512x512xbf16>
    %cst = arith.constant dense<0.000000e+00> : vector<8x512xf32>
    %6 = tpu.matmul %4, %5, %cst {dimension_numbers = #tpu.dot_dimension_numbers<[1], [0], [0], [1], [0, 0, 1, 1], [], []>} : vector<8x512xbf16>, vector<512x512xbf16>, vector<8x512xf32> -> vector<8x512xf32>
    %7 = arith.addf %3, %6 : vector<8x512xf32>
    %c0_6 = arith.constant 0 : index
    %c0_7 = arith.constant 0 : index
    %8 = vector.load %arg7[%c0_6, %c0_7] : memref<8x512xf32, #tpu.memory_space<vmem>>, vector<8x512xf32>
    tpu.vector_store %arg7[%c0_6, %c0_7], %7 {strides = array<i32>} : memref<8x512xf32, #tpu.memory_space<vmem>>, vector<8x512xf32>,
    %c7_i32 = arith.constant 7 : i32
    %9 = arith.cmpi eq, %arg2, %c7_i32 : i32
    %10 = arith.extui %9 : i1 to i32
    %c0_i32_8 = arith.constant 0 : i32
    %11 = arith.cmpi ne, %10, %c0_i32_8 : i32
    scf.if %11 {
      %c0_9 = arith.constant 0 : index
      %c0_10 = arith.constant 0 : index
      %12 = vector.load %arg7[%c0_9, %c0_10] : memref<8x512xf32, #tpu.memory_space<vmem>>, vector<8x512xf32>
      %c0_11 = arith.constant 0 : index
      %c0_12 = arith.constant 0 : index
      %13 = vector.load %arg5[%c0_11, %c0_12] : memref<1x512xf32, #tpu.memory_space<vmem>>, vector<1x512xf32>
      %14 = vector.broadcast %13 : vector<1x512xf32> to vector<8x512xf32>
      %15 = arith.addf %12, %14 : vector<8x512xf32>
      %cst_13 = arith.constant 0.000000e+00 : f32
      %16 = vector.broadcast %cst_13 : f32 to vector<8x512xf32>
      %17 = arith.maximumf %15, %16 : vector<8x512xf32>
      %c0_14 = arith.constant 0 : index
      %c0_15 = arith.constant 0 : index
      %18 = vector.load %arg6[%c0_14, %c0_15] : memref<8x512xf32, #tpu.memory_space<vmem>>, vector<8x512xf32>
      tpu.vector_store %arg6[%c0_14, %c0_15], %17 {strides = array<i32>} : memref<8x512xf32, #tpu.memory_space<vmem>>, vector<8x512xf32>,
    } else {
    }
    return
  }
  func.func @transform_0(%arg0: i32, %arg1: i32, %arg2: i32) -> (i32, i32) {
    %c0_i32 = arith.constant 0 : i32
    return %arg0, %arg2 : i32, i32
  }
  func.func @transform_1(%arg0: i32, %arg1: i32, %arg2: i32) -> (i32, i32) {
    %c0_i32 = arith.constant 0 : i32
    return %arg2, %arg1 : i32, i32
  }
  func.func @transform_2(%arg0: i32, %arg1: i32, %arg2: i32) -> (i32, i32) {
    %c0_i32 = arith.constant 0 : i32
    %c0_i32_0 = arith.constant 0 : i32
    return %c0_i32, %arg1 : i32, i32
  }
  func.func @transform_3(%arg0: i32, %arg1: i32, %arg2: i32) -> (i32, i32) {
    %c0_i32 = arith.constant 0 : i32
    return %arg0, %arg1 : i32, i32
  }
}

module attributes {stable_mosaic.version = 11 : i64} {
  func.func @_matmul_kernel(%arg0: i32, %arg1: i32, %arg2: i32, %arg3: memref<8x512xbf16, #tpu.memory_space<vmem>>, %arg4: memref<512x512xbf16, #tpu.memory_space<vmem>>, %arg5: memref<1x512xf32, #tpu.memory_space<vmem>>, %arg6: memref<8x512xf32, #tpu.memory_space<vmem>>, %arg7: memref<8x512xf32, #tpu.memory_space<vmem>>) attributes {dimension_semantics = [#tpu.dimension_semantics<parallel>, #tpu.dimension_semantics<parallel>, #tpu.dimension_semantics<arbitrary>], iteration_bounds = array<i64: 1, 2, 4>, scalar_prefetch = 0 : i64, scratch_operands = 1 : i64, tpu.core_type = #tpu.core_type<tc>, window_params = [{transform_indices = @transform_0, window_bounds = array<i64: 8, 512>}, {transform_indices = @transform_1, window_bounds = array<i64: 512, 512>}, {transform_indices = @transform_2, window_bounds = array<i64: 1, 512>}, {transform_indices = @transform_3, window_bounds = array<i64: 8, 512>}]} {
    %c0_i32 = arith.constant 0 : i32
    %0 = arith.cmpi eq, %arg2, %c0_i32 : i32
    %1 = arith.extui %0 : i1 to i32
    %c0_i32_0 = arith.constant 0 : i32
    %2 = arith.cmpi ne, %1, %c0_i32_0 : i32
    scf.if %2 {
      %cst_9 = arith.constant 0.000000e+00 : f32
      %12 = vector.broadcast %cst_9 : f32 to vector<8x512xf32>
      %c0_10 = arith.constant 0 : index
      %c0_11 = arith.constant 0 : index
      %13 = vector.load %arg7[%c0_10, %c0_11] : memref<8x512xf32, #tpu.memory_space<vmem>>, vector<8x512xf32>
      tpu.vector_store %arg7[%c0_10, %c0_11], %12 {strides = array<i32>} : memref<8x512xf32, #tpu.memory_space<vmem>>, vector<8x512xf32>,
    } else {
    }
    %c0 = arith.constant 0 : index
    %c0_1 = arith.constant 0 : index
    %3 = vector.load %arg7[%c0, %c0_1] : memref<8x512xf32, #tpu.memory_space<vmem>>, vector<8x512xf32>
    %c0_2 = arith.constant 0 : index
    %c0_3 = arith.constant 0 : index
    %4 = vector.load %arg3[%c0_2, %c0_3] : memref<8x512xbf16, #tpu.memory_space<vmem>>, vector<8x512xbf16>
    %c0_4 = arith.constant 0 : index
    %c0_5 = arith.constant 0 : index
    %5 = vector.load %arg4[%c0_4, %c0_5] : memref<512x512xbf16, #tpu.memory_space<vmem>>, vector<512x512xbf16>
    %cst = arith.constant dense<0.000000e+00> : vector<8x512xf32>
    %6 = tpu.matmul %4, %5, %cst {dimension_numbers = #tpu.dot_dimension_numbers<[1], [0], [0], [1], [0, 0, 1, 1], [], []>} : vector<8x512xbf16>, vector<512x512xbf16>, vector<8x512xf32> -> vector<8x512xf32>
    %7 = arith.addf %3, %6 : vector<8x512xf32>
    %c0_6 = arith.constant 0 : index
    %c0_7 = arith.constant 0 : index
    %8 = vector.load %arg7[%c0_6, %c0_7] : memref<8x512xf32, #tpu.memory_space<vmem>>, vector<8x512xf32>
    tpu.vector_store %arg7[%c0_6, %c0_7], %7 {strides = array<i32>} : memref<8x512xf32, #tpu.memory_space<vmem>>, vector<8x512xf32>,
    %c3_i32 = arith.constant 3 : i32
    %9 = arith.cmpi eq, %arg2, %c3_i32 : i32
    %10 = arith.extui %9 : i1 to i32
    %c0_i32_8 = arith.constant 0 : i32
    %11 = arith.cmpi ne, %10, %c0_i32_8 : i32
    scf.if %11 {
      %c0_9 = arith.constant 0 : index
      %c0_10 = arith.constant 0 : index
      %12 = vector.load %arg7[%c0_9, %c0_10] : memref<8x512xf32, #tpu.memory_space<vmem>>, vector<8x512xf32>
      %c0_11 = arith.constant 0 : index
      %c0_12 = arith.constant 0 : index
      %13 = vector.load %arg5[%c0_11, %c0_12] : memref<1x512xf32, #tpu.memory_space<vmem>>, vector<1x512xf32>
      %14 = vector.broadcast %13 : vector<1x512xf32> to vector<8x512xf32>
      %15 = arith.addf %12, %14 : vector<8x512xf32>
      %cst_13 = arith.constant 0.000000e+00 : f32
      %16 = vector.broadcast %cst_13 : f32 to vector<8x512xf32>
      %17 = arith.maximumf %15, %16 : vector<8x512xf32>
      %c0_14 = arith.constant 0 : index
      %c0_15 = arith.constant 0 : index
      %18 = vector.load %arg6[%c0_14, %c0_15] : memref<8x512xf32, #tpu.memory_space<vmem>>, vector<8x512xf32>
      tpu.vector_store %arg6[%c0_14, %c0_15], %17 {strides = array<i32>} : memref<8x512xf32, #tpu.memory_space<vmem>>, vector<8x512xf32>,
    } else {
    }
    return
  }
  func.func @transform_0(%arg0: i32, %arg1: i32, %arg2: i32) -> (i32, i32) {
    %c0_i32 = arith.constant 0 : i32
    return %arg0, %arg2 : i32, i32
  }
  func.func @transform_1(%arg0: i32, %arg1: i32, %arg2: i32) -> (i32, i32) {
    %c0_i32 = arith.constant 0 : i32
    return %arg2, %arg1 : i32, i32
  }
  func.func @transform_2(%arg0: i32, %arg1: i32, %arg2: i32) -> (i32, i32) {
    %c0_i32 = arith.constant 0 : i32
    %c0_i32_0 = arith.constant 0 : i32
    return %c0_i32, %arg1 : i32, i32
  }
  func.func @transform_3(%arg0: i32, %arg1: i32, %arg2: i32) -> (i32, i32) {
    %c0_i32 = arith.constant 0 : i32
    return %arg0, %arg1 : i32, i32
  }
}

module attributes {stable_mosaic.version = 11 : i64} {
  func.func @_matmul_kernel(%arg0: i32, %arg1: i32, %arg2: i32, %arg3: memref<24x512xbf16, #tpu.memory_space<vmem>>, %arg4: memref<512x512xbf16, #tpu.memory_space<vmem>>, %arg5: memref<1x512xf32, #tpu.memory_space<vmem>>, %arg6: memref<24x512xf32, #tpu.memory_space<vmem>>, %arg7: memref<24x512xf32, #tpu.memory_space<vmem>>) attributes {dimension_semantics = [#tpu.dimension_semantics<parallel>, #tpu.dimension_semantics<parallel>, #tpu.dimension_semantics<arbitrary>], iteration_bounds = array<i64: 1, 1, 2>, scalar_prefetch = 0 : i64, scratch_operands = 1 : i64, tpu.core_type = #tpu.core_type<tc>, window_params = [{transform_indices = @transform_0, window_bounds = array<i64: 24, 512>}, {transform_indices = @transform_1, window_bounds = array<i64: 512, 512>}, {transform_indices = @transform_2, window_bounds = array<i64: 1, 512>}, {transform_indices = @transform_3, window_bounds = array<i64: 24, 512>}]} {
    %c0_i32 = arith.constant 0 : i32
    %0 = arith.cmpi eq, %arg2, %c0_i32 : i32
    %1 = arith.extui %0 : i1 to i32
    %c0_i32_0 = arith.constant 0 : i32
    %2 = arith.cmpi ne, %1, %c0_i32_0 : i32
    scf.if %2 {
      %cst_9 = arith.constant 0.000000e+00 : f32
      %12 = vector.broadcast %cst_9 : f32 to vector<24x512xf32>
      %c0_10 = arith.constant 0 : index
      %c0_11 = arith.constant 0 : index
      %13 = vector.load %arg7[%c0_10, %c0_11] : memref<24x512xf32, #tpu.memory_space<vmem>>, vector<24x512xf32>
      tpu.vector_store %arg7[%c0_10, %c0_11], %12 {strides = array<i32>} : memref<24x512xf32, #tpu.memory_space<vmem>>, vector<24x512xf32>,
    } else {
    }
    %c0 = arith.constant 0 : index
    %c0_1 = arith.constant 0 : index
    %3 = vector.load %arg7[%c0, %c0_1] : memref<24x512xf32, #tpu.memory_space<vmem>>, vector<24x512xf32>
    %c0_2 = arith.constant 0 : index
    %c0_3 = arith.constant 0 : index
    %4 = vector.load %arg3[%c0_2, %c0_3] : memref<24x512xbf16, #tpu.memory_space<vmem>>, vector<24x512xbf16>
    %c0_4 = arith.constant 0 : index
    %c0_5 = arith.constant 0 : index
    %5 = vector.load %arg4[%c0_4, %c0_5] : memref<512x512xbf16, #tpu.memory_space<vmem>>, vector<512x512xbf16>
    %cst = arith.constant dense<0.000000e+00> : vector<24x512xf32>
    %6 = tpu.matmul %4, %5, %cst {dimension_numbers = #tpu.dot_dimension_numbers<[1], [0], [0], [1], [0, 0, 1, 1], [], []>} : vector<24x512xbf16>, vector<512x512xbf16>, vector<24x512xf32> -> vector<24x512xf32>
    %7 = arith.addf %3, %6 : vector<24x512xf32>
    %c0_6 = arith.constant 0 : index
    %c0_7 = arith.constant 0 : index
    %8 = vector.load %arg7[%c0_6, %c0_7] : memref<24x512xf32, #tpu.memory_space<vmem>>, vector<24x512xf32>
    tpu.vector_store %arg7[%c0_6, %c0_7], %7 {strides = array<i32>} : memref<24x512xf32, #tpu.memory_space<vmem>>, vector<24x512xf32>,
    %c1_i32 = arith.constant 1 : i32
    %9 = arith.cmpi eq, %arg2, %c1_i32 : i32
    %10 = arith.extui %9 : i1 to i32
    %c0_i32_8 = arith.constant 0 : i32
    %11 = arith.cmpi ne, %10, %c0_i32_8 : i32
    scf.if %11 {
      %c0_9 = arith.constant 0 : index
      %c0_10 = arith.constant 0 : index
      %12 = vector.load %arg7[%c0_9, %c0_10] : memref<24x512xf32, #tpu.memory_space<vmem>>, vector<24x512xf32>
      %c0_11 = arith.constant 0 : index
      %c0_12 = arith.constant 0 : index
      %13 = vector.load %arg5[%c0_11, %c0_12] : memref<1x512xf32, #tpu.memory_space<vmem>>, vector<1x512xf32>
      %14 = vector.broadcast %13 : vector<1x512xf32> to vector<24x512xf32>
      %15 = arith.addf %12, %14 : vector<24x512xf32>
      %cst_13 = arith.constant 0.000000e+00 : f32
      %16 = vector.broadcast %cst_13 : f32 to vector<24x512xf32>
      %17 = arith.maximumf %15, %16 : vector<24x512xf32>
      %c0_14 = arith.constant 0 : index
      %c0_15 = arith.constant 0 : index
      %18 = vector.load %arg6[%c0_14, %c0_15] : memref<24x512xf32, #tpu.memory_space<vmem>>, vector<24x512xf32>
      tpu.vector_store %arg6[%c0_14, %c0_15], %17 {strides = array<i32>} : memref<24x512xf32, #tpu.memory_space<vmem>>, vector<24x512xf32>,
    } else {
    }
    return
  }
  func.func @transform_0(%arg0: i32, %arg1: i32, %arg2: i32) -> (i32, i32) {
    %c0_i32 = arith.constant 0 : i32
    return %arg0, %arg2 : i32, i32
  }
  func.func @transform_1(%arg0: i32, %arg1: i32, %arg2: i32) -> (i32, i32) {
    %c0_i32 = arith.constant 0 : i32
    return %arg2, %arg1 : i32, i32
  }
  func.func @transform_2(%arg0: i32, %arg1: i32, %arg2: i32) -> (i32, i32) {
    %c0_i32 = arith.constant 0 : i32
    %c0_i32_0 = arith.constant 0 : i32
    return %c0_i32, %arg1 : i32, i32
  }
  func.func @transform_3(%arg0: i32, %arg1: i32, %arg2: i32) -> (i32, i32) {
    %c0_i32 = arith.constant 0 : i32
    return %arg0, %arg1 : i32, i32
  }
}

module attributes {stable_mosaic.version = 11 : i64} {
  func.func @_matmul_kernel(%arg0: i32, %arg1: i32, %arg2: i32, %arg3: memref<56x512xbf16, #tpu.memory_space<vmem>>, %arg4: memref<512x256xbf16, #tpu.memory_space<vmem>>, %arg5: memref<1x256xf32, #tpu.memory_space<vmem>>, %arg6: memref<56x256xf32, #tpu.memory_space<vmem>>, %arg7: memref<56x256xf32, #tpu.memory_space<vmem>>) attributes {dimension_semantics = [#tpu.dimension_semantics<parallel>, #tpu.dimension_semantics<parallel>, #tpu.dimension_semantics<arbitrary>], iteration_bounds = array<i64: 1, 1, 1>, scalar_prefetch = 0 : i64, scratch_operands = 1 : i64, tpu.core_type = #tpu.core_type<tc>, window_params = [{transform_indices = @transform_0, window_bounds = array<i64: 56, 512>}, {transform_indices = @transform_1, window_bounds = array<i64: 512, 256>}, {transform_indices = @transform_2, window_bounds = array<i64: 1, 256>}, {transform_indices = @transform_3, window_bounds = array<i64: 56, 256>}]} {
    %c0_i32 = arith.constant 0 : i32
    %0 = arith.cmpi eq, %arg2, %c0_i32 : i32
    %1 = arith.extui %0 : i1 to i32
    %c0_i32_0 = arith.constant 0 : i32
    %2 = arith.cmpi ne, %1, %c0_i32_0 : i32
    scf.if %2 {
      %cst_10 = arith.constant 0.000000e+00 : f32
      %12 = vector.broadcast %cst_10 : f32 to vector<56x256xf32>
      %c0_11 = arith.constant 0 : index
      %c0_12 = arith.constant 0 : index
      %13 = vector.load %arg7[%c0_11, %c0_12] : memref<56x256xf32, #tpu.memory_space<vmem>>, vector<56x256xf32>
      tpu.vector_store %arg7[%c0_11, %c0_12], %12 {strides = array<i32>} : memref<56x256xf32, #tpu.memory_space<vmem>>, vector<56x256xf32>,
    } else {
    }
    %c0 = arith.constant 0 : index
    %c0_1 = arith.constant 0 : index
    %3 = vector.load %arg7[%c0, %c0_1] : memref<56x256xf32, #tpu.memory_space<vmem>>, vector<56x256xf32>
    %c0_2 = arith.constant 0 : index
    %c0_3 = arith.constant 0 : index
    %4 = vector.load %arg3[%c0_2, %c0_3] : memref<56x512xbf16, #tpu.memory_space<vmem>>, vector<56x512xbf16>
    %c0_4 = arith.constant 0 : index
    %c0_5 = arith.constant 0 : index
    %5 = vector.load %arg4[%c0_4, %c0_5] : memref<512x256xbf16, #tpu.memory_space<vmem>>, vector<512x256xbf16>
    %cst = arith.constant dense<0.000000e+00> : vector<56x256xf32>
    %6 = tpu.matmul %4, %5, %cst {dimension_numbers = #tpu.dot_dimension_numbers<[1], [0], [0], [1], [0, 0, 1, 1], [], []>} : vector<56x512xbf16>, vector<512x256xbf16>, vector<56x256xf32> -> vector<56x256xf32>
    %7 = arith.addf %3, %6 : vector<56x256xf32>
    %c0_6 = arith.constant 0 : index
    %c0_7 = arith.constant 0 : index
    %8 = vector.load %arg7[%c0_6, %c0_7] : memref<56x256xf32, #tpu.memory_space<vmem>>, vector<56x256xf32>
    tpu.vector_store %arg7[%c0_6, %c0_7], %7 {strides = array<i32>} : memref<56x256xf32, #tpu.memory_space<vmem>>, vector<56x256xf32>,
    %c0_i32_8 = arith.constant 0 : i32
    %9 = arith.cmpi eq, %arg2, %c0_i32_8 : i32
    %10 = arith.extui %9 : i1 to i32
    %c0_i32_9 = arith.constant 0 : i32
    %11 = arith.cmpi ne, %10, %c0_i32_9 : i32
    scf.if %11 {
      %c0_10 = arith.constant 0 : index
      %c0_11 = arith.constant 0 : index
      %12 = vector.load %arg7[%c0_10, %c0_11] : memref<56x256xf32, #tpu.memory_space<vmem>>, vector<56x256xf32>
      %c0_12 = arith.constant 0 : index
      %c0_13 = arith.constant 0 : index
      %13 = vector.load %arg5[%c0_12, %c0_13] : memref<1x256xf32, #tpu.memory_space<vmem>>, vector<1x256xf32>
      %14 = vector.broadcast %13 : vector<1x256xf32> to vector<56x256xf32>
      %15 = arith.addf %12, %14 : vector<56x256xf32>
      %cst_14 = arith.constant 0.000000e+00 : f32
      %16 = vector.broadcast %cst_14 : f32 to vector<56x256xf32>
      %17 = arith.maximumf %15, %16 : vector<56x256xf32>
      %c0_15 = arith.constant 0 : index
      %c0_16 = arith.constant 0 : index
      %18 = vector.load %arg6[%c0_15, %c0_16] : memref<56x256xf32, #tpu.memory_space<vmem>>, vector<56x256xf32>
      tpu.vector_store %arg6[%c0_15, %c0_16], %17 {strides = array<i32>} : memref<56x256xf32, #tpu.memory_space<vmem>>, vector<56x256xf32>,
    } else {
    }
    return
  }
  func.func @transform_0(%arg0: i32, %arg1: i32, %arg2: i32) -> (i32, i32) {
    %c0_i32 = arith.constant 0 : i32
    return %arg0, %arg2 : i32, i32
  }
  func.func @transform_1(%arg0: i32, %arg1: i32, %arg2: i32) -> (i32, i32) {
    %c0_i32 = arith.constant 0 : i32
    return %arg2, %arg1 : i32, i32
  }
  func.func @transform_2(%arg0: i32, %arg1: i32, %arg2: i32) -> (i32, i32) {
    %c0_i32 = arith.constant 0 : i32
    %c0_i32_0 = arith.constant 0 : i32
    return %c0_i32, %arg1 : i32, i32
  }
  func.func @transform_3(%arg0: i32, %arg1: i32, %arg2: i32) -> (i32, i32) {
    %c0_i32 = arith.constant 0 : i32
    return %arg0, %arg1 : i32, i32
  }
}

module attributes {stable_mosaic.version = 11 : i64} {
  func.func @_matmul_kernel(%arg0: i32, %arg1: i32, %arg2: i32, %arg3: memref<168x256xbf16, #tpu.memory_space<vmem>>, %arg4: memref<256x128xbf16, #tpu.memory_space<vmem>>, %arg5: memref<1x128xf32, #tpu.memory_space<vmem>>, %arg6: memref<168x128xf32, #tpu.memory_space<vmem>>, %arg7: memref<168x128xf32, #tpu.memory_space<vmem>>) attributes {dimension_semantics = [#tpu.dimension_semantics<parallel>, #tpu.dimension_semantics<parallel>, #tpu.dimension_semantics<arbitrary>], iteration_bounds = array<i64: 1, 1, 1>, scalar_prefetch = 0 : i64, scratch_operands = 1 : i64, tpu.core_type = #tpu.core_type<tc>, window_params = [{transform_indices = @transform_0, window_bounds = array<i64: 168, 256>}, {transform_indices = @transform_1, window_bounds = array<i64: 256, 128>}, {transform_indices = @transform_2, window_bounds = array<i64: 1, 128>}, {transform_indices = @transform_3, window_bounds = array<i64: 168, 128>}]} {
    %c0_i32 = arith.constant 0 : i32
    %0 = arith.cmpi eq, %arg2, %c0_i32 : i32
    %1 = arith.extui %0 : i1 to i32
    %c0_i32_0 = arith.constant 0 : i32
    %2 = arith.cmpi ne, %1, %c0_i32_0 : i32
    scf.if %2 {
      %cst_10 = arith.constant 0.000000e+00 : f32
      %12 = vector.broadcast %cst_10 : f32 to vector<168x128xf32>
      %c0_11 = arith.constant 0 : index
      %c0_12 = arith.constant 0 : index
      %13 = vector.load %arg7[%c0_11, %c0_12] : memref<168x128xf32, #tpu.memory_space<vmem>>, vector<168x128xf32>
      tpu.vector_store %arg7[%c0_11, %c0_12], %12 {strides = array<i32>} : memref<168x128xf32, #tpu.memory_space<vmem>>, vector<168x128xf32>,
    } else {
    }
    %c0 = arith.constant 0 : index
    %c0_1 = arith.constant 0 : index
    %3 = vector.load %arg7[%c0, %c0_1] : memref<168x128xf32, #tpu.memory_space<vmem>>, vector<168x128xf32>
    %c0_2 = arith.constant 0 : index
    %c0_3 = arith.constant 0 : index
    %4 = vector.load %arg3[%c0_2, %c0_3] : memref<168x256xbf16, #tpu.memory_space<vmem>>, vector<168x256xbf16>
    %c0_4 = arith.constant 0 : index
    %c0_5 = arith.constant 0 : index
    %5 = vector.load %arg4[%c0_4, %c0_5] : memref<256x128xbf16, #tpu.memory_space<vmem>>, vector<256x128xbf16>
    %cst = arith.constant dense<0.000000e+00> : vector<168x128xf32>
    %6 = tpu.matmul %4, %5, %cst {dimension_numbers = #tpu.dot_dimension_numbers<[1], [0], [0], [1], [0, 0, 1, 1], [], []>} : vector<168x256xbf16>, vector<256x128xbf16>, vector<168x128xf32> -> vector<168x128xf32>
    %7 = arith.addf %3, %6 : vector<168x128xf32>
    %c0_6 = arith.constant 0 : index
    %c0_7 = arith.constant 0 : index
    %8 = vector.load %arg7[%c0_6, %c0_7] : memref<168x128xf32, #tpu.memory_space<vmem>>, vector<168x128xf32>
    tpu.vector_store %arg7[%c0_6, %c0_7], %7 {strides = array<i32>} : memref<168x128xf32, #tpu.memory_space<vmem>>, vector<168x128xf32>,
    %c0_i32_8 = arith.constant 0 : i32
    %9 = arith.cmpi eq, %arg2, %c0_i32_8 : i32
    %10 = arith.extui %9 : i1 to i32
    %c0_i32_9 = arith.constant 0 : i32
    %11 = arith.cmpi ne, %10, %c0_i32_9 : i32
    scf.if %11 {
      %c0_10 = arith.constant 0 : index
      %c0_11 = arith.constant 0 : index
      %12 = vector.load %arg7[%c0_10, %c0_11] : memref<168x128xf32, #tpu.memory_space<vmem>>, vector<168x128xf32>
      %c0_12 = arith.constant 0 : index
      %c0_13 = arith.constant 0 : index
      %13 = vector.load %arg5[%c0_12, %c0_13] : memref<1x128xf32, #tpu.memory_space<vmem>>, vector<1x128xf32>
      %14 = vector.broadcast %13 : vector<1x128xf32> to vector<168x128xf32>
      %15 = arith.addf %12, %14 : vector<168x128xf32>
      %16 = arith.negf %15 : vector<168x128xf32>
      %17 = math.exp %16 : vector<168x128xf32>
      %cst_14 = arith.constant 1.000000e+00 : f32
      %18 = vector.broadcast %cst_14 : f32 to vector<168x128xf32>
      %19 = arith.addf %18, %17 : vector<168x128xf32>
      %20 = arith.divf %18, %19 : vector<168x128xf32>
      %c0_15 = arith.constant 0 : index
      %c0_16 = arith.constant 0 : index
      %21 = vector.load %arg6[%c0_15, %c0_16] : memref<168x128xf32, #tpu.memory_space<vmem>>, vector<168x128xf32>
      tpu.vector_store %arg6[%c0_15, %c0_16], %20 {strides = array<i32>} : memref<168x128xf32, #tpu.memory_space<vmem>>, vector<168x128xf32>,
    } else {
    }
    return
  }
  func.func @transform_0(%arg0: i32, %arg1: i32, %arg2: i32) -> (i32, i32) {
    %c0_i32 = arith.constant 0 : i32
    return %arg0, %arg2 : i32, i32
  }
  func.func @transform_1(%arg0: i32, %arg1: i32, %arg2: i32) -> (i32, i32) {
    %c0_i32 = arith.constant 0 : i32
    return %arg2, %arg1 : i32, i32
  }
  func.func @transform_2(%arg0: i32, %arg1: i32, %arg2: i32) -> (i32, i32) {
    %c0_i32 = arith.constant 0 : i32
    %c0_i32_0 = arith.constant 0 : i32
    return %c0_i32, %arg1 : i32, i32
  }
  func.func @transform_3(%arg0: i32, %arg1: i32, %arg2: i32) -> (i32, i32) {
    %c0_i32 = arith.constant 0 : i32
    return %arg0, %arg1 : i32, i32
  }
}

</mosaic_0001>

<bundles_post_ra>
// kernel: denoising_autoencoder.8
= control target key start
LH: loop header
LB: loop body
LE: loop exit
PB: predicated region body
PF: predicated region fallthrough
CT: control target
= control target key end

     0   :  { %s602_s1 = inlined_call_operand.vmem [shape: bf16[128,128], index: 1, kind: input, shape index: {}]   ;;  %s603_s0 = inlined_call_operand.vmem [shape: bf16[128,128], index: 0, kind: input, shape index: {}]   ;;  %s604_s2 = inlined_call_operand.vmem [shape: f32[1,128], index: 2, kind: input, shape index: {}]   ;;  %s605_s3 = inlined_call_operand.vmem [shape: f32[128,128], index: 3, kind: output, shape index: {}]  }
   0x1   :  { %v467_v0 = vld [vmem:[%s602_s1 + $0x38] sm:$0xff]   ;;  %v468_v1 = vld [vmem:[%s602_s1 + $0x30] sm:$0xff]   ;;  %v469_v2 = vld [vmem:[%s602_s1 + $0x28] sm:$0xff]  }
   0x2   :  { %419 = vmatprep.subr.bf16.mxu0 %v467_v0  ;;  %451 = vmatprep.subr.bf16.mxu1 %v467_v0  ;;  %v470_v3 = vld [vmem:[%s602_s1 + $0x20] sm:$0xff]   ;;  %v471_v6 = vld [vmem:[%s602_s1 + $0x18] sm:$0xff]   ;;  %v472_v7 = vld [vmem:[%s602_s1 + $0x10] sm:$0xff]  }
   0x3   :  { %420 = vmatpush3.bf16.msra.mxu0 %v467_v0  ;;  %459 = vmatpush3.bf16.msra.mxu1 %v467_v0  ;;  %v475_v4 = vld [vmem:[%s603_s0] sm:$0xff]   ;;  %v473_v8 = vld [vmem:[%s602_s1 + $0x8] sm:$0xff]   ;;  %v479_v12 = vld [vmem:[%s603_s0 + $0x10] sm:$0xff]  }
   0x4   :  { %421 = vmatprep.subr.bf16.mxu0 %v468_v1  ;;  %452 = vmatprep.subr.bf16.mxu1 %v468_v1  ;;  %v476_v5 = vld [vmem:[%s603_s0 + $0x20] sm:$0xff]   ;;  %v477_v10 = vld [vmem:[%s603_s0 + $0x8] sm:$0xff]   ;;  %v480_v13 = vld [vmem:[%s603_s0 + $0x30] sm:$0xff]  }
   0x5   :  { %435 = vmatprep.mubr.bf16.mxu0 %v475_v4  ;;  %443 = vmatprep.mubr.bf16.mxu1 %v476_v5  ;;  %v474_v9 = vld [vmem:[%s602_s1] sm:$0xff]   ;;  %v478_v11 = vld [vmem:[%s603_s0 + $0x28] sm:$0xff]   ;;  %v481_v14 = vld [vmem:[%s603_s0 + $0x18] sm:$0xff]  }
   0x6   :  { %v482_v15 = vld [vmem:[%s603_s0 + $0x38] sm:$0xff]   ;;  %v402_v16 = vld [vmem:[%s604_s2] ss:$0 sm:$0xff] }
   0x7   :  { %422 = vmatpush3.bf16.msra.mxu0 %v468_v1  ;;  %460 = vmatpush3.bf16.msra.mxu1 %v468_v1 }
   0x8   :  { %423 = vmatprep.subr.bf16.mxu0 %v469_v2  ;;  %453 = vmatprep.subr.bf16.mxu1 %v469_v2 }
   0xb   :  { %424 = vmatpush3.bf16.msra.mxu0 %v469_v2  ;;  %461 = vmatpush3.bf16.msra.mxu1 %v469_v2 }
   0xc   :  { %425 = vmatprep.subr.bf16.mxu0 %v470_v3  ;;  %454 = vmatprep.subr.bf16.mxu1 %v470_v3 }
   0xf   :  { %426 = vmatpush3.bf16.msra.mxu0 %v470_v3  ;;  %462 = vmatpush3.bf16.msra.mxu1 %v470_v3 }
  0x10   :  { %427 = vmatprep.subr.bf16.mxu0 %v471_v6  ;;  %455 = vmatprep.subr.bf16.mxu1 %v471_v6 }
  0x13   :  { %428 = vmatpush3.bf16.msra.mxu0 %v471_v6  ;;  %463 = vmatpush3.bf16.msra.mxu1 %v471_v6 }
  0x14   :  { %429 = vmatprep.subr.bf16.mxu0 %v472_v7  ;;  %456 = vmatprep.subr.bf16.mxu1 %v472_v7 }
  0x17   :  { %430 = vmatpush3.bf16.msra.mxu0 %v472_v7  ;;  %464 = vmatpush3.bf16.msra.mxu1 %v472_v7 }
  0x18   :  { %431 = vmatprep.subr.bf16.mxu0 %v473_v8  ;;  %457 = vmatprep.subr.bf16.mxu1 %v473_v8 }
  0x1b   :  { %432 = vmatpush3.bf16.msra.mxu0 %v473_v8  ;;  %465 = vmatpush3.bf16.msra.mxu1 %v473_v8 }
  0x1c   :  { %433 = vmatprep.subr.bf16.mxu0 %v474_v9  ;;  %458 = vmatprep.subr.bf16.mxu1 %v474_v9 }
  0x1f   :  { %434 = vmatpush3.bf16.msra.mxu0 %v474_v9  ;;  %466 = vmatpush3.bf16.msra.mxu1 %v474_v9 }
  0x22   :  { %436 = vmatmul.mubr.bf16.vlgmr.msra.gmra.mxu0 %v477_v10  ;;  %444 = vmatmul.mubr.bf16.vlgmr.msra.gmra.mxu1 %v478_v11 }
  0x23   :  { %439 = vmatprep.mubr.bf16.mxu0 %v479_v12  ;;  %447 = vmatprep.mubr.bf16.mxu1 %v480_v13 }
  0x2a   :  { %440 = vmatmul.mubr.bf16.gmra.mxu0 %v481_v14  ;;  %448 = vmatmul.mubr.bf16.gmra.mxu1 %v482_v15 }
  0xe2   :  { %v437_v17 = vpop.f32.mrf.mxu0  ;;  %v445_v18 = vpop.f32.mrf.mxu1 }
  0xe3   :  { %v336_v19 = vadd.f32 %v437_v17, %v402_v16  ;;  %v344_v20 = vadd.f32 %v445_v18, %v402_v16 }
  0xe4   :  { %v213_v21 = vpop.f32.mrf.mxu0  ;;  %v245_v22 = vpop.f32.mrf.mxu1 }
  0xe5   :  { %v352_v23 = vmax.f32 %v336_v19, 0.0  ;;  %v360_v24 = vmax.f32 %v344_v20, 0.0  ;;  %v334_v25 = vadd.f32 %v402_v16, %v213_v21  ;;  %v342_v26 = vadd.f32 %v402_v16, %v245_v22 }
  0xe6   :  { %v438_v27 = vpop.f32.mrf.mxu0  ;;  %v446_v28 = vpop.f32.mrf.mxu1 }
  0xe7   :  { %368 = vst [vmem:[%s605_s3 + $0x10] sm:$0xff] %v352_v23  ;;  %376 = vst [vmem:[%s605_s3 + $0x50] sm:$0xff] %v360_v24  ;;  %v350_v29 = vmax.f32 %v334_v25, 0.0  ;;  %v358_v30 = vmax.f32 %v342_v26, 0.0  ;;  %v337_v31 = vadd.f32 %v438_v27, %v402_v16  ;;  %v345_v32 = vadd.f32 %v446_v28, %v402_v16 }
  0xe8   :  { %v216_v33 = vpop.f32.mrf.mxu0  ;;  %v248_v34 = vpop.f32.mrf.mxu1 }
  0xe9   :  { %366 = vst [vmem:[%s605_s3] sm:$0xff] %v350_v29  ;;  %374 = vst [vmem:[%s605_s3 + $0x40] sm:$0xff] %v358_v30  ;;  %v353_v35 = vmax.f32 %v337_v31, 0.0  ;;  %v361_v36 = vmax.f32 %v345_v32, 0.0  ;;  %v335_v37 = vadd.f32 %v402_v16, %v216_v33  ;;  %v343_v38 = vadd.f32 %v402_v16, %v248_v34 }
  0xea   :  { %v441_v39 = vpop.f32.mrf.mxu0  ;;  %v449_v40 = vpop.f32.mrf.mxu1 }
  0xeb   :  { %369 = vst [vmem:[%s605_s3 + $0x18] sm:$0xff] %v353_v35  ;;  %377 = vst [vmem:[%s605_s3 + $0x58] sm:$0xff] %v361_v36  ;;  %v351_v41 = vmax.f32 %v335_v37, 0.0  ;;  %v359_v42 = vmax.f32 %v343_v38, 0.0  ;;  %v340_v43 = vadd.f32 %v441_v39, %v402_v16  ;;  %v348_v44 = vadd.f32 %v449_v40, %v402_v16 }
  0xec   :  { %v229_v45 = vpop.f32.mrf.mxu0  ;;  %v261_v46 = vpop.f32.mrf.mxu1 }
  0xed   :  { %367 = vst [vmem:[%s605_s3 + $0x8] sm:$0xff] %v351_v41  ;;  %375 = vst [vmem:[%s605_s3 + $0x48] sm:$0xff] %v359_v42  ;;  %v356_v47 = vmax.f32 %v340_v43, 0.0  ;;  %v364_v48 = vmax.f32 %v348_v44, 0.0  ;;  %v338_v49 = vadd.f32 %v402_v16, %v229_v45  ;;  %v346_v50 = vadd.f32 %v402_v16, %v261_v46 }
  0xee   :  { %v442_v51 = vpop.f32.mrf.mxu0  ;;  %v450_v52 = vpop.f32.mrf.mxu1 }
  0xef   :  { %372 = vst [vmem:[%s605_s3 + $0x30] sm:$0xff] %v356_v47  ;;  %380 = vst [vmem:[%s605_s3 + $0x70] sm:$0xff] %v364_v48  ;;  %v354_v53 = vmax.f32 %v338_v49, 0.0  ;;  %v362_v54 = vmax.f32 %v346_v50, 0.0  ;;  %v341_v55 = vadd.f32 %v442_v51, %v402_v16  ;;  %v349_v56 = vadd.f32 %v450_v52, %v402_v16 }
  0xf0   :  { %v232_v57 = vpop.f32.mrf.mxu0  ;;  %v264_v58 = vpop.f32.mrf.mxu1 }
  0xf1   :  { %370 = vst [vmem:[%s605_s3 + $0x20] sm:$0xff] %v354_v53  ;;  %378 = vst [vmem:[%s605_s3 + $0x60] sm:$0xff] %v362_v54  ;;  %v357_v59 = vmax.f32 %v341_v55, 0.0  ;;  %v365_v60 = vmax.f32 %v349_v56, 0.0  ;;  %v339_v61 = vadd.f32 %v402_v16, %v232_v57  ;;  %v347_v62 = vadd.f32 %v402_v16, %v264_v58 }
  0xf3   :  { %373 = vst [vmem:[%s605_s3 + $0x38] sm:$0xff] %v357_v59  ;;  %381 = vst [vmem:[%s605_s3 + $0x78] sm:$0xff] %v365_v60  ;;  %v355_v63 = vmax.f32 %v339_v61, 0.0  ;;  %v363_v0 = vmax.f32 %v347_v62, 0.0 }
  0xf5   :  { %371 = vst [vmem:[%s605_s3 + $0x28] sm:$0xff] %v355_v63  ;;  %379 = vst [vmem:[%s605_s3 + $0x68] sm:$0xff] %v363_v0 }

// kernel: denoising_autoencoder.9
= control target key start
LH: loop header
LB: loop body
LE: loop exit
PB: predicated region body
PF: predicated region fallthrough
CT: control target
= control target key end

     0   :  { %8 = vsyncpa [#allocation5], 0  ;;  %s1160_s12 = smov 0   ;;  %s1162_s13 = smov 0   ;;  %s1311_s0 = inlined_call_operand.vmem [shape: bf16[32,1024], index: 0, kind: input, shape index: {}]   ;;  %s1312_s1 = inlined_call_operand.vmem [shape: bf16[1024,128], index: 1, kind: input, shape index: {}]   ;;  %s1313_s2 = inlined_call_operand.hbm [shape: f32[1,128], index: 2, kind: input, shape index: {}]   ;;  %s1314_s3 = inlined_call_operand.vmem [shape: f32[32,128], index: 3, kind: output, shape index: {}]  }
   0x1   :  { %s1164_s14 = smov 0   ;;  %s1166_s15 = smov 0  }
   0x2   :  { %s1168_s16 = smov 0  }
   0x3 LB: > { %s856_s17 = sadd.s32 4294967295, %s1136_s16   ;;  %s26_s18 = sadd.s32 1, %s1132_s15  ;;  %s1136_s16 = sphi %s1168_s16, %s14_s16   ;;  %s1132_s15 = sphi %s1166_s15, %s1321_s15   ;;  %s1128_s14 = sphi %s1164_s14, %s1320_s14   ;;  %s1124_s13 = sphi %s1162_s13, %s1319_s13   ;;  %s1120_s12 = sphi %s1160_s12, %s1318_s12  }
   0x4   : > { %p27_p0 = scmp.ge.s32.totalorder %s26_s18, 2  ;;  %s42_s19 = sadd.s32 1, %s1124_s13 }
   0x5   : > { %p49_p1 = scmp.ne.s32.totalorder %s1124_s13, %s1120_s12  ;;  %p50_p2 = scmp.eq.s32.totalorder %s1136_s16, 0 }
   0x6   : > { %s1323_s18 = smov (%p27_p0, %s26_s18), 0  ;;  %p857_p4 = scmp.ge.s32.totalorder %s1136_s16, 1 }
   0x7   : > { %p1193_p3 = por %p50_p2, %p49_p1  ;;  %s38_s21 = ssub.s32 %s1132_s15, %s1323_s18 }
   0x8   : > { %p148_p5 = scmp.lt.s32.totalorder %s1136_s16, 3  ;;  %p40_p6 = scmp.eq.s32.totalorder %s38_s21, 0 }
   0x9   : > { %p1205_p8 = scmp.eq.s32.totalorder %s856_s17, 0  ;;  %s1138_s25 = smov [#allocation4]  }
   0xa   : > { %p1201_p7 = pnand %p857_p4, %p148_p5  ;;  %s163_s26 = sshll.u32 %s1138_s25, 4  ;;  %s164_s26 = int_to_ptr.vmem [resolvable:$true] %s163_s26 }
   0xb   : > { %s1210_s24 = scalar_select %p40_p6, %s1124_s13, %s42_s19  }
   0xc   : > { %p976_p9 = pneg %p1201_p7  ;;  %s1079_s27 = scalar_lea.vmem %s164_s26, 16 }
   0xd   : > { %p1080_p12 = scmp.ne.s32.totalorder %s164_s26, %s1079_s27  ;;  %s1086_s28 = scalar_lea.vmem %s164_s26, 32 }
   0xe   : > { %p977_p10 = pnand %p1205_p8, %p976_p9  ;;  %p1087_p1 = scmp.lt.s32.totalorder %s164_s26, %s164_s26 }
   0xf   : > { %p1088_p2 = scmp.lt.s32.totalorder %s1086_s28, %s1079_s27 }
  0x10   : > { %p1070_p11 = pneg %p977_p10 }
  0x11   : > { %p1089_p4 = por %p1088_p2, %p1087_p1 }
  0x12   : > { %p1082_p13 = pnand %p1080_p12, %p1070_p11 }
  0x14   : > { %p1083_p0 = pneg %p1082_p13 }
  0x16   : > { %p1090_p5 = pnand %p1089_p4, %p1083_p0 }
  0x18   : > { %1093 = shalt.err (!%p1090_p5)
}
  0x19   : > { %979 = dma.hbm_to_vmem [thread:$0]  (!%p977_p10), %s1313_s2, 16, %s164_s26, [#allocation5]  }
  0x1a   : > { %p859_p6 = scmp.ge.s32.totalorder %s1136_s16, 2 }
  0x1c   : > { %170 = sbr.rel (%p859_p6) target bundleno = 41 (0x29), region = 20 }
  0x21   : > { %173 = sbr.rel (!%p1193_p3) target bundleno = 41 (0x29), region = 24  ;;  %s175_s4 = sand.u32 (%p1193_p3), 1, %s1124_s13  }
  0x22   : > { %s915_s5 = sshll.u32 (%p1193_p3), %s1132_s15, 4  ;;  %s860_s6 = sshll.u32 (%p1193_p3), %s175_s4, 6 }
  0x23   : > { %s183_s9 = scalar_lea.vmem (%p1193_p3), %s1311_s0, %s915_s5  ;;  %s177_s10 = scalar_lea.vmem (%p1193_p3), [#allocation3], %s860_s6 }
  0x24   : > { %v196_v0 = vld [vmem:[%s183_s9] sm:$0xff] (%p1193_p3)  ;;  %v198_v1 = vld [vmem:[%s183_s9 + $0x8] sm:$0xff] (%p1193_p3) }
  0x25   : > { %v200_v2 = vld [vmem:[%s183_s9 + $0x20] sm:$0xff] (%p1193_p3)  ;;  %197 = vst [vmem:[%s177_s10] sm:$0xff] (%p1193_p3), %v196_v0  ;;  %199 = vst [vmem:[%s177_s10 + $0x8] sm:$0xff] (%p1193_p3), %v198_v1  ;;  %v202_v3 = vld [vmem:[%s183_s9 + $0x28] sm:$0xff] (%p1193_p3) }
  0x26   : > { %201 = vst [vmem:[%s177_s10 + $0x10] sm:$0xff] %v200_v2  ;;  %v204_v4 = vld [vmem:[%s183_s9 + $0x40] sm:$0xff]  ;;  %v206_v5 = vld [vmem:[%s183_s9 + $0x48] sm:$0xff]  ;;  %203 = vst [vmem:[%s177_s10 + $0x18] sm:$0xff] %v202_v3 }
  0x27   : > { %205 = vst [vmem:[%s177_s10 + $0x20] sm:$0xff] %v204_v4  ;;  %207 = vst [vmem:[%s177_s10 + $0x28] sm:$0xff] %v206_v5  ;;  %v208_v6 = vld [vmem:[%s183_s9 + $0x60] sm:$0xff]  ;;  %v210_v7 = vld [vmem:[%s183_s9 + $0x68] sm:$0xff] }
  0x28   : > { %209 = vst [vmem:[%s177_s10 + $0x30] sm:$0xff] %v208_v6  ;;  %211 = vst [vmem:[%s177_s10 + $0x38] sm:$0xff] %v210_v7 }
  0x29 PF: > { %232 = sbr.rel (%p1201_p7) target bundleno = 318 (0x13e), region = 51  ;;  %s235_s11 = sand.u32 (!%p1201_p7), 1, %s1120_s12  }
  0x2a   : > { %s864_s17 = sshll.u32 (!%p1201_p7), %s235_s11, 6 }
  0x2b   : > { %s1230_s19 = scalar_lea.vmem (!%p1201_p7), [#allocation3], %s864_s17 }
  0x2e   : > { %1115 = dma.done.wait (%p1205_p8), [#allocation5], 16  }
  0x2f   : > { %1117 = vsyncadd (%p1205_p8), [#allocation5], 4294967280  ;;  %s866_s20 = sshll.u32 %s1128_s14, 6  ;;  %p868_p7 = scmp.ne.s32.totalorder %s1128_s14, 0 }
  0x30   : > { %p276_p3 = scmp.lt.s32.totalorder %s866_s20, 127 }
  0x31   : > { %297 = sbr.rel (%p868_p7) target bundleno = 57 (0x39), region = 63 }
  0x32   : > { %s1325_s20 = smov (!%p276_p3, %s866_s20), 127 }
  0x33   : > { %s867_s21 = sshll.u32 %s1325_s20, 2 }
  0x34   : > { %s1240_s22 = scalar_lea.vmem %s1312_s1, %s867_s21 }
  0x36   : > { %v1139_v8 = vmov 0.0  }
  0x37   : > { %298 = vst [vmem:[#allocation2 + $0x10] sm:$0xff] %v1139_v8  ;;  %299 = vst [vmem:[#allocation2] sm:$0xff] %v1139_v8 }
  0x38   : > { %300 = vst [vmem:[#allocation2 + $0x18] sm:$0xff] %v1139_v8  ;;  %301 = vst [vmem:[#allocation2 + $0x8] sm:$0xff] %v1139_v8 }
  0x39 PF: > { %v1024_v9 = vld [vmem:[%s1240_s22 + $0x78] sm:$0xff]   ;;  %v1028_v13 = vld [vmem:[%s1240_s22 + $0x70] sm:$0xff]   ;;  %v1032_v17 = vld [vmem:[%s1240_s22 + $0x68] sm:$0xff]   ;;  %p909_p8 = scmp.ne.s32.totalorder %s1128_s14, 1 }
  0x3a   : > { %v1025_v10 = vld [vmem:[%s1240_s22 + $0xf8] sm:$0xff]   ;;  %916 = vmatprep.subr.bf16.mxu0 %v1024_v9  ;;  %v1029_v14 = vld [vmem:[%s1240_s22 + $0xf0] sm:$0xff]   ;;  %v1033_v18 = vld [vmem:[%s1240_s22 + $0xe8] sm:$0xff]  }
  0x3b   : > { %v1026_v11 = vld [vmem:[%s1240_s22 + $0x38] sm:$0xff]   ;;  %944 = vmatprep.subr.bf16.mxu1 %v1025_v10  ;;  %v1030_v15 = vld [vmem:[%s1240_s22 + $0x30] sm:$0xff]   ;;  %v1034_v19 = vld [vmem:[%s1240_s22 + $0x28] sm:$0xff]  }
  0x3c   : > { %v1027_v12 = vld [vmem:[%s1240_s22 + $0xb8] sm:$0xff]   ;;  %917 = vmatpush3.bf16.msra.mxu0 %v1026_v11  ;;  %v1031_v16 = vld [vmem:[%s1240_s22 + $0xb0] sm:$0xff]   ;;  %v1035_v20 = vld [vmem:[%s1240_s22 + $0xa8] sm:$0xff]  }
  0x3d   : > { %945 = vmatpush3.bf16.msra.mxu1 %v1027_v12  ;;  %918 = vmatprep.subr.bf16.mxu0 %v1028_v13  ;;  %v1036_v21 = vld [vmem:[%s1240_s22 + $0x60] sm:$0xff]   ;;  %v1040_v25 = vld [vmem:[%s1240_s22 + $0x58] sm:$0xff]   ;;  %v1044_v29 = vld [vmem:[%s1240_s22 + $0x50] sm:$0xff]  }
  0x3e   : > { %946 = vmatprep.subr.bf16.mxu1 %v1029_v14  ;;  %v1037_v22 = vld [vmem:[%s1240_s22 + $0xe0] sm:$0xff]   ;;  %v1041_v26 = vld [vmem:[%s1240_s22 + $0xd8] sm:$0xff]   ;;  %v1045_v30 = vld [vmem:[%s1240_s22 + $0xd0] sm:$0xff]  }
  0x3f   : > { %v1038_v23 = vld [vmem:[%s1240_s22 + $0x20] sm:$0xff]   ;;  %v1042_v27 = vld [vmem:[%s1240_s22 + $0x18] sm:$0xff]   ;;  %v1046_v31 = vld [vmem:[%s1240_s22 + $0x10] sm:$0xff]  }
  0x40   : > { %919 = vmatpush3.bf16.msra.mxu0 %v1030_v15  ;;  %v1039_v24 = vld [vmem:[%s1240_s22 + $0xa0] sm:$0xff]   ;;  %v1043_v28 = vld [vmem:[%s1240_s22 + $0x98] sm:$0xff]   ;;  %v1047_v32 = vld [vmem:[%s1240_s22 + $0x90] sm:$0xff]  }
  0x41   : > { %947 = vmatpush3.bf16.msra.mxu1 %v1031_v16  ;;  %920 = vmatprep.subr.bf16.mxu0 %v1032_v17  ;;  %v1048_v33 = vld [vmem:[%s1240_s22 + $0x48] sm:$0xff]   ;;  %v1052_v37 = vld [vmem:[%s1240_s22 + $0x40] sm:$0xff]   ;;  %v302_v56 = vld [vmem:[#allocation2 + $0x10] sm:$0xff] }
  0x42   : > { %948 = vmatprep.subr.bf16.mxu1 %v1033_v18  ;;  %v1049_v34 = vld [vmem:[%s1240_s22 + $0xc8] sm:$0xff]   ;;  %v1053_v38 = vld [vmem:[%s1240_s22 + $0xc0] sm:$0xff]   ;;  %v304_v10 = vld [vmem:[#allocation2 + $0x18] sm:$0xff] }
  0x43   : > { %v1050_v35 = vld [vmem:[%s1240_s22 + $0x8] sm:$0xff]   ;;  %v1054_v39 = vld [vmem:[%s1240_s22] sm:$0xff]  }
  0x44   : > { %921 = vmatpush3.bf16.msra.mxu0 %v1034_v19  ;;  %v1051_v36 = vld [vmem:[%s1240_s22 + $0x88] sm:$0xff]   ;;  %v1055_v40 = vld [vmem:[%s1240_s22 + $0x80] sm:$0xff]  }
  0x45   : > { %949 = vmatpush3.bf16.msra.mxu1 %v1035_v20  ;;  %922 = vmatprep.subr.bf16.mxu0 %v1036_v21  ;;  %v1056_v41 = vld [vmem:[%s1230_s19] ss:$16 sps:$4 sm:$0xff]   ;;  %v1058_v42 = vld [vmem:[%s1230_s19 + $0x4] ss:$16 sps:$4 sm:$0xff]   ;;  %v1059_v43 = vld [vmem:[%s1230_s19 + $0x8] ss:$16 sps:$4 sm:$0xff]  }
  0x46   : > { %950 = vmatprep.subr.bf16.mxu1 %v1037_v22  ;;  %v1061_v44 = vld [vmem:[%s1230_s19 + $0xc] ss:$16 sps:$4 sm:$0xff]   ;;  %642 = vmatprep.mubr.bf16.mxu0 %v1058_v42  ;;  %v1062_v45 = vld [vmem:[%s1230_s19 + $0x24] ss:$16 sps:$4 sm:$0xff]   ;;  %v1066_v47 = vld [vmem:[%s1230_s19 + $0x20] ss:$16 sps:$4 sm:$0xff]  }
  0x47   : > { %691 = vmatprep.mubr.bf16.mxu1 %v1061_v44  ;;  %v1064_v46 = vld [vmem:[%s1230_s19 + $0x2c] ss:$16 sps:$4 sm:$0xff]   ;;  %v1067_v48 = vld [vmem:[%s1230_s19 + $0x28] ss:$16 sps:$4 sm:$0xff]   ;;  %v303_v1 = vld [vmem:[#allocation2] sm:$0xff] }
  0x48   : > { %923 = vmatpush3.bf16.msra.mxu0 %v1038_v23  ;;  %v305_v18 = vld [vmem:[#allocation2 + $0x8] sm:$0xff] }
  0x49   : > { %951 = vmatpush3.bf16.msra.mxu1 %v1039_v24  ;;  %924 = vmatprep.subr.bf16.mxu0 %v1040_v25 }
  0x4a   : > { %952 = vmatprep.subr.bf16.mxu1 %v1041_v26 }
  0x4c   : > { %925 = vmatpush3.bf16.msra.mxu0 %v1042_v27 }
  0x4d   : > { %953 = vmatpush3.bf16.msra.mxu1 %v1043_v28  ;;  %926 = vmatprep.subr.bf16.mxu0 %v1044_v29 }
  0x4e   : > { %954 = vmatprep.subr.bf16.mxu1 %v1045_v30 }
  0x50   : > { %927 = vmatpush3.bf16.msra.mxu0 %v1046_v31 }
  0x51   : > { %955 = vmatpush3.bf16.msra.mxu1 %v1047_v32  ;;  %928 = vmatprep.subr.bf16.mxu0 %v1048_v33 }
  0x52   : > { %956 = vmatprep.subr.bf16.mxu1 %v1049_v34 }
  0x54   : > { %929 = vmatpush3.bf16.msra.mxu0 %v1050_v35 }
  0x55   : > { %957 = vmatpush3.bf16.msra.mxu1 %v1051_v36  ;;  %930 = vmatprep.subr.bf16.mxu0 %v1052_v37 }
  0x56   : > { %958 = vmatprep.subr.bf16.mxu1 %v1053_v38 }
  0x58   : > { %931 = vmatpush3.bf16.msra.mxu0 %v1054_v39 }
  0x59   : > { %959 = vmatpush3.bf16.msra.mxu1 %v1055_v40 }
  0x5b   : > { %643 = vmatmul.mubr.bf16.vlgmr.msra.gmra.mxu0 %v1056_v41 }
  0x5c   : > { %692 = vmatmul.mubr.bf16.vlgmr.msra.gmra.mxu1 %v1059_v43  ;;  %650 = vmatprep.mubr.bf16.mxu0 %v1062_v45 }
  0x5d   : > { %699 = vmatprep.mubr.bf16.mxu1 %v1064_v46 }
  0x63   : > { %651 = vmatmul.mubr.bf16.gmra.mxu0 %v1066_v47 }
  0x64   : > { %700 = vmatmul.mubr.bf16.gmra.mxu1 %v1067_v48 }
 0x11b   : > { %v932_v49 = vpop.f32.mrf.mxu0 }
 0x11c   : > { %v960_v50 = vpop.f32.mrf.mxu1 }
 0x11d   : > { %v933_v51 = vpop.f32.mrf.mxu0 }
 0x11e   : > { %v934_v52 = vadd.f32 %v933_v51, %v932_v49  ;;  %v961_v53 = vpop.f32.mrf.mxu1 }
 0x11f   : > { %v962_v54 = vadd.f32 %v961_v53, %v960_v50  ;;  %v935_v55 = vpop.f32.mrf.mxu0 }
 0x120   : > { %v963_v57 = vpop.f32.mrf.mxu1 }
 0x121   : > { %v694_v58 = vadd.f32 %v962_v54, %v934_v52  ;;  %v936_v59 = vpop.f32.mrf.mxu0 }
 0x122   : > { %v937_v60 = vadd.f32 %v936_v59, %v935_v55  ;;  %v964_v61 = vpop.f32.mrf.mxu1 }
 0x123   : > { %v708_v62 = vadd.f32 %v694_v58, %v302_v56  ;;  %v965_v63 = vadd.f32 %v964_v61, %v963_v57  ;;  %v938_v0 = vpop.f32.mrf.mxu0 }
 0x124   : > { %v966_v2 = vpop.f32.mrf.mxu1 }
 0x125   : > { %712 = vst [vmem:[#allocation2 + $0x10] sm:$0xff] %v708_v62  ;;  %v697_v3 = vadd.f32 %v965_v63, %v937_v60  ;;  %v939_v4 = vpop.f32.mrf.mxu0 }
 0x126   : > { %v940_v5 = vadd.f32 %v939_v4, %v938_v0  ;;  %v967_v6 = vpop.f32.mrf.mxu1 }
 0x127   : > { %v709_v7 = vadd.f32 %v697_v3, %v303_v1  ;;  %v968_v8 = vadd.f32 %v967_v6, %v966_v2  ;;  %v941_v9 = vpop.f32.mrf.mxu0 }
 0x128   : > { %v969_v11 = vpop.f32.mrf.mxu1 }
 0x129   : > { %713 = vst [vmem:[#allocation2] sm:$0xff] %v709_v7  ;;  %v702_v12 = vadd.f32 %v968_v8, %v940_v5  ;;  %v942_v13 = vpop.f32.mrf.mxu0 }
 0x12a   : > { %v943_v14 = vadd.f32 %v942_v13, %v941_v9  ;;  %v970_v15 = vpop.f32.mrf.mxu1 }
 0x12b   : > { %v710_v16 = vadd.f32 %v702_v12, %v304_v10  ;;  %v971_v17 = vadd.f32 %v970_v15, %v969_v11 }
 0x12d   : > { %714 = vst [vmem:[#allocation2 + $0x18] sm:$0xff] %v710_v16  ;;  %v705_v19 = vadd.f32 %v971_v17, %v943_v14  ;;  %719 = sbr.rel (%p909_p8) target bundleno = 318 (0x13e), region = 67 }
 0x12f   : > { %v711_v20 = vadd.f32 %v705_v19, %v305_v18 }
 0x131   : > { %715 = vst [vmem:[#allocation2 + $0x8] sm:$0xff] %v711_v20 }
 0x132   : > { %v720_v21 = vld [vmem:[#allocation2 + $0x10] sm:$0xff]  ;;  %v910_v22 = vld [vmem:[#allocation4] ss:$0 sm:$0xff] }
 0x133   : > { %v721_v23 = vld [vmem:[#allocation2] sm:$0xff]  ;;  %v731_v24 = vadd.f32 %v910_v22, %v720_v21 }
 0x134   : > { %v732_v25 = vadd.f32 %v910_v22, %v721_v23  ;;  %v722_v26 = vld [vmem:[#allocation2 + $0x18] sm:$0xff] }
 0x135   : > { %v733_v28 = vadd.f32 %v910_v22, %v722_v26  ;;  %v735_v30 = vmax.f32 %v731_v24, 0.0 }
 0x136   : > { %v736_v31 = vmax.f32 %v732_v25, 0.0 }
 0x137   : > { %v737_v32 = vmax.f32 %v733_v28, 0.0  ;;  %739 = vst [vmem:[%s1314_s3] sm:$0xff] %v735_v30 }
 0x138   : > { %v723_v27 = vld [vmem:[#allocation2 + $0x8] sm:$0xff]  ;;  %740 = vst [vmem:[%s1314_s3 + $0x8] sm:$0xff] %v736_v31 }
 0x139   : > { %v734_v29 = vadd.f32 %v910_v22, %v723_v27  ;;  %741 = vst [vmem:[%s1314_s3 + $0x10] sm:$0xff] %v737_v32 }
 0x13b   : > { %v738_v33 = vmax.f32 %v734_v29, 0.0 }
 0x13d   : > { %742 = vst [vmem:[%s1314_s3 + $0x18] sm:$0xff] %v738_v33 }
 0x13e PF: > { %s14_s16 = sadd.s32 1, %s1136_s16   ;;  %s1318_s12 = smov %s1124_s13 }
 0x13f   : > { %p11_p9 = scmp.ge.s32.totalorder %s14_s16, 4   ;;  %s1319_s13 = smov %s1210_s24 }
 0x140   : > { %s1320_s14 = smov %s1132_s15  ;;  %s1321_s15 = smov %s1323_s18 }
 0x141   :  { %13 = sbr.rel (!%p11_p9) target bundleno = 3 (0x3), region = 107 }
 0x146   :  { %771 = vsyncpa [#allocation5], 1 }
 0x147   :  { %773 = vsyncpa [#allocation5 + $0x1], 1 }

// kernel: denoising_autoencoder.10
= control target key start
LH: loop header
LB: loop body
LE: loop exit
PB: predicated region body
PF: predicated region fallthrough
CT: control target
= control target key end

     0   :  { %s1167_s12 = smov 0   ;;  %s1169_s13 = smov 0   ;;  %s1285_s0 = inlined_call_operand.vmem [shape: bf16[8,2048], index: 0, kind: input, shape index: {}]   ;;  %s1286_s1 = inlined_call_operand.vmem [shape: bf16[2048,256], index: 1, kind: input, shape index: {}]   ;;  %s1287_s2 = inlined_call_operand.vmem [shape: f32[1,256], index: 2, kind: input, shape index: {}]   ;;  %s1288_s3 = inlined_call_operand.vmem [shape: f32[8,256], index: 3, kind: output, shape index: {}]  }
   0x1   :  { %s1171_s14 = smov 0  }
   0x2 LB: > { %s25_s15 = sadd.s32 1, %s1140_s13  ;;  %p916_p0 = scmp.ge.s32.totalorder %s1144_s14, 1  ;;  %s1144_s14 = sphi %s1171_s14, %s13_s14   ;;  %s1140_s13 = sphi %s1169_s13, %s1290_s13   ;;  %s1136_s12 = sphi %s1167_s12, %s1289_s12  }
   0x3   : > { %p26_p1 = scmp.ge.s32.totalorder %s25_s15, 4  ;;  %p194_p2 = scmp.lt.s32.totalorder %s1144_s14, 5 }
   0x5   : > { %s1292_s15 = smov (%p26_p1, %s25_s15), 0  ;;  %p195_p3 = pnand %p916_p0, %p194_p2 }
   0x6   : > { %s917_s16 = sshll.u32 (!%p195_p3), %s1136_s12, 2  ;;  %s919_s17 = sshll.u32 (!%p195_p3), %s1136_s12, 6 }
   0x7   : > { %198 = sbr.rel (%p195_p3) target bundleno = 301 (0x12d), region = 32  ;;  %p243_p4 = scmp.lt.s32.totalorder (!%p195_p3), %s917_s16, 15 }
   0x8   : > { %p252_p5 = scmp.lt.s32.totalorder (!%p195_p3), %s919_s17, 255  ;;  %p922_p6 = scmp.ne.s32.totalorder (!%p195_p3), %s1136_s12, 0 }
   0xc   : > { %s1294_s16 = smov (!%p243_p4, %s917_s16), 15  ;;  %s1296_s17 = smov (!%p252_p5, %s919_s17), 255 }
   0xd   : > { %s918_s18 = sshll.u32 %s1294_s16, 2  ;;  %s996_s22 = sshll.u32 %s1296_s17, 3 }
   0xe   : > { %s1192_s21 = scalar_lea.vmem %s1285_s0, %s918_s18  ;;  %s1197_s25 = scalar_lea.vmem %s1286_s1, %s996_s22 }
   0xf   : > { %280 = sbr.rel (%p922_p6) target bundleno = 22 (0x16), region = 36 }
  0x14   : > { %v1146_v0 = vmov 0.0  }
  0x15   : > { %281 = vst [vmem:[#allocation2] sm:$0xff] %v1146_v0  ;;  %282 = vst [vmem:[#allocation2 + $0x8] sm:$0xff] %v1146_v0 }
  0x16 PF: > { %v1022_v1 = vld [vmem:[%s1197_s25 + $0x74] ss:$8 sps:$4 sm:$0xff]   ;;  %v1026_v3 = vld [vmem:[%s1197_s25 + $0x70] ss:$8 sps:$4 sm:$0xff]   ;;  %v1028_v5 = vld [vmem:[%s1197_s25 + $0x64] ss:$8 sps:$4 sm:$0xff]  }
  0x17   : > { %v1024_v2 = vld [vmem:[%s1197_s25 + $0x174] ss:$8 sps:$4 sm:$0xff]   ;;  %685 = vmatprep.subr.bf16.mxu0 %v1022_v1  ;;  %v1027_v4 = vld [vmem:[%s1197_s25 + $0x170] ss:$8 sps:$4 sm:$0xff]   ;;  %v1030_v6 = vld [vmem:[%s1197_s25 + $0x164] ss:$8 sps:$4 sm:$0xff]  }
  0x18   : > { %726 = vmatprep.subr.bf16.mxu1 %v1024_v2  ;;  %686 = vmatpush1.bf16.msra.mxu0 %v1026_v3  ;;  %v1032_v7 = vld [vmem:[%s1197_s25 + $0x60] ss:$8 sps:$4 sm:$0xff]   ;;  %v1034_v9 = vld [vmem:[%s1197_s25 + $0x54] ss:$8 sps:$4 sm:$0xff]   ;;  %v1038_v11 = vld [vmem:[%s1197_s25 + $0x50] ss:$8 sps:$4 sm:$0xff]  }
  0x19   : > { %727 = vmatpush1.bf16.msra.mxu1 %v1027_v4  ;;  %687 = vmatprep.subr.bf16.mxu0 %v1028_v5  ;;  %v1033_v8 = vld [vmem:[%s1197_s25 + $0x160] ss:$8 sps:$4 sm:$0xff]   ;;  %v1036_v10 = vld [vmem:[%s1197_s25 + $0x154] ss:$8 sps:$4 sm:$0xff]   ;;  %v1039_v12 = vld [vmem:[%s1197_s25 + $0x150] ss:$8 sps:$4 sm:$0xff]  }
  0x1a   : > { %728 = vmatprep.subr.bf16.mxu1 %v1030_v6  ;;  %v1040_v13 = vld [vmem:[%s1197_s25 + $0x44] ss:$8 sps:$4 sm:$0xff]   ;;  %v1044_v15 = vld [vmem:[%s1197_s25 + $0x40] ss:$8 sps:$4 sm:$0xff]   ;;  %v1046_v17 = vld [vmem:[%s1197_s25 + $0x34] ss:$8 sps:$4 sm:$0xff]  }
  0x1b   : > { %v1042_v14 = vld [vmem:[%s1197_s25 + $0x144] ss:$8 sps:$4 sm:$0xff]   ;;  %v1045_v16 = vld [vmem:[%s1197_s25 + $0x140] ss:$8 sps:$4 sm:$0xff]   ;;  %v1048_v18 = vld [vmem:[%s1197_s25 + $0x134] ss:$8 sps:$4 sm:$0xff]  }
  0x1c   : > { %688 = vmatpush1.bf16.msra.mxu0 %v1032_v7  ;;  %v1050_v19 = vld [vmem:[%s1197_s25 + $0x30] ss:$8 sps:$4 sm:$0xff]   ;;  %v1052_v21 = vld [vmem:[%s1197_s25 + $0x24] ss:$8 sps:$4 sm:$0xff]   ;;  %v1056_v23 = vld [vmem:[%s1197_s25 + $0x20] ss:$8 sps:$4 sm:$0xff]  }
  0x1d   : > { %729 = vmatpush1.bf16.msra.mxu1 %v1033_v8  ;;  %689 = vmatprep.subr.bf16.mxu0 %v1034_v9  ;;  %v1051_v20 = vld [vmem:[%s1197_s25 + $0x130] ss:$8 sps:$4 sm:$0xff]   ;;  %v1054_v22 = vld [vmem:[%s1197_s25 + $0x124] ss:$8 sps:$4 sm:$0xff]   ;;  %v1057_v24 = vld [vmem:[%s1197_s25 + $0x120] ss:$8 sps:$4 sm:$0xff]  }
  0x1e   : > { %730 = vmatprep.subr.bf16.mxu1 %v1036_v10  ;;  %v1058_v25 = vld [vmem:[%s1197_s25 + $0x14] ss:$8 sps:$4 sm:$0xff]   ;;  %v1062_v27 = vld [vmem:[%s1197_s25 + $0x10] ss:$8 sps:$4 sm:$0xff]   ;;  %v1064_v29 = vld [vmem:[%s1197_s25 + $0x4] ss:$8 sps:$4 sm:$0xff]  }
  0x1f   : > { %v1060_v26 = vld [vmem:[%s1197_s25 + $0x114] ss:$8 sps:$4 sm:$0xff]   ;;  %v1063_v28 = vld [vmem:[%s1197_s25 + $0x110] ss:$8 sps:$4 sm:$0xff]   ;;  %v1066_v30 = vld [vmem:[%s1197_s25 + $0x104] ss:$8 sps:$4 sm:$0xff]  }
  0x20   : > { %690 = vmatpush1.bf16.msra.mxu0 %v1038_v11  ;;  %v1068_v31 = vld [vmem:[%s1197_s25] ss:$8 sps:$4 sm:$0xff]   ;;  %v1070_v33 = vld [vmem:[%s1197_s25 + $0xf4] ss:$8 sps:$4 sm:$0xff]   ;;  %v1074_v35 = vld [vmem:[%s1197_s25 + $0xf0] ss:$8 sps:$4 sm:$0xff]  }
  0x21   : > { %731 = vmatpush1.bf16.msra.mxu1 %v1039_v12  ;;  %691 = vmatprep.subr.bf16.mxu0 %v1040_v13  ;;  %v1069_v32 = vld [vmem:[%s1197_s25 + $0x100] ss:$8 sps:$4 sm:$0xff]   ;;  %v1072_v34 = vld [vmem:[%s1197_s25 + $0x1f4] ss:$8 sps:$4 sm:$0xff]   ;;  %v1075_v36 = vld [vmem:[%s1197_s25 + $0x1f0] ss:$8 sps:$4 sm:$0xff]  }
  0x22   : > { %732 = vmatprep.subr.bf16.mxu1 %v1042_v14  ;;  %v1076_v37 = vld [vmem:[%s1197_s25 + $0xe4] ss:$8 sps:$4 sm:$0xff]   ;;  %v1080_v39 = vld [vmem:[%s1197_s25 + $0xe0] ss:$8 sps:$4 sm:$0xff]   ;;  %v1082_v41 = vld [vmem:[%s1197_s25 + $0xd4] ss:$8 sps:$4 sm:$0xff]  }
  0x23   : > { %v1078_v38 = vld [vmem:[%s1197_s25 + $0x1e4] ss:$8 sps:$4 sm:$0xff]   ;;  %v1081_v40 = vld [vmem:[%s1197_s25 + $0x1e0] ss:$8 sps:$4 sm:$0xff]   ;;  %v1084_v42 = vld [vmem:[%s1197_s25 + $0x1d4] ss:$8 sps:$4 sm:$0xff]  }
  0x24   : > { %692 = vmatpush1.bf16.msra.mxu0 %v1044_v15  ;;  %v1086_v43 = vld [vmem:[%s1197_s25 + $0xd0] ss:$8 sps:$4 sm:$0xff]   ;;  %v1088_v45 = vld [vmem:[%s1197_s25 + $0xc4] ss:$8 sps:$4 sm:$0xff]   ;;  %v1092_v50 = vld [vmem:[%s1197_s25 + $0xc0] ss:$8 sps:$4 sm:$0xff]  }
  0x25   : > { %733 = vmatpush1.bf16.msra.mxu1 %v1045_v16  ;;  %693 = vmatprep.subr.bf16.mxu0 %v1046_v17  ;;  %v1087_v44 = vld [vmem:[%s1197_s25 + $0x1d0] ss:$8 sps:$4 sm:$0xff]   ;;  %v1090_v46 = vld [vmem:[%s1197_s25 + $0x1c4] ss:$8 sps:$4 sm:$0xff]   ;;  %v1093_v51 = vld [vmem:[%s1197_s25 + $0x1c0] ss:$8 sps:$4 sm:$0xff]  }
  0x26   : > { %734 = vmatprep.subr.bf16.mxu1 %v1048_v18  ;;  %v285_v47 = vld [vmem:[%s1192_s21] sm:$0xff]  ;;  %v286_v49 = vld [vmem:[%s1192_s21 + $0x8] sm:$0xff]  ;;  %v1094_v53 = vld [vmem:[%s1197_s25 + $0xb4] ss:$8 sps:$4 sm:$0xff]   ;;  %p991_p7 = scmp.ne.s32.totalorder %s1136_s12, 3 }
  0x27   : > { %v924_v48 = vcombine.high %v285_v47, %v285_v47  ;;  %v926_v52 = vcombine.high %v286_v49, %v286_v49  ;;  %v1096_v54 = vld [vmem:[%s1197_s25 + $0x1b4] ss:$8 sps:$4 sm:$0xff]   ;;  %v1098_v55 = vld [vmem:[%s1197_s25 + $0xb0] ss:$8 sps:$4 sm:$0xff]   ;;  %v1100_v57 = vld [vmem:[%s1197_s25 + $0xa4] ss:$8 sps:$4 sm:$0xff]   ;;  %v923_v5 = vcombine.low %v285_v47, %v285_v47  ;;  %v925_v6 = vcombine.low %v286_v49, %v286_v49 }
  0x28   : > { %694 = vmatpush1.bf16.msra.mxu0 %v1050_v19  ;;  %v1099_v56 = vld [vmem:[%s1197_s25 + $0x1b0] ss:$8 sps:$4 sm:$0xff]   ;;  %v1102_v58 = vld [vmem:[%s1197_s25 + $0x1a4] ss:$8 sps:$4 sm:$0xff]   ;;  %v1104_v59 = vld [vmem:[%s1197_s25 + $0xa0] ss:$8 sps:$4 sm:$0xff]  }
  0x29   : > { %735 = vmatpush1.bf16.msra.mxu1 %v1051_v20  ;;  %695 = vmatprep.subr.bf16.mxu0 %v1052_v21  ;;  %v1105_v60 = vld [vmem:[%s1197_s25 + $0x1a0] ss:$8 sps:$4 sm:$0xff]   ;;  %v1106_v61 = vld [vmem:[%s1197_s25 + $0x94] ss:$8 sps:$4 sm:$0xff]   ;;  %v1110_v63 = vld [vmem:[%s1197_s25 + $0x90] ss:$8 sps:$4 sm:$0xff]  }
  0x2a   : > { %736 = vmatprep.subr.bf16.mxu1 %v1054_v22  ;;  %717 = vmatprep.mubr.bf16.mxu0 %v924_v48  ;;  %v1108_v62 = vld [vmem:[%s1197_s25 + $0x194] ss:$8 sps:$4 sm:$0xff]   ;;  %v1111_v0 = vld [vmem:[%s1197_s25 + $0x190] ss:$8 sps:$4 sm:$0xff]   ;;  %v1112_v1 = vld [vmem:[%s1197_s25 + $0x84] ss:$8 sps:$4 sm:$0xff]  }
  0x2b   : > { %758 = vmatprep.mubr.bf16.mxu1 %v926_v52  ;;  %v1114_v2 = vld [vmem:[%s1197_s25 + $0x184] ss:$8 sps:$4 sm:$0xff]   ;;  %v1116_v3 = vld [vmem:[%s1197_s25 + $0x80] ss:$8 sps:$4 sm:$0xff]  }
  0x2c   : > { %696 = vmatpush1.bf16.msra.mxu0 %v1056_v23  ;;  %v1117_v4 = vld [vmem:[%s1197_s25 + $0x180] ss:$8 sps:$4 sm:$0xff]  }
  0x2d   : > { %737 = vmatpush1.bf16.msra.mxu1 %v1057_v24  ;;  %697 = vmatprep.subr.bf16.mxu0 %v1058_v25  ;;  %v283_v8 = vld [vmem:[#allocation2] sm:$0xff]  ;;  %v284_v12 = vld [vmem:[#allocation2 + $0x8] sm:$0xff] }
  0x2e   : > { %738 = vmatprep.subr.bf16.mxu1 %v1060_v26 }
  0x30   : > { %698 = vmatpush1.bf16.msra.mxu0 %v1062_v27 }
  0x31   : > { %739 = vmatpush1.bf16.msra.mxu1 %v1063_v28  ;;  %699 = vmatprep.subr.bf16.mxu0 %v1064_v29 }
  0x32   : > { %740 = vmatprep.subr.bf16.mxu1 %v1066_v30 }
  0x34   : > { %700 = vmatpush1.bf16.msra.mxu0 %v1068_v31 }
  0x35   : > { %741 = vmatpush1.bf16.msra.mxu1 %v1069_v32  ;;  %701 = vmatprep.subr.bf16.mxu0 %v1070_v33 }
  0x36   : > { %742 = vmatprep.subr.bf16.mxu1 %v1072_v34 }
  0x38   : > { %702 = vmatpush2.bf16.msra.mxu0 %v1074_v35 }
  0x39   : > { %743 = vmatpush2.bf16.msra.mxu1 %v1075_v36  ;;  %703 = vmatprep.subr.bf16.mxu0 %v1076_v37 }
  0x3a   : > { %744 = vmatprep.subr.bf16.mxu1 %v1078_v38 }
  0x3c   : > { %704 = vmatpush2.bf16.msra.mxu0 %v1080_v39 }
  0x3d   : > { %745 = vmatpush2.bf16.msra.mxu1 %v1081_v40  ;;  %705 = vmatprep.subr.bf16.mxu0 %v1082_v41 }
  0x3e   : > { %746 = vmatprep.subr.bf16.mxu1 %v1084_v42 }
  0x40   : > { %706 = vmatpush2.bf16.msra.mxu0 %v1086_v43 }
  0x41   : > { %747 = vmatpush2.bf16.msra.mxu1 %v1087_v44  ;;  %707 = vmatprep.subr.bf16.mxu0 %v1088_v45 }
  0x42   : > { %748 = vmatprep.subr.bf16.mxu1 %v1090_v46 }
  0x44   : > { %708 = vmatpush2.bf16.msra.mxu0 %v1092_v50 }
  0x45   : > { %749 = vmatpush2.bf16.msra.mxu1 %v1093_v51  ;;  %709 = vmatprep.subr.bf16.mxu0 %v1094_v53 }
  0x46   : > { %750 = vmatprep.subr.bf16.mxu1 %v1096_v54 }
  0x48   : > { %710 = vmatpush2.bf16.msra.mxu0 %v1098_v55 }
  0x49   : > { %751 = vmatpush2.bf16.msra.mxu1 %v1099_v56  ;;  %711 = vmatprep.subr.bf16.mxu0 %v1100_v57 }
  0x4a   : > { %752 = vmatprep.subr.bf16.mxu1 %v1102_v58 }
  0x4c   : > { %712 = vmatpush2.bf16.msra.mxu0 %v1104_v59 }
  0x4d   : > { %753 = vmatpush2.bf16.msra.mxu1 %v1105_v60  ;;  %713 = vmatprep.subr.bf16.mxu0 %v1106_v61 }
  0x4e   : > { %754 = vmatprep.subr.bf16.mxu1 %v1108_v62 }
  0x50   : > { %714 = vmatpush2.bf16.msra.mxu0 %v1110_v63 }
  0x51   : > { %755 = vmatpush2.bf16.msra.mxu1 %v1111_v0  ;;  %715 = vmatprep.subr.bf16.mxu0 %v1112_v1 }
  0x52   : > { %756 = vmatprep.subr.bf16.mxu1 %v1114_v2 }
  0x54   : > { %716 = vmatpush2.bf16.msra.mxu0 %v1116_v3 }
  0x55   : > { %757 = vmatpush2.bf16.msra.mxu1 %v1117_v4 }
  0x57   : > { %718 = vmatmul.mubr.bf16.vlgmr.msra.gmra.mxu0 %v923_v5 }
  0x58   : > { %759 = vmatmul.mubr.bf16.vlgmr.msra.gmra.mxu1 %v925_v6 }
 0x117   : > { %v719_v7 = vpop.f32.mrf.mxu0 }
 0x118   : > { %v760_v9 = vpop.f32.mrf.mxu1 }
 0x119   : > { %v761_v10 = vadd.f32 %v760_v9, %v719_v7  ;;  %v721_v11 = vpop.f32.mrf.mxu0 }
 0x11a   : > { %v762_v13 = vpop.f32.mrf.mxu1 }
 0x11b   : > { %v767_v14 = vadd.f32 %v761_v10, %v283_v8  ;;  %v763_v15 = vadd.f32 %v762_v13, %v721_v11  ;;  %v723_v16 = vpop.f32.mrf.mxu0  ;;  %774 = sbr.rel (%p991_p7) target bundleno = 301 (0x12d), region = 40 }
 0x11c   : > { %v764_v17 = vpop.f32.mrf.mxu1 }
 0x11d   : > { %769 = vst [vmem:[#allocation2] sm:$0xff] %v767_v14  ;;  %v768_v18 = vadd.f32 %v763_v15, %v284_v12  ;;  %v724_v19 = vpop.f32.mrf.mxu0 }
 0x11e   : > { %v765_v20 = vpop.f32.mrf.mxu1 }
 0x11f   : > { %770 = vst [vmem:[#allocation2 + $0x8] sm:$0xff] %v768_v18 }
 0x120   : > { %v779_v21 = vlaneseq  ;;  %v777_v23 = vld [vmem:[%s1287_s2] sm:$0x3] }
 0x122   : > { %v780_v22 = vshrl.u32 %v779_v21, 7 }
 0x124   : > { %v781_v24 = vsub.s32 0, %v780_v22  ;;  %v785_v25 = vsub.s32 1, %v780_v22  ;;  %v775_v26 = vld [vmem:[#allocation2] sm:$0xff] }
 0x126   : > { %v776_v27 = vld [vmem:[#allocation2 + $0x8] sm:$0xff]  ;;  %v782_v28 = vrot.slane %v777_v23, %v781_v24  ;;  %v786_v29 = vrot.slane %v777_v23, %v785_v25 }
 0x128   : > { %v789_v30 = vadd.f32 %v782_v28, %v775_v26  ;;  %v790_v31 = vadd.f32 %v786_v29, %v776_v27 }
 0x12a   : > { %v791_v32 = vmax.f32 %v789_v30, 0.0  ;;  %v792_v33 = vmax.f32 %v790_v31, 0.0 }
 0x12c   : > { %793 = vst [vmem:[%s1288_s3] sm:$0xff] %v791_v32  ;;  %794 = vst [vmem:[%s1288_s3 + $0x8] sm:$0xff] %v792_v33 }
 0x12d PF: > { %s13_s14 = sadd.s32 1, %s1144_s14   ;;  %s1289_s12 = smov %s1140_s13 }
 0x12e   : > { %p10_p8 = scmp.ge.s32.totalorder %s13_s14, 6   ;;  %s1290_s13 = smov %s1292_s15 }
 0x130   :  { %12 = sbr.rel (!%p10_p8) target bundleno = 2 (0x2), region = 76 }

// kernel: denoising_autoencoder.11
= control target key start
LH: loop header
LB: loop body
LE: loop exit
PB: predicated region body
PF: predicated region fallthrough
CT: control target
= control target key end

     0   :  { %s1819_s12 = smov 0   ;;  %s1821_s13 = smov 0   ;;  %s2019_s0 = inlined_call_operand.vmem [shape: bf16[8,4096], index: 0, kind: input, shape index: {}]   ;;  %s2020_s1 = inlined_call_operand.vmem [shape: bf16[4096,512], index: 1, kind: input, shape index: {}]   ;;  %s2021_s2 = inlined_call_operand.vmem [shape: f32[1,512], index: 2, kind: input, shape index: {}]   ;;  %s2022_s3 = inlined_call_operand.vmem [shape: f32[8,512], index: 3, kind: output, shape index: {}]  }
   0x1   :  { %s1823_s14 = smov 0  }
   0x2 LB: > { %s25_s15 = sadd.s32 1, %s1792_s13  ;;  %p1408_p0 = scmp.ge.s32.totalorder %s1796_s14, 1  ;;  %s1796_s14 = sphi %s1823_s14, %s13_s14   ;;  %s1792_s13 = sphi %s1821_s13, %s2024_s13   ;;  %s1788_s12 = sphi %s1819_s12, %s2023_s12  }
   0x3   : > { %p26_p1 = scmp.ge.s32.totalorder %s25_s15, 8  ;;  %p194_p2 = scmp.lt.s32.totalorder %s1796_s14, 9 }
   0x5   : > { %s2026_s15 = smov (%p26_p1, %s25_s15), 0  ;;  %p195_p3 = pnand %p1408_p0, %p194_p2 }
   0x6   : > { %s1409_s16 = sshll.u32 (!%p195_p3), %s1788_s12, 2  ;;  %s1411_s17 = sshll.u32 (!%p195_p3), %s1788_s12, 6 }
   0x7   : > { %198 = sbr.rel (%p195_p3) target bundleno = 367 (0x16f), region = 32  ;;  %p243_p4 = scmp.lt.s32.totalorder (!%p195_p3), %s1409_s16, 31 }
   0x8   : > { %p252_p5 = scmp.lt.s32.totalorder (!%p195_p3), %s1411_s17, 511  ;;  %p1414_p6 = scmp.ne.s32.totalorder (!%p195_p3), %s1788_s12, 0 }
   0xc   : > { %s2028_s16 = smov (!%p243_p4, %s1409_s16), 31  ;;  %s2030_s17 = smov (!%p252_p5, %s1411_s17), 511 }
   0xd   : > { %s1410_s18 = sshll.u32 %s2028_s16, 2  ;;  %s1552_s22 = sshll.u32 %s2030_s17, 4 }
   0xe   : > { %s1844_s21 = scalar_lea.vmem %s2019_s0, %s1410_s18  ;;  %s1849_s25 = scalar_lea.vmem %s2020_s1, %s1552_s22 }
   0xf   : > { %280 = sbr.rel (%p1414_p6) target bundleno = 23 (0x17), region = 36 }
  0x14   : > { %v1798_v0 = vmov 0.0  }
  0x15   : > { %281 = vst [vmem:[#allocation2 + $0x10] sm:$0xff] %v1798_v0  ;;  %282 = vst [vmem:[#allocation2] sm:$0xff] %v1798_v0 }
  0x16   : > { %283 = vst [vmem:[#allocation2 + $0x18] sm:$0xff] %v1798_v0  ;;  %284 = vst [vmem:[#allocation2 + $0x8] sm:$0xff] %v1798_v0 }
  0x17 PF: > { %v1578_v1 = vld [vmem:[%s1849_s25 + $0xe4] ss:$16 sps:$4 sm:$0xff]   ;;  %v1582_v3 = vld [vmem:[%s1849_s25 + $0xe0] ss:$16 sps:$4 sm:$0xff]   ;;  %v290_v49 = vld [vmem:[%s1844_s21 + $0x8] sm:$0xff]  ;;  %p1547_p7 = scmp.ne.s32.totalorder %s1788_s12, 7 }
  0x18   : > { %v1580_v2 = vld [vmem:[%s1849_s25 + $0x2e4] ss:$16 sps:$4 sm:$0xff]   ;;  %1073 = vmatprep.subr.bf16.mxu0 %v1578_v1  ;;  %v1583_v4 = vld [vmem:[%s1849_s25 + $0x2e0] ss:$16 sps:$4 sm:$0xff]   ;;  %v1418_v52 = vcombine.high %v290_v49, %v290_v49 }
  0x19   : > { %1114 = vmatprep.subr.bf16.mxu1 %v1580_v2  ;;  %v1584_v5 = vld [vmem:[%s1849_s25 + $0xc4] ss:$16 sps:$4 sm:$0xff]   ;;  %1074 = vmatpush1.bf16.msra.mxu0 %v1582_v3  ;;  %v1588_v7 = vld [vmem:[%s1849_s25 + $0xc0] ss:$16 sps:$4 sm:$0xff]  }
  0x1a   : > { %1115 = vmatpush1.bf16.msra.mxu1 %v1583_v4  ;;  %v1586_v6 = vld [vmem:[%s1849_s25 + $0x2c4] ss:$16 sps:$4 sm:$0xff]   ;;  %1075 = vmatprep.subr.bf16.mxu0 %v1584_v5  ;;  %v1589_v8 = vld [vmem:[%s1849_s25 + $0x2c0] ss:$16 sps:$4 sm:$0xff]   ;;  %v1680_v5 = vld [vmem:[%s1849_s25 + $0xec] ss:$16 sps:$4 sm:$0xff]  }
  0x1b   : > { %1116 = vmatprep.subr.bf16.mxu1 %v1586_v6  ;;  %v1590_v9 = vld [vmem:[%s1849_s25 + $0xa4] ss:$16 sps:$4 sm:$0xff]   ;;  %v1594_v11 = vld [vmem:[%s1849_s25 + $0xa0] ss:$16 sps:$4 sm:$0xff]   ;;  %1146 = vmatprep.mubr.bf16.mxu1 %v1418_v52  ;;  %v1683_v6 = vld [vmem:[%s1849_s25 + $0x2ec] ss:$16 sps:$4 sm:$0xff]  }
  0x1c   : > { %v1592_v10 = vld [vmem:[%s1849_s25 + $0x2a4] ss:$16 sps:$4 sm:$0xff]   ;;  %v1595_v12 = vld [vmem:[%s1849_s25 + $0x2a0] ss:$16 sps:$4 sm:$0xff]  }
  0x1d   : > { %1076 = vmatpush1.bf16.msra.mxu0 %v1588_v7  ;;  %v1596_v13 = vld [vmem:[%s1849_s25 + $0x84] ss:$16 sps:$4 sm:$0xff]   ;;  %v1600_v15 = vld [vmem:[%s1849_s25 + $0x80] ss:$16 sps:$4 sm:$0xff]  }
  0x1e   : > { %1117 = vmatpush1.bf16.msra.mxu1 %v1589_v8  ;;  %1077 = vmatprep.subr.bf16.mxu0 %v1590_v9  ;;  %v1598_v14 = vld [vmem:[%s1849_s25 + $0x284] ss:$16 sps:$4 sm:$0xff]   ;;  %v1601_v16 = vld [vmem:[%s1849_s25 + $0x280] ss:$16 sps:$4 sm:$0xff]   ;;  %v1925_v8 = vcombine.low %v290_v49, %v290_v49  ;;  %v1678_v9 = vld [vmem:[%s1849_s25 + $0xe8] ss:$16 sps:$4 sm:$0xff]  }
  0x1f   : > { %1118 = vmatprep.subr.bf16.mxu1 %v1592_v10  ;;  %v1602_v17 = vld [vmem:[%s1849_s25 + $0x64] ss:$16 sps:$4 sm:$0xff]   ;;  %v1606_v19 = vld [vmem:[%s1849_s25 + $0x60] ss:$16 sps:$4 sm:$0xff]   ;;  %v1681_v10 = vld [vmem:[%s1849_s25 + $0x2e8] ss:$16 sps:$4 sm:$0xff]  }
  0x20   : > { %v1604_v18 = vld [vmem:[%s1849_s25 + $0x264] ss:$16 sps:$4 sm:$0xff]   ;;  %v1607_v20 = vld [vmem:[%s1849_s25 + $0x260] ss:$16 sps:$4 sm:$0xff]   ;;  %v1738_v49 = vld [vmem:[%s1849_s25 + $0x1a8] ss:$16 sps:$4 sm:$0xff]  }
  0x21   : > { %1078 = vmatpush1.bf16.msra.mxu0 %v1594_v11  ;;  %v1608_v21 = vld [vmem:[%s1849_s25 + $0x44] ss:$16 sps:$4 sm:$0xff]   ;;  %v1612_v23 = vld [vmem:[%s1849_s25 + $0x40] ss:$16 sps:$4 sm:$0xff]   ;;  %v1686_v11 = vld [vmem:[%s1849_s25 + $0xcc] ss:$16 sps:$4 sm:$0xff]  }
  0x22   : > { %1119 = vmatpush1.bf16.msra.mxu1 %v1595_v12  ;;  %1079 = vmatprep.subr.bf16.mxu0 %v1596_v13  ;;  %v1610_v22 = vld [vmem:[%s1849_s25 + $0x244] ss:$16 sps:$4 sm:$0xff]   ;;  %v1613_v24 = vld [vmem:[%s1849_s25 + $0x240] ss:$16 sps:$4 sm:$0xff]   ;;  %v1689_v12 = vld [vmem:[%s1849_s25 + $0x2cc] ss:$16 sps:$4 sm:$0xff]  }
  0x23   : > { %1120 = vmatprep.subr.bf16.mxu1 %v1598_v14  ;;  %v1614_v25 = vld [vmem:[%s1849_s25 + $0x24] ss:$16 sps:$4 sm:$0xff]   ;;  %v1618_v27 = vld [vmem:[%s1849_s25 + $0x20] ss:$16 sps:$4 sm:$0xff]   ;;  %v1684_v13 = vld [vmem:[%s1849_s25 + $0xc8] ss:$16 sps:$4 sm:$0xff]  }
  0x24   : > { %v1616_v26 = vld [vmem:[%s1849_s25 + $0x224] ss:$16 sps:$4 sm:$0xff]   ;;  %v1619_v28 = vld [vmem:[%s1849_s25 + $0x220] ss:$16 sps:$4 sm:$0xff]   ;;  %v1687_v14 = vld [vmem:[%s1849_s25 + $0x2c8] ss:$16 sps:$4 sm:$0xff]  }
  0x25   : > { %1080 = vmatpush1.bf16.msra.mxu0 %v1600_v15  ;;  %v1620_v29 = vld [vmem:[%s1849_s25 + $0x4] ss:$16 sps:$4 sm:$0xff]   ;;  %v1624_v31 = vld [vmem:[%s1849_s25] ss:$16 sps:$4 sm:$0xff]   ;;  %v1692_v15 = vld [vmem:[%s1849_s25 + $0xac] ss:$16 sps:$4 sm:$0xff]  }
  0x26   : > { %1121 = vmatpush1.bf16.msra.mxu1 %v1601_v16  ;;  %1081 = vmatprep.subr.bf16.mxu0 %v1602_v17  ;;  %v1622_v30 = vld [vmem:[%s1849_s25 + $0x204] ss:$16 sps:$4 sm:$0xff]   ;;  %v1625_v32 = vld [vmem:[%s1849_s25 + $0x200] ss:$16 sps:$4 sm:$0xff]   ;;  %v1695_v16 = vld [vmem:[%s1849_s25 + $0x2ac] ss:$16 sps:$4 sm:$0xff]  }
  0x27   : > { %1122 = vmatprep.subr.bf16.mxu1 %v1604_v18  ;;  %v1626_v33 = vld [vmem:[%s1849_s25 + $0x1e4] ss:$16 sps:$4 sm:$0xff]   ;;  %v1630_v35 = vld [vmem:[%s1849_s25 + $0x1e0] ss:$16 sps:$4 sm:$0xff]   ;;  %v1690_v17 = vld [vmem:[%s1849_s25 + $0xa8] ss:$16 sps:$4 sm:$0xff]  }
  0x28   : > { %v1628_v34 = vld [vmem:[%s1849_s25 + $0x3e4] ss:$16 sps:$4 sm:$0xff]   ;;  %v1631_v36 = vld [vmem:[%s1849_s25 + $0x3e0] ss:$16 sps:$4 sm:$0xff]   ;;  %v1693_v18 = vld [vmem:[%s1849_s25 + $0x2a8] ss:$16 sps:$4 sm:$0xff]  }
  0x29   : > { %1082 = vmatpush1.bf16.msra.mxu0 %v1606_v19  ;;  %v1632_v37 = vld [vmem:[%s1849_s25 + $0x1c4] ss:$16 sps:$4 sm:$0xff]   ;;  %v1636_v39 = vld [vmem:[%s1849_s25 + $0x1c0] ss:$16 sps:$4 sm:$0xff]   ;;  %v1698_v19 = vld [vmem:[%s1849_s25 + $0x8c] ss:$16 sps:$4 sm:$0xff]  }
  0x2a   : > { %1123 = vmatpush1.bf16.msra.mxu1 %v1607_v20  ;;  %1083 = vmatprep.subr.bf16.mxu0 %v1608_v21  ;;  %v1634_v38 = vld [vmem:[%s1849_s25 + $0x3c4] ss:$16 sps:$4 sm:$0xff]   ;;  %v1637_v40 = vld [vmem:[%s1849_s25 + $0x3c0] ss:$16 sps:$4 sm:$0xff]   ;;  %v1701_v20 = vld [vmem:[%s1849_s25 + $0x28c] ss:$16 sps:$4 sm:$0xff]  }
  0x2b   : > { %1124 = vmatprep.subr.bf16.mxu1 %v1610_v22  ;;  %v1638_v41 = vld [vmem:[%s1849_s25 + $0x1a4] ss:$16 sps:$4 sm:$0xff]   ;;  %v1642_v43 = vld [vmem:[%s1849_s25 + $0x1a0] ss:$16 sps:$4 sm:$0xff]   ;;  %v1696_v21 = vld [vmem:[%s1849_s25 + $0x88] ss:$16 sps:$4 sm:$0xff]  }
  0x2c   : > { %v1640_v42 = vld [vmem:[%s1849_s25 + $0x3a4] ss:$16 sps:$4 sm:$0xff]   ;;  %v1643_v44 = vld [vmem:[%s1849_s25 + $0x3a0] ss:$16 sps:$4 sm:$0xff]   ;;  %v1699_v22 = vld [vmem:[%s1849_s25 + $0x288] ss:$16 sps:$4 sm:$0xff]  }
  0x2d   : > { %1084 = vmatpush1.bf16.msra.mxu0 %v1612_v23  ;;  %v1644_v45 = vld [vmem:[%s1849_s25 + $0x184] ss:$16 sps:$4 sm:$0xff]   ;;  %v1648_v50 = vld [vmem:[%s1849_s25 + $0x180] ss:$16 sps:$4 sm:$0xff]   ;;  %v1704_v23 = vld [vmem:[%s1849_s25 + $0x6c] ss:$16 sps:$4 sm:$0xff]  }
  0x2e   : > { %1125 = vmatpush1.bf16.msra.mxu1 %v1613_v24  ;;  %1085 = vmatprep.subr.bf16.mxu0 %v1614_v25  ;;  %v1646_v46 = vld [vmem:[%s1849_s25 + $0x384] ss:$16 sps:$4 sm:$0xff]   ;;  %v1649_v51 = vld [vmem:[%s1849_s25 + $0x380] ss:$16 sps:$4 sm:$0xff]   ;;  %v1707_v24 = vld [vmem:[%s1849_s25 + $0x26c] ss:$16 sps:$4 sm:$0xff]  }
  0x2f   : > { %1126 = vmatprep.subr.bf16.mxu1 %v1616_v26  ;;  %v289_v47 = vld [vmem:[%s1844_s21] sm:$0xff]  ;;  %v1702_v25 = vld [vmem:[%s1849_s25 + $0x68] ss:$16 sps:$4 sm:$0xff]  }
  0x30   : > { %v1899_v48 = vcombine.high %v289_v47, %v289_v47  ;;  %v1650_v53 = vld [vmem:[%s1849_s25 + $0x164] ss:$16 sps:$4 sm:$0xff]   ;;  %v1654_v55 = vld [vmem:[%s1849_s25 + $0x160] ss:$16 sps:$4 sm:$0xff]   ;;  %v1923_v7 = vcombine.low %v289_v47, %v289_v47  ;;  %v1705_v26 = vld [vmem:[%s1849_s25 + $0x268] ss:$16 sps:$4 sm:$0xff]  }
  0x31   : > { %1086 = vmatpush1.bf16.msra.mxu0 %v1618_v27  ;;  %v1652_v54 = vld [vmem:[%s1849_s25 + $0x364] ss:$16 sps:$4 sm:$0xff]   ;;  %v1655_v56 = vld [vmem:[%s1849_s25 + $0x360] ss:$16 sps:$4 sm:$0xff]   ;;  %v1710_v27 = vld [vmem:[%s1849_s25 + $0x4c] ss:$16 sps:$4 sm:$0xff]  }
  0x32   : > { %1127 = vmatpush1.bf16.msra.mxu1 %v1619_v28  ;;  %1087 = vmatprep.subr.bf16.mxu0 %v1620_v29  ;;  %v1656_v57 = vld [vmem:[%s1849_s25 + $0x144] ss:$16 sps:$4 sm:$0xff]   ;;  %v1660_v59 = vld [vmem:[%s1849_s25 + $0x140] ss:$16 sps:$4 sm:$0xff]   ;;  %v1713_v28 = vld [vmem:[%s1849_s25 + $0x24c] ss:$16 sps:$4 sm:$0xff]  }
  0x33   : > { %1128 = vmatprep.subr.bf16.mxu1 %v1622_v30  ;;  %1105 = vmatprep.mubr.bf16.mxu0 %v1899_v48  ;;  %v1658_v58 = vld [vmem:[%s1849_s25 + $0x344] ss:$16 sps:$4 sm:$0xff]   ;;  %v1661_v60 = vld [vmem:[%s1849_s25 + $0x340] ss:$16 sps:$4 sm:$0xff]   ;;  %v1708_v29 = vld [vmem:[%s1849_s25 + $0x48] ss:$16 sps:$4 sm:$0xff]  }
  0x34   : > { %v1662_v61 = vld [vmem:[%s1849_s25 + $0x124] ss:$16 sps:$4 sm:$0xff]   ;;  %v1666_v63 = vld [vmem:[%s1849_s25 + $0x120] ss:$16 sps:$4 sm:$0xff]   ;;  %v1711_v30 = vld [vmem:[%s1849_s25 + $0x248] ss:$16 sps:$4 sm:$0xff]  }
  0x35   : > { %1088 = vmatpush1.bf16.msra.mxu0 %v1624_v31  ;;  %v1664_v62 = vld [vmem:[%s1849_s25 + $0x324] ss:$16 sps:$4 sm:$0xff]   ;;  %v1667_v0 = vld [vmem:[%s1849_s25 + $0x320] ss:$16 sps:$4 sm:$0xff]   ;;  %v1716_v31 = vld [vmem:[%s1849_s25 + $0x2c] ss:$16 sps:$4 sm:$0xff]  }
  0x36   : > { %1129 = vmatpush1.bf16.msra.mxu1 %v1625_v32  ;;  %1089 = vmatprep.subr.bf16.mxu0 %v1626_v33  ;;  %v1668_v1 = vld [vmem:[%s1849_s25 + $0x104] ss:$16 sps:$4 sm:$0xff]   ;;  %v1672_v3 = vld [vmem:[%s1849_s25 + $0x100] ss:$16 sps:$4 sm:$0xff]   ;;  %v1719_v32 = vld [vmem:[%s1849_s25 + $0x22c] ss:$16 sps:$4 sm:$0xff]  }
  0x37   : > { %1130 = vmatprep.subr.bf16.mxu1 %v1628_v34  ;;  %v1670_v2 = vld [vmem:[%s1849_s25 + $0x304] ss:$16 sps:$4 sm:$0xff]   ;;  %v1673_v4 = vld [vmem:[%s1849_s25 + $0x300] ss:$16 sps:$4 sm:$0xff]   ;;  %v1714_v33 = vld [vmem:[%s1849_s25 + $0x28] ss:$16 sps:$4 sm:$0xff]  }
  0x38   : > { %v1717_v34 = vld [vmem:[%s1849_s25 + $0x228] ss:$16 sps:$4 sm:$0xff]   ;;  %v1740_v47 = vld [vmem:[%s1849_s25 + $0x1ac] ss:$16 sps:$4 sm:$0xff]  }
  0x39   : > { %1090 = vmatpush2.bf16.msra.mxu0 %v1630_v35  ;;  %v1722_v35 = vld [vmem:[%s1849_s25 + $0xc] ss:$16 sps:$4 sm:$0xff]  }
  0x3a   : > { %1131 = vmatpush2.bf16.msra.mxu1 %v1631_v36  ;;  %1091 = vmatprep.subr.bf16.mxu0 %v1632_v37  ;;  %v1725_v36 = vld [vmem:[%s1849_s25 + $0x20c] ss:$16 sps:$4 sm:$0xff]   ;;  %v1720_v37 = vld [vmem:[%s1849_s25 + $0x8] ss:$16 sps:$4 sm:$0xff]  }
  0x3b   : > { %1132 = vmatprep.subr.bf16.mxu1 %v1634_v38  ;;  %v1723_v38 = vld [vmem:[%s1849_s25 + $0x208] ss:$16 sps:$4 sm:$0xff]  }
  0x3d   : > { %1092 = vmatpush2.bf16.msra.mxu0 %v1636_v39  ;;  %v1728_v39 = vld [vmem:[%s1849_s25 + $0x1ec] ss:$16 sps:$4 sm:$0xff]  }
  0x3e   : > { %1133 = vmatpush2.bf16.msra.mxu1 %v1637_v40  ;;  %1093 = vmatprep.subr.bf16.mxu0 %v1638_v41  ;;  %v1731_v40 = vld [vmem:[%s1849_s25 + $0x3ec] ss:$16 sps:$4 sm:$0xff]   ;;  %v1726_v41 = vld [vmem:[%s1849_s25 + $0x1e8] ss:$16 sps:$4 sm:$0xff]  }
  0x3f   : > { %1134 = vmatprep.subr.bf16.mxu1 %v1640_v42  ;;  %v1729_v42 = vld [vmem:[%s1849_s25 + $0x3e8] ss:$16 sps:$4 sm:$0xff]  }
  0x41   : > { %1094 = vmatpush2.bf16.msra.mxu0 %v1642_v43  ;;  %v1734_v43 = vld [vmem:[%s1849_s25 + $0x1cc] ss:$16 sps:$4 sm:$0xff]  }
  0x42   : > { %1135 = vmatpush2.bf16.msra.mxu1 %v1643_v44  ;;  %1095 = vmatprep.subr.bf16.mxu0 %v1644_v45  ;;  %v1737_v44 = vld [vmem:[%s1849_s25 + $0x3cc] ss:$16 sps:$4 sm:$0xff]   ;;  %v1732_v45 = vld [vmem:[%s1849_s25 + $0x1c8] ss:$16 sps:$4 sm:$0xff]  }
  0x43   : > { %1136 = vmatprep.subr.bf16.mxu1 %v1646_v46  ;;  %v1735_v46 = vld [vmem:[%s1849_s25 + $0x3c8] ss:$16 sps:$4 sm:$0xff]  }
  0x45   : > { %1096 = vmatpush2.bf16.msra.mxu0 %v1648_v50  ;;  %v1741_v50 = vld [vmem:[%s1849_s25 + $0x3a8] ss:$16 sps:$4 sm:$0xff]  }
  0x46   : > { %1137 = vmatpush2.bf16.msra.mxu1 %v1649_v51  ;;  %1097 = vmatprep.subr.bf16.mxu0 %v1650_v53  ;;  %v1746_v51 = vld [vmem:[%s1849_s25 + $0x18c] ss:$16 sps:$4 sm:$0xff]   ;;  %v1744_v53 = vld [vmem:[%s1849_s25 + $0x188] ss:$16 sps:$4 sm:$0xff]  }
  0x47   : > { %1138 = vmatprep.subr.bf16.mxu1 %v1652_v54  ;;  %v1747_v54 = vld [vmem:[%s1849_s25 + $0x388] ss:$16 sps:$4 sm:$0xff]  }
  0x49   : > { %1098 = vmatpush2.bf16.msra.mxu0 %v1654_v55  ;;  %v1752_v55 = vld [vmem:[%s1849_s25 + $0x16c] ss:$16 sps:$4 sm:$0xff]  }
  0x4a   : > { %1139 = vmatpush2.bf16.msra.mxu1 %v1655_v56  ;;  %1099 = vmatprep.subr.bf16.mxu0 %v1656_v57  ;;  %v1755_v56 = vld [vmem:[%s1849_s25 + $0x36c] ss:$16 sps:$4 sm:$0xff]   ;;  %v1750_v57 = vld [vmem:[%s1849_s25 + $0x168] ss:$16 sps:$4 sm:$0xff]  }
  0x4b   : > { %1140 = vmatprep.subr.bf16.mxu1 %v1658_v58  ;;  %v1753_v58 = vld [vmem:[%s1849_s25 + $0x368] ss:$16 sps:$4 sm:$0xff]  }
  0x4d   : > { %1100 = vmatpush2.bf16.msra.mxu0 %v1660_v59  ;;  %v1758_v59 = vld [vmem:[%s1849_s25 + $0x14c] ss:$16 sps:$4 sm:$0xff]  }
  0x4e   : > { %1141 = vmatpush2.bf16.msra.mxu1 %v1661_v60  ;;  %1101 = vmatprep.subr.bf16.mxu0 %v1662_v61  ;;  %v1761_v60 = vld [vmem:[%s1849_s25 + $0x34c] ss:$16 sps:$4 sm:$0xff]   ;;  %v1756_v61 = vld [vmem:[%s1849_s25 + $0x148] ss:$16 sps:$4 sm:$0xff]  }
  0x4f   : > { %1142 = vmatprep.subr.bf16.mxu1 %v1664_v62  ;;  %v1759_v62 = vld [vmem:[%s1849_s25 + $0x348] ss:$16 sps:$4 sm:$0xff]  }
  0x51   : > { %1102 = vmatpush2.bf16.msra.mxu0 %v1666_v63  ;;  %v1764_v63 = vld [vmem:[%s1849_s25 + $0x12c] ss:$16 sps:$4 sm:$0xff]  }
  0x52   : > { %1143 = vmatpush2.bf16.msra.mxu1 %v1667_v0  ;;  %1103 = vmatprep.subr.bf16.mxu0 %v1668_v1  ;;  %v1767_v0 = vld [vmem:[%s1849_s25 + $0x32c] ss:$16 sps:$4 sm:$0xff]   ;;  %v1762_v1 = vld [vmem:[%s1849_s25 + $0x128] ss:$16 sps:$4 sm:$0xff]  }
  0x53   : > { %1144 = vmatprep.subr.bf16.mxu1 %v1670_v2  ;;  %v1765_v2 = vld [vmem:[%s1849_s25 + $0x328] ss:$16 sps:$4 sm:$0xff]  }
  0x55   : > { %1104 = vmatpush2.bf16.msra.mxu0 %v1672_v3  ;;  %v1770_v3 = vld [vmem:[%s1849_s25 + $0x10c] ss:$16 sps:$4 sm:$0xff]  }
  0x56   : > { %1145 = vmatpush2.bf16.msra.mxu1 %v1673_v4  ;;  %1155 = vmatprep.subr.bf16.mxu0 %v1680_v5  ;;  %v1773_v4 = vld [vmem:[%s1849_s25 + $0x30c] ss:$16 sps:$4 sm:$0xff]   ;;  %v1768_v5 = vld [vmem:[%s1849_s25 + $0x108] ss:$16 sps:$4 sm:$0xff]  }
  0x57   : > { %1196 = vmatprep.subr.bf16.mxu1 %v1683_v6  ;;  %v1771_v6 = vld [vmem:[%s1849_s25 + $0x308] ss:$16 sps:$4 sm:$0xff]  }
  0x58   : > { %1106 = vmatmul.mubr.bf16.vlgmr.msra.gmra.mxu0 %v1923_v7 }
  0x59   : > { %1147 = vmatmul.mubr.bf16.vlgmr.msra.gmra.mxu1 %v1925_v8  ;;  %1156 = vmatpush1.bf16.msra.mxu0 %v1678_v9 }
  0x5a   : > { %1197 = vmatpush1.bf16.msra.mxu1 %v1681_v10  ;;  %1157 = vmatprep.subr.bf16.mxu0 %v1686_v11  ;;  %v285_v10 = vld [vmem:[#allocation2 + $0x10] sm:$0xff] }
  0x5b   : > { %1198 = vmatprep.subr.bf16.mxu1 %v1689_v12  ;;  %1187 = vmatprep.mubr.bf16.mxu0 %v1899_v48  ;;  %v1743_v48 = vld [vmem:[%s1849_s25 + $0x3ac] ss:$16 sps:$4 sm:$0xff]  }
  0x5c   : > { %1228 = vmatprep.mubr.bf16.mxu1 %v1418_v52  ;;  %v1749_v52 = vld [vmem:[%s1849_s25 + $0x38c] ss:$16 sps:$4 sm:$0xff]  }
  0x5d   : > { %1158 = vmatpush1.bf16.msra.mxu0 %v1684_v13 }
  0x5e   : > { %1199 = vmatpush1.bf16.msra.mxu1 %v1687_v14  ;;  %1159 = vmatprep.subr.bf16.mxu0 %v1692_v15  ;;  %v286_v14 = vld [vmem:[#allocation2] sm:$0xff] }
  0x5f   : > { %1200 = vmatprep.subr.bf16.mxu1 %v1695_v16 }
  0x61   : > { %1160 = vmatpush1.bf16.msra.mxu0 %v1690_v17 }
  0x62   : > { %1201 = vmatpush1.bf16.msra.mxu1 %v1693_v18  ;;  %1161 = vmatprep.subr.bf16.mxu0 %v1698_v19 }
  0x63   : > { %1202 = vmatprep.subr.bf16.mxu1 %v1701_v20 }
  0x65   : > { %1162 = vmatpush1.bf16.msra.mxu0 %v1696_v21 }
  0x66   : > { %1203 = vmatpush1.bf16.msra.mxu1 %v1699_v22  ;;  %1163 = vmatprep.subr.bf16.mxu0 %v1704_v23 }
  0x67   : > { %1204 = vmatprep.subr.bf16.mxu1 %v1707_v24 }
  0x69   : > { %1164 = vmatpush1.bf16.msra.mxu0 %v1702_v25 }
  0x6a   : > { %1205 = vmatpush1.bf16.msra.mxu1 %v1705_v26  ;;  %1165 = vmatprep.subr.bf16.mxu0 %v1710_v27  ;;  %v288_v26 = vld [vmem:[#allocation2 + $0x8] sm:$0xff] }
  0x6b   : > { %1206 = vmatprep.subr.bf16.mxu1 %v1713_v28 }
  0x6d   : > { %1166 = vmatpush1.bf16.msra.mxu0 %v1708_v29 }
  0x6e   : > { %1207 = vmatpush1.bf16.msra.mxu1 %v1711_v30  ;;  %1167 = vmatprep.subr.bf16.mxu0 %v1716_v31 }
  0x6f   : > { %1208 = vmatprep.subr.bf16.mxu1 %v1719_v32 }
  0x71   : > { %1168 = vmatpush1.bf16.msra.mxu0 %v1714_v33 }
  0x72   : > { %1209 = vmatpush1.bf16.msra.mxu1 %v1717_v34  ;;  %1169 = vmatprep.subr.bf16.mxu0 %v1722_v35 }
  0x73   : > { %1210 = vmatprep.subr.bf16.mxu1 %v1725_v36 }
  0x75   : > { %1170 = vmatpush1.bf16.msra.mxu0 %v1720_v37 }
  0x76   : > { %1211 = vmatpush1.bf16.msra.mxu1 %v1723_v38  ;;  %1171 = vmatprep.subr.bf16.mxu0 %v1728_v39 }
  0x77   : > { %1212 = vmatprep.subr.bf16.mxu1 %v1731_v40 }
  0x79   : > { %1172 = vmatpush2.bf16.msra.mxu0 %v1726_v41 }
  0x7a   : > { %1213 = vmatpush2.bf16.msra.mxu1 %v1729_v42  ;;  %1173 = vmatprep.subr.bf16.mxu0 %v1734_v43 }
  0x7b   : > { %1214 = vmatprep.subr.bf16.mxu1 %v1737_v44 }
  0x7d   : > { %1174 = vmatpush2.bf16.msra.mxu0 %v1732_v45 }
  0x7e   : > { %1215 = vmatpush2.bf16.msra.mxu1 %v1735_v46  ;;  %1175 = vmatprep.subr.bf16.mxu0 %v1740_v47 }
  0x7f   : > { %1216 = vmatprep.subr.bf16.mxu1 %v1743_v48 }
  0x81   : > { %1176 = vmatpush2.bf16.msra.mxu0 %v1738_v49 }
  0x82   : > { %1217 = vmatpush2.bf16.msra.mxu1 %v1741_v50  ;;  %1177 = vmatprep.subr.bf16.mxu0 %v1746_v51 }
  0x83   : > { %1218 = vmatprep.subr.bf16.mxu1 %v1749_v52 }
  0x85   : > { %1178 = vmatpush2.bf16.msra.mxu0 %v1744_v53 }
  0x86   : > { %1219 = vmatpush2.bf16.msra.mxu1 %v1747_v54  ;;  %1179 = vmatprep.subr.bf16.mxu0 %v1752_v55 }
  0x87   : > { %1220 = vmatprep.subr.bf16.mxu1 %v1755_v56 }
  0x89   : > { %1180 = vmatpush2.bf16.msra.mxu0 %v1750_v57 }
  0x8a   : > { %1221 = vmatpush2.bf16.msra.mxu1 %v1753_v58  ;;  %1181 = vmatprep.subr.bf16.mxu0 %v1758_v59 }
  0x8b   : > { %1222 = vmatprep.subr.bf16.mxu1 %v1761_v60 }
  0x8d   : > { %1182 = vmatpush2.bf16.msra.mxu0 %v1756_v61 }
  0x8e   : > { %1223 = vmatpush2.bf16.msra.mxu1 %v1759_v62  ;;  %1183 = vmatprep.subr.bf16.mxu0 %v1764_v63 }
  0x8f   : > { %1224 = vmatprep.subr.bf16.mxu1 %v1767_v0 }
  0x91   : > { %1184 = vmatpush2.bf16.msra.mxu0 %v1762_v1 }
  0x92   : > { %1225 = vmatpush2.bf16.msra.mxu1 %v1765_v2  ;;  %1185 = vmatprep.subr.bf16.mxu0 %v1770_v3 }
  0x93   : > { %1226 = vmatprep.subr.bf16.mxu1 %v1773_v4 }
  0x95   : > { %1186 = vmatpush2.bf16.msra.mxu0 %v1768_v5 }
  0x96   : > { %1227 = vmatpush2.bf16.msra.mxu1 %v1771_v6 }
  0x98   : > { %1188 = vmatmul.mubr.bf16.vlgmr.msra.gmra.mxu0 %v1923_v7  ;;  %v287_v7 = vld [vmem:[#allocation2 + $0x18] sm:$0xff] }
  0x99   : > { %1229 = vmatmul.mubr.bf16.vlgmr.msra.gmra.mxu1 %v1925_v8 }
 0x118   : > { %v1107_v9 = vpop.f32.mrf.mxu0 }
 0x119   : > { %v1148_v11 = vpop.f32.mrf.mxu1 }
 0x11a   : > { %v1149_v12 = vadd.f32 %v1148_v11, %v1107_v9  ;;  %v1109_v13 = vpop.f32.mrf.mxu0 }
 0x11b   : > { %v1150_v15 = vpop.f32.mrf.mxu1 }
 0x11c   : > { %v1237_v16 = vadd.f32 %v1149_v12, %v285_v10  ;;  %v1151_v17 = vadd.f32 %v1150_v15, %v1109_v13  ;;  %v1111_v18 = vpop.f32.mrf.mxu0 }
 0x11d   : > { %v1152_v19 = vpop.f32.mrf.mxu1 }
 0x11e   : > { %1241 = vst [vmem:[#allocation2 + $0x10] sm:$0xff] %v1237_v16  ;;  %v1238_v20 = vadd.f32 %v1151_v17, %v286_v14  ;;  %v1112_v21 = vpop.f32.mrf.mxu0 }
 0x11f   : > { %v1153_v22 = vpop.f32.mrf.mxu1 }
 0x120   : > { %1242 = vst [vmem:[#allocation2] sm:$0xff] %v1238_v20 }
 0x158   : > { %v1189_v23 = vpop.f32.mrf.mxu0 }
 0x159   : > { %v1230_v24 = vpop.f32.mrf.mxu1 }
 0x15a   : > { %v1231_v8 = vadd.f32 %v1230_v24, %v1189_v23  ;;  %v1191_v25 = vpop.f32.mrf.mxu0 }
 0x15b   : > { %v1232_v27 = vpop.f32.mrf.mxu1 }
 0x15c   : > { %v1239_v28 = vadd.f32 %v1231_v8, %v287_v7  ;;  %v1233_v29 = vadd.f32 %v1232_v27, %v1191_v25  ;;  %v1193_v30 = vpop.f32.mrf.mxu0  ;;  %1248 = sbr.rel (%p1547_p7) target bundleno = 367 (0x16f), region = 40 }
 0x15d   : > { %v1234_v31 = vpop.f32.mrf.mxu1 }
 0x15e   : > { %1243 = vst [vmem:[#allocation2 + $0x18] sm:$0xff] %v1239_v28  ;;  %v1240_v32 = vadd.f32 %v1233_v29, %v288_v26  ;;  %v1194_v33 = vpop.f32.mrf.mxu0 }
 0x15f   : > { %v1235_v34 = vpop.f32.mrf.mxu1 }
 0x160   : > { %1244 = vst [vmem:[#allocation2 + $0x8] sm:$0xff] %v1240_v32 }
 0x161   : > { %v1255_v35 = vlaneseq  ;;  %v1253_v37 = vld [vmem:[%s2021_s2] sm:$0xf]  ;;  %v1249_v38 = vld [vmem:[#allocation2 + $0x10] sm:$0xff] }
 0x162   : > { %v1250_v43 = vld [vmem:[#allocation2] sm:$0xff] }
 0x163   : > { %v1256_v36 = vshrl.u32 %v1255_v35, 7 }
 0x165   : > { %v1257_v39 = vsub.s32 0, %v1256_v36  ;;  %v1261_v40 = vsub.s32 1, %v1256_v36  ;;  %v1265_v41 = vsub.s32 2, %v1256_v36  ;;  %v1269_v42 = vsub.s32 3, %v1256_v36  ;;  %v1251_v44 = vld [vmem:[#allocation2 + $0x18] sm:$0xff] }
 0x167   : > { %v1252_v45 = vld [vmem:[#allocation2 + $0x8] sm:$0xff]  ;;  %v1258_v46 = vrot.slane %v1253_v37, %v1257_v39  ;;  %v1262_v47 = vrot.slane %v1253_v37, %v1261_v40  ;;  %v1266_v48 = vrot.slane %v1253_v37, %v1265_v41  ;;  %v1270_v49 = vrot.slane %v1253_v37, %v1269_v42 }
 0x169   : > { %v1275_v50 = vadd.f32 %v1258_v46, %v1249_v38  ;;  %v1276_v51 = vadd.f32 %v1262_v47, %v1250_v43  ;;  %v1277_v52 = vadd.f32 %v1266_v48, %v1251_v44  ;;  %v1278_v53 = vadd.f32 %v1270_v49, %v1252_v45 }
 0x16b   : > { %v1279_v54 = vmax.f32 %v1275_v50, 0.0  ;;  %v1280_v55 = vmax.f32 %v1276_v51, 0.0  ;;  %v1281_v56 = vmax.f32 %v1277_v52, 0.0  ;;  %v1282_v57 = vmax.f32 %v1278_v53, 0.0 }
 0x16d   : > { %1283 = vst [vmem:[%s2022_s3] sm:$0xff] %v1279_v54  ;;  %1284 = vst [vmem:[%s2022_s3 + $0x8] sm:$0xff] %v1280_v55 }
 0x16e   : > { %1285 = vst [vmem:[%s2022_s3 + $0x10] sm:$0xff] %v1281_v56  ;;  %1286 = vst [vmem:[%s2022_s3 + $0x18] sm:$0xff] %v1282_v57 }
 0x16f PF: > { %s13_s14 = sadd.s32 1, %s1796_s14   ;;  %s2023_s12 = smov %s1792_s13 }
 0x170   : > { %p10_p8 = scmp.ge.s32.totalorder %s13_s14, 10   ;;  %s2024_s13 = smov %s2026_s15 }
 0x172   :  { %12 = sbr.rel (!%p10_p8) target bundleno = 2 (0x2), region = 76 }

// kernel: denoising_autoencoder.12
= control target key start
LH: loop header
LB: loop body
LE: loop exit
PB: predicated region body
PF: predicated region fallthrough
CT: control target
= control target key end

     0   :  { %s2153_s12 = smov 0   ;;  %s2155_s13 = smov 0   ;;  %s2671_s0 = inlined_call_operand.vmem [shape: bf16[8,2048], index: 0, kind: input, shape index: {}]   ;;  %s2672_s1 = inlined_call_operand.vmem [shape: bf16[2048,1024], index: 1, kind: input, shape index: {}]   ;;  %s2673_s2 = inlined_call_operand.vmem [shape: f32[1,1024], index: 2, kind: input, shape index: {}]   ;;  %s2674_s3 = inlined_call_operand.vmem [shape: f32[8,1024], index: 3, kind: output, shape index: {}]  }
   0x1   :  { %s2157_s14 = smov 0   ;;  %s2159_s15 = smov 0  }
   0x2   :  { %s2161_s16 = smov 0   ;;  %s2163_s17 = smov 0  }
   0x3   :  { %s2165_s18 = smov 0  }
   0x4 LB: > { %s25_s19 = sadd.s32 1, %s2122_s16  ;;  %s28_s20 = sadd.s32 1, %s2126_s17  ;;  %s2130_s18 = sphi %s2165_s18, %s13_s18   ;;  %s2126_s17 = sphi %s2163_s17, %s2680_s17   ;;  %s2122_s16 = sphi %s2161_s16, %s2679_s16   ;;  %s2118_s15 = sphi %s2159_s15, %s2678_s15   ;;  %s2114_s14 = sphi %s2157_s14, %s2677_s14   ;;  %s2110_s13 = sphi %s2155_s13, %s2676_s13   ;;  %s2106_s12 = sphi %s2153_s12, %s2675_s12  }
   0x5   : > { %p26_p0 = scmp.ge.s32.totalorder %s25_s19, 4  ;;  %p76_p1 = scmp.ne.s32.totalorder %s2110_s13, %s2106_s12 }
   0x6   : > { %p77_p2 = scmp.eq.s32.totalorder %s2130_s18, 0  ;;  %s69_s24 = sadd.s32 1, %s2110_s13 }
   0x7   : > { %s2682_s19 = smov (%p26_p0, %s25_s19), 0  ;;  %s2684_s20 = smov (!%p26_p0, %s28_s20), %s2126_s17 }
   0x8   : > { %p78_p3 = por %p77_p2, %p76_p1  ;;  %p30_p4 = scmp.ge.s32.totalorder %s2684_s20, 2 }
   0x9   : > { %s64_s21 = ssub.s32 %s2122_s16, %s2682_s19  ;;  %p1673_p6 = scmp.ge.s32.totalorder %s2130_s18, 8 }
   0xa   : > { %s2686_s20 = smov (%p30_p4, %s2684_s20), 0 }
   0xb   : > { %s65_s22 = ssub.s32 %s2126_s17, %s2686_s20  ;;  %156 = sbr.rel (%p1673_p6) target bundleno = 87 (0x57), region = 16 }
   0xc   : > { %s66_s23 = sor.u32 %s65_s22, %s64_s21 }
   0xd   : > { %p67_p5 = scmp.eq.s32.totalorder %s66_s23, 0 }
   0xf   : > { %s2204_s25 = scalar_select %p67_p5, %s2110_s13, %s69_s24  }
  0x10   : > { %172 = sbr.rel (!%p78_p3) target bundleno = 87 (0x57), region = 24  ;;  %s174_s26 = sand.u32 (%p78_p3), 1, %s2110_s13  }
  0x11   : > { %s1676_s27 = sshll.u32 (%p78_p3), %s2126_s17, 2  ;;  %s1674_s28 = sshll.u32 (%p78_p3), %s174_s26, 10 }
  0x12   : > { %s1822_s29 = sshll.u32 (%p78_p3), %s2122_s16, 9  ;;  %s2218_s8 = scalar_lea.vmem (%p78_p3), [#allocation3], %s1674_s28 }
  0x13   : > { %s180_s30 = sadd.s32 (%p78_p3), %s1822_s29, %s1676_s27 }
  0x14   : > { %s1678_s4 = sshll.u32 (%p78_p3), %s180_s30, 2 }
  0x15   : > { %s2213_s7 = scalar_lea.vmem %s2672_s1, %s1678_s4 }
  0x16   : > { %v195_v0 = vld [vmem:[%s2213_s7] sm:$0xff]  ;;  %v197_v1 = vld [vmem:[%s2213_s7 + $0x8] sm:$0xff] }
  0x17   : > { %v199_v2 = vld [vmem:[%s2213_s7 + $0x20] sm:$0xff]  ;;  %196 = vst [vmem:[%s2218_s8] sm:$0xff] %v195_v0  ;;  %198 = vst [vmem:[%s2218_s8 + $0x8] sm:$0xff] %v197_v1  ;;  %v201_v3 = vld [vmem:[%s2213_s7 + $0x28] sm:$0xff] }
  0x18   : > { %200 = vst [vmem:[%s2218_s8 + $0x10] sm:$0xff] %v199_v2  ;;  %v203_v4 = vld [vmem:[%s2213_s7 + $0x40] sm:$0xff]  ;;  %v205_v5 = vld [vmem:[%s2213_s7 + $0x48] sm:$0xff]  ;;  %202 = vst [vmem:[%s2218_s8 + $0x18] sm:$0xff] %v201_v3 }
  0x19   : > { %204 = vst [vmem:[%s2218_s8 + $0x20] sm:$0xff] %v203_v4  ;;  %206 = vst [vmem:[%s2218_s8 + $0x28] sm:$0xff] %v205_v5  ;;  %v207_v6 = vld [vmem:[%s2213_s7 + $0x60] sm:$0xff]  ;;  %v209_v7 = vld [vmem:[%s2213_s7 + $0x68] sm:$0xff] }
  0x1a   : > { %v211_v8 = vld [vmem:[%s2213_s7 + $0x80] sm:$0xff]  ;;  %208 = vst [vmem:[%s2218_s8 + $0x30] sm:$0xff] %v207_v6  ;;  %210 = vst [vmem:[%s2218_s8 + $0x38] sm:$0xff] %v209_v7  ;;  %v213_v9 = vld [vmem:[%s2213_s7 + $0x88] sm:$0xff] }
  0x1b   : > { %212 = vst [vmem:[%s2218_s8 + $0x40] sm:$0xff] %v211_v8  ;;  %v215_v10 = vld [vmem:[%s2213_s7 + $0xa0] sm:$0xff]  ;;  %v217_v11 = vld [vmem:[%s2213_s7 + $0xa8] sm:$0xff]  ;;  %214 = vst [vmem:[%s2218_s8 + $0x48] sm:$0xff] %v213_v9 }
  0x1c   : > { %216 = vst [vmem:[%s2218_s8 + $0x50] sm:$0xff] %v215_v10  ;;  %218 = vst [vmem:[%s2218_s8 + $0x58] sm:$0xff] %v217_v11  ;;  %v219_v12 = vld [vmem:[%s2213_s7 + $0xc0] sm:$0xff]  ;;  %v221_v13 = vld [vmem:[%s2213_s7 + $0xc8] sm:$0xff] }
  0x1d   : > { %v223_v14 = vld [vmem:[%s2213_s7 + $0xe0] sm:$0xff]  ;;  %220 = vst [vmem:[%s2218_s8 + $0x60] sm:$0xff] %v219_v12  ;;  %222 = vst [vmem:[%s2218_s8 + $0x68] sm:$0xff] %v221_v13  ;;  %v225_v15 = vld [vmem:[%s2213_s7 + $0xe8] sm:$0xff] }
  0x1e   : > { %224 = vst [vmem:[%s2218_s8 + $0x70] sm:$0xff] %v223_v14  ;;  %v227_v16 = vld [vmem:[%s2213_s7 + $0x100] sm:$0xff]  ;;  %v229_v17 = vld [vmem:[%s2213_s7 + $0x108] sm:$0xff]  ;;  %226 = vst [vmem:[%s2218_s8 + $0x78] sm:$0xff] %v225_v15 }
  0x1f   : > { %228 = vst [vmem:[%s2218_s8 + $0x80] sm:$0xff] %v227_v16  ;;  %230 = vst [vmem:[%s2218_s8 + $0x88] sm:$0xff] %v229_v17  ;;  %v231_v18 = vld [vmem:[%s2213_s7 + $0x120] sm:$0xff]  ;;  %v233_v19 = vld [vmem:[%s2213_s7 + $0x128] sm:$0xff] }
  0x20   : > { %v235_v20 = vld [vmem:[%s2213_s7 + $0x140] sm:$0xff]  ;;  %232 = vst [vmem:[%s2218_s8 + $0x90] sm:$0xff] %v231_v18  ;;  %234 = vst [vmem:[%s2218_s8 + $0x98] sm:$0xff] %v233_v19  ;;  %v237_v21 = vld [vmem:[%s2213_s7 + $0x148] sm:$0xff] }
  0x21   : > { %236 = vst [vmem:[%s2218_s8 + $0xa0] sm:$0xff] %v235_v20  ;;  %v239_v22 = vld [vmem:[%s2213_s7 + $0x160] sm:$0xff]  ;;  %v241_v23 = vld [vmem:[%s2213_s7 + $0x168] sm:$0xff]  ;;  %238 = vst [vmem:[%s2218_s8 + $0xa8] sm:$0xff] %v237_v21 }
  0x22   : > { %240 = vst [vmem:[%s2218_s8 + $0xb0] sm:$0xff] %v239_v22  ;;  %242 = vst [vmem:[%s2218_s8 + $0xb8] sm:$0xff] %v241_v23  ;;  %v243_v24 = vld [vmem:[%s2213_s7 + $0x180] sm:$0xff]  ;;  %v245_v25 = vld [vmem:[%s2213_s7 + $0x188] sm:$0xff] }
  0x23   : > { %v247_v26 = vld [vmem:[%s2213_s7 + $0x1a0] sm:$0xff]  ;;  %244 = vst [vmem:[%s2218_s8 + $0xc0] sm:$0xff] %v243_v24  ;;  %246 = vst [vmem:[%s2218_s8 + $0xc8] sm:$0xff] %v245_v25  ;;  %v249_v27 = vld [vmem:[%s2213_s7 + $0x1a8] sm:$0xff] }
  0x24   : > { %248 = vst [vmem:[%s2218_s8 + $0xd0] sm:$0xff] %v247_v26  ;;  %v251_v28 = vld [vmem:[%s2213_s7 + $0x1c0] sm:$0xff]  ;;  %v253_v29 = vld [vmem:[%s2213_s7 + $0x1c8] sm:$0xff]  ;;  %250 = vst [vmem:[%s2218_s8 + $0xd8] sm:$0xff] %v249_v27 }
  0x25   : > { %252 = vst [vmem:[%s2218_s8 + $0xe0] sm:$0xff] %v251_v28  ;;  %254 = vst [vmem:[%s2218_s8 + $0xe8] sm:$0xff] %v253_v29  ;;  %v255_v30 = vld [vmem:[%s2213_s7 + $0x1e0] sm:$0xff]  ;;  %v257_v31 = vld [vmem:[%s2213_s7 + $0x1e8] sm:$0xff] }
  0x26   : > { %v259_v32 = vld [vmem:[%s2213_s7 + $0x200] sm:$0xff]  ;;  %256 = vst [vmem:[%s2218_s8 + $0xf0] sm:$0xff] %v255_v30  ;;  %258 = vst [vmem:[%s2218_s8 + $0xf8] sm:$0xff] %v257_v31  ;;  %v261_v33 = vld [vmem:[%s2213_s7 + $0x208] sm:$0xff] }
  0x27   : > { %260 = vst [vmem:[%s2218_s8 + $0x100] sm:$0xff] %v259_v32  ;;  %v263_v34 = vld [vmem:[%s2213_s7 + $0x220] sm:$0xff]  ;;  %v265_v35 = vld [vmem:[%s2213_s7 + $0x228] sm:$0xff]  ;;  %262 = vst [vmem:[%s2218_s8 + $0x108] sm:$0xff] %v261_v33 }
  0x28   : > { %264 = vst [vmem:[%s2218_s8 + $0x110] sm:$0xff] %v263_v34  ;;  %266 = vst [vmem:[%s2218_s8 + $0x118] sm:$0xff] %v265_v35  ;;  %v267_v36 = vld [vmem:[%s2213_s7 + $0x240] sm:$0xff]  ;;  %v269_v37 = vld [vmem:[%s2213_s7 + $0x248] sm:$0xff] }
  0x29   : > { %v271_v38 = vld [vmem:[%s2213_s7 + $0x260] sm:$0xff]  ;;  %268 = vst [vmem:[%s2218_s8 + $0x120] sm:$0xff] %v267_v36  ;;  %270 = vst [vmem:[%s2218_s8 + $0x128] sm:$0xff] %v269_v37  ;;  %v273_v39 = vld [vmem:[%s2213_s7 + $0x268] sm:$0xff] }
  0x2a   : > { %272 = vst [vmem:[%s2218_s8 + $0x130] sm:$0xff] %v271_v38  ;;  %v275_v40 = vld [vmem:[%s2213_s7 + $0x280] sm:$0xff]  ;;  %v277_v41 = vld [vmem:[%s2213_s7 + $0x288] sm:$0xff]  ;;  %274 = vst [vmem:[%s2218_s8 + $0x138] sm:$0xff] %v273_v39 }
  0x2b   : > { %276 = vst [vmem:[%s2218_s8 + $0x140] sm:$0xff] %v275_v40  ;;  %278 = vst [vmem:[%s2218_s8 + $0x148] sm:$0xff] %v277_v41  ;;  %v279_v42 = vld [vmem:[%s2213_s7 + $0x2a0] sm:$0xff]  ;;  %v281_v43 = vld [vmem:[%s2213_s7 + $0x2a8] sm:$0xff] }
  0x2c   : > { %v283_v44 = vld [vmem:[%s2213_s7 + $0x2c0] sm:$0xff]  ;;  %280 = vst [vmem:[%s2218_s8 + $0x150] sm:$0xff] %v279_v42  ;;  %282 = vst [vmem:[%s2218_s8 + $0x158] sm:$0xff] %v281_v43  ;;  %v285_v45 = vld [vmem:[%s2213_s7 + $0x2c8] sm:$0xff] }
  0x2d   : > { %284 = vst [vmem:[%s2218_s8 + $0x160] sm:$0xff] %v283_v44  ;;  %v287_v46 = vld [vmem:[%s2213_s7 + $0x2e0] sm:$0xff]  ;;  %v289_v47 = vld [vmem:[%s2213_s7 + $0x2e8] sm:$0xff]  ;;  %286 = vst [vmem:[%s2218_s8 + $0x168] sm:$0xff] %v285_v45 }
  0x2e   : > { %288 = vst [vmem:[%s2218_s8 + $0x170] sm:$0xff] %v287_v46  ;;  %290 = vst [vmem:[%s2218_s8 + $0x178] sm:$0xff] %v289_v47  ;;  %v291_v48 = vld [vmem:[%s2213_s7 + $0x300] sm:$0xff]  ;;  %v293_v49 = vld [vmem:[%s2213_s7 + $0x308] sm:$0xff] }
  0x2f   : > { %v295_v50 = vld [vmem:[%s2213_s7 + $0x320] sm:$0xff]  ;;  %292 = vst [vmem:[%s2218_s8 + $0x180] sm:$0xff] %v291_v48  ;;  %294 = vst [vmem:[%s2218_s8 + $0x188] sm:$0xff] %v293_v49  ;;  %v297_v51 = vld [vmem:[%s2213_s7 + $0x328] sm:$0xff] }
  0x30   : > { %296 = vst [vmem:[%s2218_s8 + $0x190] sm:$0xff] %v295_v50  ;;  %v299_v52 = vld [vmem:[%s2213_s7 + $0x340] sm:$0xff]  ;;  %v301_v53 = vld [vmem:[%s2213_s7 + $0x348] sm:$0xff]  ;;  %298 = vst [vmem:[%s2218_s8 + $0x198] sm:$0xff] %v297_v51 }
  0x31   : > { %300 = vst [vmem:[%s2218_s8 + $0x1a0] sm:$0xff] %v299_v52  ;;  %302 = vst [vmem:[%s2218_s8 + $0x1a8] sm:$0xff] %v301_v53  ;;  %v303_v54 = vld [vmem:[%s2213_s7 + $0x360] sm:$0xff]  ;;  %v305_v55 = vld [vmem:[%s2213_s7 + $0x368] sm:$0xff] }
  0x32   : > { %v307_v56 = vld [vmem:[%s2213_s7 + $0x380] sm:$0xff]  ;;  %304 = vst [vmem:[%s2218_s8 + $0x1b0] sm:$0xff] %v303_v54  ;;  %306 = vst [vmem:[%s2218_s8 + $0x1b8] sm:$0xff] %v305_v55  ;;  %v309_v57 = vld [vmem:[%s2213_s7 + $0x388] sm:$0xff] }
  0x33   : > { %308 = vst [vmem:[%s2218_s8 + $0x1c0] sm:$0xff] %v307_v56  ;;  %v311_v58 = vld [vmem:[%s2213_s7 + $0x3a0] sm:$0xff]  ;;  %v313_v59 = vld [vmem:[%s2213_s7 + $0x3a8] sm:$0xff]  ;;  %310 = vst [vmem:[%s2218_s8 + $0x1c8] sm:$0xff] %v309_v57 }
  0x34   : > { %312 = vst [vmem:[%s2218_s8 + $0x1d0] sm:$0xff] %v311_v58  ;;  %314 = vst [vmem:[%s2218_s8 + $0x1d8] sm:$0xff] %v313_v59  ;;  %v315_v60 = vld [vmem:[%s2213_s7 + $0x3c0] sm:$0xff]  ;;  %v317_v61 = vld [vmem:[%s2213_s7 + $0x3c8] sm:$0xff] }
  0x35   : > { %v319_v62 = vld [vmem:[%s2213_s7 + $0x3e0] sm:$0xff]  ;;  %316 = vst [vmem:[%s2218_s8 + $0x1e0] sm:$0xff] %v315_v60  ;;  %318 = vst [vmem:[%s2218_s8 + $0x1e8] sm:$0xff] %v317_v61  ;;  %v321_v63 = vld [vmem:[%s2213_s7 + $0x3e8] sm:$0xff] }
  0x36   : > { %320 = vst [vmem:[%s2218_s8 + $0x1f0] sm:$0xff] %v319_v62  ;;  %v323_v0 = vld [vmem:[%s2213_s7 + $0x400] sm:$0xff]  ;;  %v325_v1 = vld [vmem:[%s2213_s7 + $0x408] sm:$0xff]  ;;  %322 = vst [vmem:[%s2218_s8 + $0x1f8] sm:$0xff] %v321_v63 }
  0x37   : > { %324 = vst [vmem:[%s2218_s8 + $0x200] sm:$0xff] %v323_v0  ;;  %326 = vst [vmem:[%s2218_s8 + $0x208] sm:$0xff] %v325_v1  ;;  %v327_v2 = vld [vmem:[%s2213_s7 + $0x420] sm:$0xff]  ;;  %v329_v3 = vld [vmem:[%s2213_s7 + $0x428] sm:$0xff] }
  0x38   : > { %v331_v4 = vld [vmem:[%s2213_s7 + $0x440] sm:$0xff]  ;;  %328 = vst [vmem:[%s2218_s8 + $0x210] sm:$0xff] %v327_v2  ;;  %330 = vst [vmem:[%s2218_s8 + $0x218] sm:$0xff] %v329_v3  ;;  %v333_v5 = vld [vmem:[%s2213_s7 + $0x448] sm:$0xff] }
  0x39   : > { %332 = vst [vmem:[%s2218_s8 + $0x220] sm:$0xff] %v331_v4  ;;  %v335_v6 = vld [vmem:[%s2213_s7 + $0x460] sm:$0xff]  ;;  %v337_v7 = vld [vmem:[%s2213_s7 + $0x468] sm:$0xff]  ;;  %334 = vst [vmem:[%s2218_s8 + $0x228] sm:$0xff] %v333_v5 }
  0x3a   : > { %336 = vst [vmem:[%s2218_s8 + $0x230] sm:$0xff] %v335_v6  ;;  %338 = vst [vmem:[%s2218_s8 + $0x238] sm:$0xff] %v337_v7  ;;  %v339_v8 = vld [vmem:[%s2213_s7 + $0x480] sm:$0xff]  ;;  %v341_v9 = vld [vmem:[%s2213_s7 + $0x488] sm:$0xff] }
  0x3b   : > { %v343_v10 = vld [vmem:[%s2213_s7 + $0x4a0] sm:$0xff]  ;;  %340 = vst [vmem:[%s2218_s8 + $0x240] sm:$0xff] %v339_v8  ;;  %342 = vst [vmem:[%s2218_s8 + $0x248] sm:$0xff] %v341_v9  ;;  %v345_v11 = vld [vmem:[%s2213_s7 + $0x4a8] sm:$0xff] }
  0x3c   : > { %344 = vst [vmem:[%s2218_s8 + $0x250] sm:$0xff] %v343_v10  ;;  %v347_v12 = vld [vmem:[%s2213_s7 + $0x4c0] sm:$0xff]  ;;  %v349_v13 = vld [vmem:[%s2213_s7 + $0x4c8] sm:$0xff]  ;;  %346 = vst [vmem:[%s2218_s8 + $0x258] sm:$0xff] %v345_v11 }
  0x3d   : > { %348 = vst [vmem:[%s2218_s8 + $0x260] sm:$0xff] %v347_v12  ;;  %350 = vst [vmem:[%s2218_s8 + $0x268] sm:$0xff] %v349_v13  ;;  %v351_v14 = vld [vmem:[%s2213_s7 + $0x4e0] sm:$0xff]  ;;  %v353_v15 = vld [vmem:[%s2213_s7 + $0x4e8] sm:$0xff] }
  0x3e   : > { %v355_v16 = vld [vmem:[%s2213_s7 + $0x500] sm:$0xff]  ;;  %352 = vst [vmem:[%s2218_s8 + $0x270] sm:$0xff] %v351_v14  ;;  %354 = vst [vmem:[%s2218_s8 + $0x278] sm:$0xff] %v353_v15  ;;  %v357_v17 = vld [vmem:[%s2213_s7 + $0x508] sm:$0xff] }
  0x3f   : > { %356 = vst [vmem:[%s2218_s8 + $0x280] sm:$0xff] %v355_v16  ;;  %v359_v18 = vld [vmem:[%s2213_s7 + $0x520] sm:$0xff]  ;;  %v361_v19 = vld [vmem:[%s2213_s7 + $0x528] sm:$0xff]  ;;  %358 = vst [vmem:[%s2218_s8 + $0x288] sm:$0xff] %v357_v17 }
  0x40   : > { %360 = vst [vmem:[%s2218_s8 + $0x290] sm:$0xff] %v359_v18  ;;  %362 = vst [vmem:[%s2218_s8 + $0x298] sm:$0xff] %v361_v19  ;;  %v363_v20 = vld [vmem:[%s2213_s7 + $0x540] sm:$0xff]  ;;  %v365_v21 = vld [vmem:[%s2213_s7 + $0x548] sm:$0xff] }
  0x41   : > { %v367_v22 = vld [vmem:[%s2213_s7 + $0x560] sm:$0xff]  ;;  %364 = vst [vmem:[%s2218_s8 + $0x2a0] sm:$0xff] %v363_v20  ;;  %366 = vst [vmem:[%s2218_s8 + $0x2a8] sm:$0xff] %v365_v21  ;;  %v369_v23 = vld [vmem:[%s2213_s7 + $0x568] sm:$0xff] }
  0x42   : > { %368 = vst [vmem:[%s2218_s8 + $0x2b0] sm:$0xff] %v367_v22  ;;  %v371_v24 = vld [vmem:[%s2213_s7 + $0x580] sm:$0xff]  ;;  %v373_v25 = vld [vmem:[%s2213_s7 + $0x588] sm:$0xff]  ;;  %370 = vst [vmem:[%s2218_s8 + $0x2b8] sm:$0xff] %v369_v23 }
  0x43   : > { %372 = vst [vmem:[%s2218_s8 + $0x2c0] sm:$0xff] %v371_v24  ;;  %374 = vst [vmem:[%s2218_s8 + $0x2c8] sm:$0xff] %v373_v25  ;;  %v375_v26 = vld [vmem:[%s2213_s7 + $0x5a0] sm:$0xff]  ;;  %v377_v27 = vld [vmem:[%s2213_s7 + $0x5a8] sm:$0xff] }
  0x44   : > { %v379_v28 = vld [vmem:[%s2213_s7 + $0x5c0] sm:$0xff]  ;;  %376 = vst [vmem:[%s2218_s8 + $0x2d0] sm:$0xff] %v375_v26  ;;  %378 = vst [vmem:[%s2218_s8 + $0x2d8] sm:$0xff] %v377_v27  ;;  %v381_v29 = vld [vmem:[%s2213_s7 + $0x5c8] sm:$0xff] }
  0x45   : > { %380 = vst [vmem:[%s2218_s8 + $0x2e0] sm:$0xff] %v379_v28  ;;  %v383_v30 = vld [vmem:[%s2213_s7 + $0x5e0] sm:$0xff]  ;;  %v385_v31 = vld [vmem:[%s2213_s7 + $0x5e8] sm:$0xff]  ;;  %382 = vst [vmem:[%s2218_s8 + $0x2e8] sm:$0xff] %v381_v29 }
  0x46   : > { %384 = vst [vmem:[%s2218_s8 + $0x2f0] sm:$0xff] %v383_v30  ;;  %386 = vst [vmem:[%s2218_s8 + $0x2f8] sm:$0xff] %v385_v31  ;;  %v387_v32 = vld [vmem:[%s2213_s7 + $0x600] sm:$0xff]  ;;  %v389_v33 = vld [vmem:[%s2213_s7 + $0x608] sm:$0xff] }
  0x47   : > { %v391_v34 = vld [vmem:[%s2213_s7 + $0x620] sm:$0xff]  ;;  %388 = vst [vmem:[%s2218_s8 + $0x300] sm:$0xff] %v387_v32  ;;  %390 = vst [vmem:[%s2218_s8 + $0x308] sm:$0xff] %v389_v33  ;;  %v393_v35 = vld [vmem:[%s2213_s7 + $0x628] sm:$0xff] }
  0x48   : > { %392 = vst [vmem:[%s2218_s8 + $0x310] sm:$0xff] %v391_v34  ;;  %v395_v36 = vld [vmem:[%s2213_s7 + $0x640] sm:$0xff]  ;;  %v397_v37 = vld [vmem:[%s2213_s7 + $0x648] sm:$0xff]  ;;  %394 = vst [vmem:[%s2218_s8 + $0x318] sm:$0xff] %v393_v35 }
  0x49   : > { %396 = vst [vmem:[%s2218_s8 + $0x320] sm:$0xff] %v395_v36  ;;  %398 = vst [vmem:[%s2218_s8 + $0x328] sm:$0xff] %v397_v37  ;;  %v399_v38 = vld [vmem:[%s2213_s7 + $0x660] sm:$0xff]  ;;  %v401_v39 = vld [vmem:[%s2213_s7 + $0x668] sm:$0xff] }
  0x4a   : > { %v403_v40 = vld [vmem:[%s2213_s7 + $0x680] sm:$0xff]  ;;  %400 = vst [vmem:[%s2218_s8 + $0x330] sm:$0xff] %v399_v38  ;;  %402 = vst [vmem:[%s2218_s8 + $0x338] sm:$0xff] %v401_v39  ;;  %v405_v41 = vld [vmem:[%s2213_s7 + $0x688] sm:$0xff] }
  0x4b   : > { %404 = vst [vmem:[%s2218_s8 + $0x340] sm:$0xff] %v403_v40  ;;  %v407_v42 = vld [vmem:[%s2213_s7 + $0x6a0] sm:$0xff]  ;;  %v409_v43 = vld [vmem:[%s2213_s7 + $0x6a8] sm:$0xff]  ;;  %406 = vst [vmem:[%s2218_s8 + $0x348] sm:$0xff] %v405_v41 }
  0x4c   : > { %408 = vst [vmem:[%s2218_s8 + $0x350] sm:$0xff] %v407_v42  ;;  %410 = vst [vmem:[%s2218_s8 + $0x358] sm:$0xff] %v409_v43  ;;  %v411_v44 = vld [vmem:[%s2213_s7 + $0x6c0] sm:$0xff]  ;;  %v413_v45 = vld [vmem:[%s2213_s7 + $0x6c8] sm:$0xff] }
  0x4d   : > { %v415_v46 = vld [vmem:[%s2213_s7 + $0x6e0] sm:$0xff]  ;;  %412 = vst [vmem:[%s2218_s8 + $0x360] sm:$0xff] %v411_v44  ;;  %414 = vst [vmem:[%s2218_s8 + $0x368] sm:$0xff] %v413_v45  ;;  %v417_v47 = vld [vmem:[%s2213_s7 + $0x6e8] sm:$0xff] }
  0x4e   : > { %416 = vst [vmem:[%s2218_s8 + $0x370] sm:$0xff] %v415_v46  ;;  %v419_v48 = vld [vmem:[%s2213_s7 + $0x700] sm:$0xff]  ;;  %v421_v49 = vld [vmem:[%s2213_s7 + $0x708] sm:$0xff]  ;;  %418 = vst [vmem:[%s2218_s8 + $0x378] sm:$0xff] %v417_v47 }
  0x4f   : > { %420 = vst [vmem:[%s2218_s8 + $0x380] sm:$0xff] %v419_v48  ;;  %422 = vst [vmem:[%s2218_s8 + $0x388] sm:$0xff] %v421_v49  ;;  %v423_v50 = vld [vmem:[%s2213_s7 + $0x720] sm:$0xff]  ;;  %v425_v51 = vld [vmem:[%s2213_s7 + $0x728] sm:$0xff] }
  0x50   : > { %v427_v52 = vld [vmem:[%s2213_s7 + $0x740] sm:$0xff]  ;;  %424 = vst [vmem:[%s2218_s8 + $0x390] sm:$0xff] %v423_v50  ;;  %426 = vst [vmem:[%s2218_s8 + $0x398] sm:$0xff] %v425_v51  ;;  %v429_v53 = vld [vmem:[%s2213_s7 + $0x748] sm:$0xff] }
  0x51   : > { %428 = vst [vmem:[%s2218_s8 + $0x3a0] sm:$0xff] %v427_v52  ;;  %v431_v54 = vld [vmem:[%s2213_s7 + $0x760] sm:$0xff]  ;;  %v433_v55 = vld [vmem:[%s2213_s7 + $0x768] sm:$0xff]  ;;  %430 = vst [vmem:[%s2218_s8 + $0x3a8] sm:$0xff] %v429_v53 }
  0x52   : > { %432 = vst [vmem:[%s2218_s8 + $0x3b0] sm:$0xff] %v431_v54  ;;  %434 = vst [vmem:[%s2218_s8 + $0x3b8] sm:$0xff] %v433_v55  ;;  %v435_v56 = vld [vmem:[%s2213_s7 + $0x780] sm:$0xff]  ;;  %v437_v57 = vld [vmem:[%s2213_s7 + $0x788] sm:$0xff] }
  0x53   : > { %v439_v58 = vld [vmem:[%s2213_s7 + $0x7a0] sm:$0xff]  ;;  %436 = vst [vmem:[%s2218_s8 + $0x3c0] sm:$0xff] %v435_v56  ;;  %438 = vst [vmem:[%s2218_s8 + $0x3c8] sm:$0xff] %v437_v57  ;;  %v441_v59 = vld [vmem:[%s2213_s7 + $0x7a8] sm:$0xff] }
  0x54   : > { %440 = vst [vmem:[%s2218_s8 + $0x3d0] sm:$0xff] %v439_v58  ;;  %v443_v60 = vld [vmem:[%s2213_s7 + $0x7c0] sm:$0xff]  ;;  %v445_v61 = vld [vmem:[%s2213_s7 + $0x7c8] sm:$0xff]  ;;  %442 = vst [vmem:[%s2218_s8 + $0x3d8] sm:$0xff] %v441_v59 }
  0x55   : > { %444 = vst [vmem:[%s2218_s8 + $0x3e0] sm:$0xff] %v443_v60  ;;  %446 = vst [vmem:[%s2218_s8 + $0x3e8] sm:$0xff] %v445_v61  ;;  %v447_v62 = vld [vmem:[%s2213_s7 + $0x7e0] sm:$0xff]  ;;  %v449_v63 = vld [vmem:[%s2213_s7 + $0x7e8] sm:$0xff] }
  0x56   : > { %448 = vst [vmem:[%s2218_s8 + $0x3f0] sm:$0xff] %v447_v62  ;;  %450 = vst [vmem:[%s2218_s8 + $0x3f8] sm:$0xff] %v449_v63 }
  0x57 PF: > { %p1679_p7 = scmp.ge.s32.totalorder %s2130_s18, 1  ;;  %p463_p8 = scmp.lt.s32.totalorder %s2130_s18, 9 }
  0x59   : > { %p464_p9 = pnand %p1679_p7, %p463_p8 }
  0x5a   : > { %s470_s9 = sand.u32 (!%p464_p9), 1, %s2106_s12   ;;  %s1681_s10 = sshll.u32 (!%p464_p9), %s2114_s14, 2 }
  0x5b   : > { %467 = sbr.rel (%p464_p9) target bundleno = 451 (0x1c3), region = 51  ;;  %s1680_s11 = sshll.u32 (!%p464_p9), %s470_s9, 10 }
  0x5c   : > { %p513_p10 = scmp.lt.s32.totalorder (!%p464_p9), %s1681_s10, 15  ;;  %s1683_s21 = sshll.u32 (!%p464_p9), %s2118_s15, 2 }
  0x5d   : > { %p523_p11 = scmp.lt.s32.totalorder (!%p464_p9), %s1683_s21, 7  ;;  %s2495_s5 = scalar_lea.vmem (!%p464_p9), [#allocation3], %s1680_s11 }
  0x5e   : > { %p1686_p12 = scmp.ne.s32.totalorder (!%p464_p9), %s2114_s14, 0 }
  0x60   : > { %s2688_s10 = smov (!%p513_p10, %s1681_s10), 15  ;;  %s2690_s21 = smov (!%p523_p11, %s1683_s21), 7 }
  0x61   : > { %s1682_s22 = sshll.u32 %s2688_s10, 2  ;;  %s525_s12 = scalar_lea.vmem %s2673_s2, %s2690_s21 }
  0x62   : > { %s2481_s26 = scalar_lea.vmem %s2671_s0, %s1682_s22  ;;  %s1685_s29 = sshll.u32 %s2690_s21, 3 }
  0x63   : > { %s2493_s15 = scalar_lea.vmem %s2674_s3, %s1685_s29  ;;  %540 = sbr.rel (%p1686_p12) target bundleno = 107 (0x6b), region = 59 }
  0x68   : > { %v2132_v0 = vmov 0.0  }
  0x69   : > { %541 = vst [vmem:[#allocation2 + $0x10] sm:$0xff] %v2132_v0  ;;  %542 = vst [vmem:[#allocation2] sm:$0xff] %v2132_v0 }
  0x6a   : > { %543 = vst [vmem:[#allocation2 + $0x18] sm:$0xff] %v2132_v0  ;;  %544 = vst [vmem:[#allocation2 + $0x8] sm:$0xff] %v2132_v0 }
  0x6b PF: > { %v1880_v1 = vld [vmem:[%s2495_s5 + $0xe4] ss:$16 sps:$4 sm:$0xff]   ;;  %v1884_v3 = vld [vmem:[%s2495_s5 + $0xe0] ss:$16 sps:$4 sm:$0xff]   ;;  %v550_v49 = vld [vmem:[%s2481_s26 + $0x8] sm:$0xff]  ;;  %p1819_p13 = scmp.ne.s32.totalorder %s2114_s14, 3 }
  0x6c   : > { %v1882_v2 = vld [vmem:[%s2495_s5 + $0x2e4] ss:$16 sps:$4 sm:$0xff]   ;;  %1333 = vmatprep.subr.bf16.mxu0 %v1880_v1  ;;  %v1885_v4 = vld [vmem:[%s2495_s5 + $0x2e0] ss:$16 sps:$4 sm:$0xff]   ;;  %v1690_v52 = vcombine.high %v550_v49, %v550_v49 }
  0x6d   : > { %1374 = vmatprep.subr.bf16.mxu1 %v1882_v2  ;;  %v1886_v5 = vld [vmem:[%s2495_s5 + $0xc4] ss:$16 sps:$4 sm:$0xff]   ;;  %1334 = vmatpush1.bf16.msra.mxu0 %v1884_v3  ;;  %v1890_v7 = vld [vmem:[%s2495_s5 + $0xc0] ss:$16 sps:$4 sm:$0xff]  }
  0x6e   : > { %1375 = vmatpush1.bf16.msra.mxu1 %v1885_v4  ;;  %v1888_v6 = vld [vmem:[%s2495_s5 + $0x2c4] ss:$16 sps:$4 sm:$0xff]   ;;  %1335 = vmatprep.subr.bf16.mxu0 %v1886_v5  ;;  %v1891_v8 = vld [vmem:[%s2495_s5 + $0x2c0] ss:$16 sps:$4 sm:$0xff]   ;;  %v1982_v5 = vld [vmem:[%s2495_s5 + $0xec] ss:$16 sps:$4 sm:$0xff]  }
  0x6f   : > { %1376 = vmatprep.subr.bf16.mxu1 %v1888_v6  ;;  %v1892_v9 = vld [vmem:[%s2495_s5 + $0xa4] ss:$16 sps:$4 sm:$0xff]   ;;  %v1896_v11 = vld [vmem:[%s2495_s5 + $0xa0] ss:$16 sps:$4 sm:$0xff]   ;;  %1406 = vmatprep.mubr.bf16.mxu1 %v1690_v52  ;;  %v1985_v6 = vld [vmem:[%s2495_s5 + $0x2ec] ss:$16 sps:$4 sm:$0xff]  }
  0x70   : > { %v1894_v10 = vld [vmem:[%s2495_s5 + $0x2a4] ss:$16 sps:$4 sm:$0xff]   ;;  %v1897_v12 = vld [vmem:[%s2495_s5 + $0x2a0] ss:$16 sps:$4 sm:$0xff]  }
  0x71   : > { %1336 = vmatpush1.bf16.msra.mxu0 %v1890_v7  ;;  %v1898_v13 = vld [vmem:[%s2495_s5 + $0x84] ss:$16 sps:$4 sm:$0xff]   ;;  %v1902_v15 = vld [vmem:[%s2495_s5 + $0x80] ss:$16 sps:$4 sm:$0xff]  }
  0x72   : > { %1377 = vmatpush1.bf16.msra.mxu1 %v1891_v8  ;;  %1337 = vmatprep.subr.bf16.mxu0 %v1892_v9  ;;  %v1900_v14 = vld [vmem:[%s2495_s5 + $0x284] ss:$16 sps:$4 sm:$0xff]   ;;  %v1903_v16 = vld [vmem:[%s2495_s5 + $0x280] ss:$16 sps:$4 sm:$0xff]   ;;  %v2571_v8 = vcombine.low %v550_v49, %v550_v49  ;;  %v1980_v9 = vld [vmem:[%s2495_s5 + $0xe8] ss:$16 sps:$4 sm:$0xff]  }
  0x73   : > { %1378 = vmatprep.subr.bf16.mxu1 %v1894_v10  ;;  %v1904_v17 = vld [vmem:[%s2495_s5 + $0x64] ss:$16 sps:$4 sm:$0xff]   ;;  %v1908_v19 = vld [vmem:[%s2495_s5 + $0x60] ss:$16 sps:$4 sm:$0xff]   ;;  %v1983_v10 = vld [vmem:[%s2495_s5 + $0x2e8] ss:$16 sps:$4 sm:$0xff]  }
  0x74   : > { %v1906_v18 = vld [vmem:[%s2495_s5 + $0x264] ss:$16 sps:$4 sm:$0xff]   ;;  %v1909_v20 = vld [vmem:[%s2495_s5 + $0x260] ss:$16 sps:$4 sm:$0xff]   ;;  %v2040_v49 = vld [vmem:[%s2495_s5 + $0x1a8] ss:$16 sps:$4 sm:$0xff]  }
  0x75   : > { %1338 = vmatpush1.bf16.msra.mxu0 %v1896_v11  ;;  %v1910_v21 = vld [vmem:[%s2495_s5 + $0x44] ss:$16 sps:$4 sm:$0xff]   ;;  %v1914_v23 = vld [vmem:[%s2495_s5 + $0x40] ss:$16 sps:$4 sm:$0xff]   ;;  %v1988_v11 = vld [vmem:[%s2495_s5 + $0xcc] ss:$16 sps:$4 sm:$0xff]  }
  0x76   : > { %1379 = vmatpush1.bf16.msra.mxu1 %v1897_v12  ;;  %1339 = vmatprep.subr.bf16.mxu0 %v1898_v13  ;;  %v1912_v22 = vld [vmem:[%s2495_s5 + $0x244] ss:$16 sps:$4 sm:$0xff]   ;;  %v1915_v24 = vld [vmem:[%s2495_s5 + $0x240] ss:$16 sps:$4 sm:$0xff]   ;;  %v1991_v12 = vld [vmem:[%s2495_s5 + $0x2cc] ss:$16 sps:$4 sm:$0xff]  }
  0x77   : > { %1380 = vmatprep.subr.bf16.mxu1 %v1900_v14  ;;  %v1916_v25 = vld [vmem:[%s2495_s5 + $0x24] ss:$16 sps:$4 sm:$0xff]   ;;  %v1920_v27 = vld [vmem:[%s2495_s5 + $0x20] ss:$16 sps:$4 sm:$0xff]   ;;  %v1986_v13 = vld [vmem:[%s2495_s5 + $0xc8] ss:$16 sps:$4 sm:$0xff]  }
  0x78   : > { %v1918_v26 = vld [vmem:[%s2495_s5 + $0x224] ss:$16 sps:$4 sm:$0xff]   ;;  %v1921_v28 = vld [vmem:[%s2495_s5 + $0x220] ss:$16 sps:$4 sm:$0xff]   ;;  %v1989_v14 = vld [vmem:[%s2495_s5 + $0x2c8] ss:$16 sps:$4 sm:$0xff]  }
  0x79   : > { %1340 = vmatpush1.bf16.msra.mxu0 %v1902_v15  ;;  %v1922_v29 = vld [vmem:[%s2495_s5 + $0x4] ss:$16 sps:$4 sm:$0xff]   ;;  %v1926_v31 = vld [vmem:[%s2495_s5] ss:$16 sps:$4 sm:$0xff]   ;;  %v1994_v15 = vld [vmem:[%s2495_s5 + $0xac] ss:$16 sps:$4 sm:$0xff]  }
  0x7a   : > { %1381 = vmatpush1.bf16.msra.mxu1 %v1903_v16  ;;  %1341 = vmatprep.subr.bf16.mxu0 %v1904_v17  ;;  %v1924_v30 = vld [vmem:[%s2495_s5 + $0x204] ss:$16 sps:$4 sm:$0xff]   ;;  %v1927_v32 = vld [vmem:[%s2495_s5 + $0x200] ss:$16 sps:$4 sm:$0xff]   ;;  %v1997_v16 = vld [vmem:[%s2495_s5 + $0x2ac] ss:$16 sps:$4 sm:$0xff]  }
  0x7b   : > { %1382 = vmatprep.subr.bf16.mxu1 %v1906_v18  ;;  %v1928_v33 = vld [vmem:[%s2495_s5 + $0x1e4] ss:$16 sps:$4 sm:$0xff]   ;;  %v1932_v35 = vld [vmem:[%s2495_s5 + $0x1e0] ss:$16 sps:$4 sm:$0xff]   ;;  %v1992_v17 = vld [vmem:[%s2495_s5 + $0xa8] ss:$16 sps:$4 sm:$0xff]  }
  0x7c   : > { %v1930_v34 = vld [vmem:[%s2495_s5 + $0x3e4] ss:$16 sps:$4 sm:$0xff]   ;;  %v1933_v36 = vld [vmem:[%s2495_s5 + $0x3e0] ss:$16 sps:$4 sm:$0xff]   ;;  %v1995_v18 = vld [vmem:[%s2495_s5 + $0x2a8] ss:$16 sps:$4 sm:$0xff]  }
  0x7d   : > { %1342 = vmatpush1.bf16.msra.mxu0 %v1908_v19  ;;  %v1934_v37 = vld [vmem:[%s2495_s5 + $0x1c4] ss:$16 sps:$4 sm:$0xff]   ;;  %v1938_v39 = vld [vmem:[%s2495_s5 + $0x1c0] ss:$16 sps:$4 sm:$0xff]   ;;  %v2000_v19 = vld [vmem:[%s2495_s5 + $0x8c] ss:$16 sps:$4 sm:$0xff]  }
  0x7e   : > { %1383 = vmatpush1.bf16.msra.mxu1 %v1909_v20  ;;  %1343 = vmatprep.subr.bf16.mxu0 %v1910_v21  ;;  %v1936_v38 = vld [vmem:[%s2495_s5 + $0x3c4] ss:$16 sps:$4 sm:$0xff]   ;;  %v1939_v40 = vld [vmem:[%s2495_s5 + $0x3c0] ss:$16 sps:$4 sm:$0xff]   ;;  %v2003_v20 = vld [vmem:[%s2495_s5 + $0x28c] ss:$16 sps:$4 sm:$0xff]  }
  0x7f   : > { %1384 = vmatprep.subr.bf16.mxu1 %v1912_v22  ;;  %v1940_v41 = vld [vmem:[%s2495_s5 + $0x1a4] ss:$16 sps:$4 sm:$0xff]   ;;  %v1944_v43 = vld [vmem:[%s2495_s5 + $0x1a0] ss:$16 sps:$4 sm:$0xff]   ;;  %v1998_v21 = vld [vmem:[%s2495_s5 + $0x88] ss:$16 sps:$4 sm:$0xff]  }
  0x80   : > { %v1942_v42 = vld [vmem:[%s2495_s5 + $0x3a4] ss:$16 sps:$4 sm:$0xff]   ;;  %v1945_v44 = vld [vmem:[%s2495_s5 + $0x3a0] ss:$16 sps:$4 sm:$0xff]   ;;  %v2001_v22 = vld [vmem:[%s2495_s5 + $0x288] ss:$16 sps:$4 sm:$0xff]  }
  0x81   : > { %1344 = vmatpush1.bf16.msra.mxu0 %v1914_v23  ;;  %v1946_v45 = vld [vmem:[%s2495_s5 + $0x184] ss:$16 sps:$4 sm:$0xff]   ;;  %v1950_v50 = vld [vmem:[%s2495_s5 + $0x180] ss:$16 sps:$4 sm:$0xff]   ;;  %v2006_v23 = vld [vmem:[%s2495_s5 + $0x6c] ss:$16 sps:$4 sm:$0xff]  }
  0x82   : > { %1385 = vmatpush1.bf16.msra.mxu1 %v1915_v24  ;;  %1345 = vmatprep.subr.bf16.mxu0 %v1916_v25  ;;  %v1948_v46 = vld [vmem:[%s2495_s5 + $0x384] ss:$16 sps:$4 sm:$0xff]   ;;  %v1951_v51 = vld [vmem:[%s2495_s5 + $0x380] ss:$16 sps:$4 sm:$0xff]   ;;  %v2009_v24 = vld [vmem:[%s2495_s5 + $0x26c] ss:$16 sps:$4 sm:$0xff]  }
  0x83   : > { %1386 = vmatprep.subr.bf16.mxu1 %v1918_v26  ;;  %v549_v47 = vld [vmem:[%s2481_s26] sm:$0xff]  ;;  %v2004_v25 = vld [vmem:[%s2495_s5 + $0x68] ss:$16 sps:$4 sm:$0xff]  }
  0x84   : > { %v2545_v48 = vcombine.high %v549_v47, %v549_v47  ;;  %v1952_v53 = vld [vmem:[%s2495_s5 + $0x164] ss:$16 sps:$4 sm:$0xff]   ;;  %v1956_v55 = vld [vmem:[%s2495_s5 + $0x160] ss:$16 sps:$4 sm:$0xff]   ;;  %v2569_v7 = vcombine.low %v549_v47, %v549_v47  ;;  %v2007_v26 = vld [vmem:[%s2495_s5 + $0x268] ss:$16 sps:$4 sm:$0xff]  }
  0x85   : > { %1346 = vmatpush1.bf16.msra.mxu0 %v1920_v27  ;;  %v1954_v54 = vld [vmem:[%s2495_s5 + $0x364] ss:$16 sps:$4 sm:$0xff]   ;;  %v1957_v56 = vld [vmem:[%s2495_s5 + $0x360] ss:$16 sps:$4 sm:$0xff]   ;;  %v2012_v27 = vld [vmem:[%s2495_s5 + $0x4c] ss:$16 sps:$4 sm:$0xff]  }
  0x86   : > { %1387 = vmatpush1.bf16.msra.mxu1 %v1921_v28  ;;  %1347 = vmatprep.subr.bf16.mxu0 %v1922_v29  ;;  %v1958_v57 = vld [vmem:[%s2495_s5 + $0x144] ss:$16 sps:$4 sm:$0xff]   ;;  %v1962_v59 = vld [vmem:[%s2495_s5 + $0x140] ss:$16 sps:$4 sm:$0xff]   ;;  %v2015_v28 = vld [vmem:[%s2495_s5 + $0x24c] ss:$16 sps:$4 sm:$0xff]  }
  0x87   : > { %1388 = vmatprep.subr.bf16.mxu1 %v1924_v30  ;;  %1365 = vmatprep.mubr.bf16.mxu0 %v2545_v48  ;;  %v1960_v58 = vld [vmem:[%s2495_s5 + $0x344] ss:$16 sps:$4 sm:$0xff]   ;;  %v1963_v60 = vld [vmem:[%s2495_s5 + $0x340] ss:$16 sps:$4 sm:$0xff]   ;;  %v2010_v29 = vld [vmem:[%s2495_s5 + $0x48] ss:$16 sps:$4 sm:$0xff]  }
  0x88   : > { %v1964_v61 = vld [vmem:[%s2495_s5 + $0x124] ss:$16 sps:$4 sm:$0xff]   ;;  %v1968_v63 = vld [vmem:[%s2495_s5 + $0x120] ss:$16 sps:$4 sm:$0xff]   ;;  %v2013_v30 = vld [vmem:[%s2495_s5 + $0x248] ss:$16 sps:$4 sm:$0xff]  }
  0x89   : > { %1348 = vmatpush1.bf16.msra.mxu0 %v1926_v31  ;;  %v1966_v62 = vld [vmem:[%s2495_s5 + $0x324] ss:$16 sps:$4 sm:$0xff]   ;;  %v1969_v0 = vld [vmem:[%s2495_s5 + $0x320] ss:$16 sps:$4 sm:$0xff]   ;;  %v2018_v31 = vld [vmem:[%s2495_s5 + $0x2c] ss:$16 sps:$4 sm:$0xff]  }
  0x8a   : > { %1389 = vmatpush1.bf16.msra.mxu1 %v1927_v32  ;;  %1349 = vmatprep.subr.bf16.mxu0 %v1928_v33  ;;  %v1970_v1 = vld [vmem:[%s2495_s5 + $0x104] ss:$16 sps:$4 sm:$0xff]   ;;  %v1974_v3 = vld [vmem:[%s2495_s5 + $0x100] ss:$16 sps:$4 sm:$0xff]   ;;  %v2021_v32 = vld [vmem:[%s2495_s5 + $0x22c] ss:$16 sps:$4 sm:$0xff]  }
  0x8b   : > { %1390 = vmatprep.subr.bf16.mxu1 %v1930_v34  ;;  %v1972_v2 = vld [vmem:[%s2495_s5 + $0x304] ss:$16 sps:$4 sm:$0xff]   ;;  %v1975_v4 = vld [vmem:[%s2495_s5 + $0x300] ss:$16 sps:$4 sm:$0xff]   ;;  %v2016_v33 = vld [vmem:[%s2495_s5 + $0x28] ss:$16 sps:$4 sm:$0xff]  }
  0x8c   : > { %v2019_v34 = vld [vmem:[%s2495_s5 + $0x228] ss:$16 sps:$4 sm:$0xff]   ;;  %v2042_v47 = vld [vmem:[%s2495_s5 + $0x1ac] ss:$16 sps:$4 sm:$0xff]  }
  0x8d   : > { %1350 = vmatpush2.bf16.msra.mxu0 %v1932_v35  ;;  %v2024_v35 = vld [vmem:[%s2495_s5 + $0xc] ss:$16 sps:$4 sm:$0xff]  }
  0x8e   : > { %1391 = vmatpush2.bf16.msra.mxu1 %v1933_v36  ;;  %1351 = vmatprep.subr.bf16.mxu0 %v1934_v37  ;;  %v2027_v36 = vld [vmem:[%s2495_s5 + $0x20c] ss:$16 sps:$4 sm:$0xff]   ;;  %v2022_v37 = vld [vmem:[%s2495_s5 + $0x8] ss:$16 sps:$4 sm:$0xff]  }
  0x8f   : > { %1392 = vmatprep.subr.bf16.mxu1 %v1936_v38  ;;  %v2025_v38 = vld [vmem:[%s2495_s5 + $0x208] ss:$16 sps:$4 sm:$0xff]  }
  0x91   : > { %1352 = vmatpush2.bf16.msra.mxu0 %v1938_v39  ;;  %v2030_v39 = vld [vmem:[%s2495_s5 + $0x1ec] ss:$16 sps:$4 sm:$0xff]  }
  0x92   : > { %1393 = vmatpush2.bf16.msra.mxu1 %v1939_v40  ;;  %1353 = vmatprep.subr.bf16.mxu0 %v1940_v41  ;;  %v2033_v40 = vld [vmem:[%s2495_s5 + $0x3ec] ss:$16 sps:$4 sm:$0xff]   ;;  %v2028_v41 = vld [vmem:[%s2495_s5 + $0x1e8] ss:$16 sps:$4 sm:$0xff]  }
  0x93   : > { %1394 = vmatprep.subr.bf16.mxu1 %v1942_v42  ;;  %v2031_v42 = vld [vmem:[%s2495_s5 + $0x3e8] ss:$16 sps:$4 sm:$0xff]  }
  0x95   : > { %1354 = vmatpush2.bf16.msra.mxu0 %v1944_v43  ;;  %v2036_v43 = vld [vmem:[%s2495_s5 + $0x1cc] ss:$16 sps:$4 sm:$0xff]  }
  0x96   : > { %1395 = vmatpush2.bf16.msra.mxu1 %v1945_v44  ;;  %1355 = vmatprep.subr.bf16.mxu0 %v1946_v45  ;;  %v2039_v44 = vld [vmem:[%s2495_s5 + $0x3cc] ss:$16 sps:$4 sm:$0xff]   ;;  %v2034_v45 = vld [vmem:[%s2495_s5 + $0x1c8] ss:$16 sps:$4 sm:$0xff]  }
  0x97   : > { %1396 = vmatprep.subr.bf16.mxu1 %v1948_v46  ;;  %v2037_v46 = vld [vmem:[%s2495_s5 + $0x3c8] ss:$16 sps:$4 sm:$0xff]  }
  0x99   : > { %1356 = vmatpush2.bf16.msra.mxu0 %v1950_v50  ;;  %v2043_v50 = vld [vmem:[%s2495_s5 + $0x3a8] ss:$16 sps:$4 sm:$0xff]  }
  0x9a   : > { %1397 = vmatpush2.bf16.msra.mxu1 %v1951_v51  ;;  %1357 = vmatprep.subr.bf16.mxu0 %v1952_v53  ;;  %v2048_v51 = vld [vmem:[%s2495_s5 + $0x18c] ss:$16 sps:$4 sm:$0xff]   ;;  %v2046_v53 = vld [vmem:[%s2495_s5 + $0x188] ss:$16 sps:$4 sm:$0xff]  }
  0x9b   : > { %1398 = vmatprep.subr.bf16.mxu1 %v1954_v54  ;;  %v2049_v54 = vld [vmem:[%s2495_s5 + $0x388] ss:$16 sps:$4 sm:$0xff]  }
  0x9d   : > { %1358 = vmatpush2.bf16.msra.mxu0 %v1956_v55  ;;  %v2054_v55 = vld [vmem:[%s2495_s5 + $0x16c] ss:$16 sps:$4 sm:$0xff]  }
  0x9e   : > { %1399 = vmatpush2.bf16.msra.mxu1 %v1957_v56  ;;  %1359 = vmatprep.subr.bf16.mxu0 %v1958_v57  ;;  %v2057_v56 = vld [vmem:[%s2495_s5 + $0x36c] ss:$16 sps:$4 sm:$0xff]   ;;  %v2052_v57 = vld [vmem:[%s2495_s5 + $0x168] ss:$16 sps:$4 sm:$0xff]  }
  0x9f   : > { %1400 = vmatprep.subr.bf16.mxu1 %v1960_v58  ;;  %v2055_v58 = vld [vmem:[%s2495_s5 + $0x368] ss:$16 sps:$4 sm:$0xff]  }
  0xa1   : > { %1360 = vmatpush2.bf16.msra.mxu0 %v1962_v59  ;;  %v2060_v59 = vld [vmem:[%s2495_s5 + $0x14c] ss:$16 sps:$4 sm:$0xff]  }
  0xa2   : > { %1401 = vmatpush2.bf16.msra.mxu1 %v1963_v60  ;;  %1361 = vmatprep.subr.bf16.mxu0 %v1964_v61  ;;  %v2063_v60 = vld [vmem:[%s2495_s5 + $0x34c] ss:$16 sps:$4 sm:$0xff]   ;;  %v2058_v61 = vld [vmem:[%s2495_s5 + $0x148] ss:$16 sps:$4 sm:$0xff]  }
  0xa3   : > { %1402 = vmatprep.subr.bf16.mxu1 %v1966_v62  ;;  %v2061_v62 = vld [vmem:[%s2495_s5 + $0x348] ss:$16 sps:$4 sm:$0xff]  }
  0xa5   : > { %1362 = vmatpush2.bf16.msra.mxu0 %v1968_v63  ;;  %v2066_v63 = vld [vmem:[%s2495_s5 + $0x12c] ss:$16 sps:$4 sm:$0xff]  }
  0xa6   : > { %1403 = vmatpush2.bf16.msra.mxu1 %v1969_v0  ;;  %1363 = vmatprep.subr.bf16.mxu0 %v1970_v1  ;;  %v2069_v0 = vld [vmem:[%s2495_s5 + $0x32c] ss:$16 sps:$4 sm:$0xff]   ;;  %v2064_v1 = vld [vmem:[%s2495_s5 + $0x128] ss:$16 sps:$4 sm:$0xff]  }
  0xa7   : > { %1404 = vmatprep.subr.bf16.mxu1 %v1972_v2  ;;  %v2067_v2 = vld [vmem:[%s2495_s5 + $0x328] ss:$16 sps:$4 sm:$0xff]  }
  0xa9   : > { %1364 = vmatpush2.bf16.msra.mxu0 %v1974_v3  ;;  %v2072_v3 = vld [vmem:[%s2495_s5 + $0x10c] ss:$16 sps:$4 sm:$0xff]  }
  0xaa   : > { %1405 = vmatpush2.bf16.msra.mxu1 %v1975_v4  ;;  %1415 = vmatprep.subr.bf16.mxu0 %v1982_v5  ;;  %v2075_v4 = vld [vmem:[%s2495_s5 + $0x30c] ss:$16 sps:$4 sm:$0xff]   ;;  %v2070_v5 = vld [vmem:[%s2495_s5 + $0x108] ss:$16 sps:$4 sm:$0xff]  }
  0xab   : > { %1456 = vmatprep.subr.bf16.mxu1 %v1985_v6  ;;  %v2073_v6 = vld [vmem:[%s2495_s5 + $0x308] ss:$16 sps:$4 sm:$0xff]  }
  0xac   : > { %1366 = vmatmul.mubr.bf16.vlgmr.msra.gmra.mxu0 %v2569_v7 }
  0xad   : > { %1407 = vmatmul.mubr.bf16.vlgmr.msra.gmra.mxu1 %v2571_v8  ;;  %1416 = vmatpush1.bf16.msra.mxu0 %v1980_v9 }
  0xae   : > { %1457 = vmatpush1.bf16.msra.mxu1 %v1983_v10  ;;  %1417 = vmatprep.subr.bf16.mxu0 %v1988_v11  ;;  %v545_v10 = vld [vmem:[#allocation2 + $0x10] sm:$0xff] }
  0xaf   : > { %1458 = vmatprep.subr.bf16.mxu1 %v1991_v12  ;;  %1447 = vmatprep.mubr.bf16.mxu0 %v2545_v48  ;;  %v2045_v48 = vld [vmem:[%s2495_s5 + $0x3ac] ss:$16 sps:$4 sm:$0xff]  }
  0xb0   : > { %1488 = vmatprep.mubr.bf16.mxu1 %v1690_v52  ;;  %v2051_v52 = vld [vmem:[%s2495_s5 + $0x38c] ss:$16 sps:$4 sm:$0xff]  }
  0xb1   : > { %1418 = vmatpush1.bf16.msra.mxu0 %v1986_v13 }
  0xb2   : > { %1459 = vmatpush1.bf16.msra.mxu1 %v1989_v14  ;;  %1419 = vmatprep.subr.bf16.mxu0 %v1994_v15  ;;  %v546_v14 = vld [vmem:[#allocation2] sm:$0xff] }
  0xb3   : > { %1460 = vmatprep.subr.bf16.mxu1 %v1997_v16 }
  0xb5   : > { %1420 = vmatpush1.bf16.msra.mxu0 %v1992_v17 }
  0xb6   : > { %1461 = vmatpush1.bf16.msra.mxu1 %v1995_v18  ;;  %1421 = vmatprep.subr.bf16.mxu0 %v2000_v19 }
  0xb7   : > { %1462 = vmatprep.subr.bf16.mxu1 %v2003_v20 }
  0xb9   : > { %1422 = vmatpush1.bf16.msra.mxu0 %v1998_v21 }
  0xba   : > { %1463 = vmatpush1.bf16.msra.mxu1 %v2001_v22  ;;  %1423 = vmatprep.subr.bf16.mxu0 %v2006_v23 }
  0xbb   : > { %1464 = vmatprep.subr.bf16.mxu1 %v2009_v24 }
  0xbd   : > { %1424 = vmatpush1.bf16.msra.mxu0 %v2004_v25 }
  0xbe   : > { %1465 = vmatpush1.bf16.msra.mxu1 %v2007_v26  ;;  %1425 = vmatprep.subr.bf16.mxu0 %v2012_v27  ;;  %v548_v26 = vld [vmem:[#allocation2 + $0x8] sm:$0xff] }
  0xbf   : > { %1466 = vmatprep.subr.bf16.mxu1 %v2015_v28 }
  0xc1   : > { %1426 = vmatpush1.bf16.msra.mxu0 %v2010_v29 }
  0xc2   : > { %1467 = vmatpush1.bf16.msra.mxu1 %v2013_v30  ;;  %1427 = vmatprep.subr.bf16.mxu0 %v2018_v31 }
  0xc3   : > { %1468 = vmatprep.subr.bf16.mxu1 %v2021_v32 }
  0xc5   : > { %1428 = vmatpush1.bf16.msra.mxu0 %v2016_v33 }
  0xc6   : > { %1469 = vmatpush1.bf16.msra.mxu1 %v2019_v34  ;;  %1429 = vmatprep.subr.bf16.mxu0 %v2024_v35 }
  0xc7   : > { %1470 = vmatprep.subr.bf16.mxu1 %v2027_v36 }
  0xc9   : > { %1430 = vmatpush1.bf16.msra.mxu0 %v2022_v37 }
  0xca   : > { %1471 = vmatpush1.bf16.msra.mxu1 %v2025_v38  ;;  %1431 = vmatprep.subr.bf16.mxu0 %v2030_v39 }
  0xcb   : > { %1472 = vmatprep.subr.bf16.mxu1 %v2033_v40 }
  0xcd   : > { %1432 = vmatpush2.bf16.msra.mxu0 %v2028_v41 }
  0xce   : > { %1473 = vmatpush2.bf16.msra.mxu1 %v2031_v42  ;;  %1433 = vmatprep.subr.bf16.mxu0 %v2036_v43 }
  0xcf   : > { %1474 = vmatprep.subr.bf16.mxu1 %v2039_v44 }
  0xd1   : > { %1434 = vmatpush2.bf16.msra.mxu0 %v2034_v45 }
  0xd2   : > { %1475 = vmatpush2.bf16.msra.mxu1 %v2037_v46  ;;  %1435 = vmatprep.subr.bf16.mxu0 %v2042_v47 }
  0xd3   : > { %1476 = vmatprep.subr.bf16.mxu1 %v2045_v48 }
  0xd5   : > { %1436 = vmatpush2.bf16.msra.mxu0 %v2040_v49 }
  0xd6   : > { %1477 = vmatpush2.bf16.msra.mxu1 %v2043_v50  ;;  %1437 = vmatprep.subr.bf16.mxu0 %v2048_v51 }
  0xd7   : > { %1478 = vmatprep.subr.bf16.mxu1 %v2051_v52 }
  0xd9   : > { %1438 = vmatpush2.bf16.msra.mxu0 %v2046_v53 }
  0xda   : > { %1479 = vmatpush2.bf16.msra.mxu1 %v2049_v54  ;;  %1439 = vmatprep.subr.bf16.mxu0 %v2054_v55 }
  0xdb   : > { %1480 = vmatprep.subr.bf16.mxu1 %v2057_v56 }
  0xdd   : > { %1440 = vmatpush2.bf16.msra.mxu0 %v2052_v57 }
  0xde   : > { %1481 = vmatpush2.bf16.msra.mxu1 %v2055_v58  ;;  %1441 = vmatprep.subr.bf16.mxu0 %v2060_v59 }
  0xdf   : > { %1482 = vmatprep.subr.bf16.mxu1 %v2063_v60 }
  0xe1   : > { %1442 = vmatpush2.bf16.msra.mxu0 %v2058_v61 }
  0xe2   : > { %1483 = vmatpush2.bf16.msra.mxu1 %v2061_v62  ;;  %1443 = vmatprep.subr.bf16.mxu0 %v2066_v63 }
  0xe3   : > { %1484 = vmatprep.subr.bf16.mxu1 %v2069_v0 }
  0xe5   : > { %1444 = vmatpush2.bf16.msra.mxu0 %v2064_v1 }
  0xe6   : > { %1485 = vmatpush2.bf16.msra.mxu1 %v2067_v2  ;;  %1445 = vmatprep.subr.bf16.mxu0 %v2072_v3 }
  0xe7   : > { %1486 = vmatprep.subr.bf16.mxu1 %v2075_v4 }
  0xe9   : > { %1446 = vmatpush2.bf16.msra.mxu0 %v2070_v5 }
  0xea   : > { %1487 = vmatpush2.bf16.msra.mxu1 %v2073_v6 }
  0xec   : > { %1448 = vmatmul.mubr.bf16.vlgmr.msra.gmra.mxu0 %v2569_v7  ;;  %v547_v7 = vld [vmem:[#allocation2 + $0x18] sm:$0xff] }
  0xed   : > { %1489 = vmatmul.mubr.bf16.vlgmr.msra.gmra.mxu1 %v2571_v8 }
 0x16c   : > { %v1367_v9 = vpop.f32.mrf.mxu0 }
 0x16d   : > { %v1408_v11 = vpop.f32.mrf.mxu1 }
 0x16e   : > { %v1409_v12 = vadd.f32 %v1408_v11, %v1367_v9  ;;  %v1369_v13 = vpop.f32.mrf.mxu0 }
 0x16f   : > { %v1410_v15 = vpop.f32.mrf.mxu1 }
 0x170   : > { %v1497_v16 = vadd.f32 %v1409_v12, %v545_v10  ;;  %v1411_v17 = vadd.f32 %v1410_v15, %v1369_v13  ;;  %v1371_v18 = vpop.f32.mrf.mxu0 }
 0x171   : > { %v1412_v19 = vpop.f32.mrf.mxu1 }
 0x172   : > { %1501 = vst [vmem:[#allocation2 + $0x10] sm:$0xff] %v1497_v16  ;;  %v1498_v20 = vadd.f32 %v1411_v17, %v546_v14  ;;  %v1372_v21 = vpop.f32.mrf.mxu0 }
 0x173   : > { %v1413_v22 = vpop.f32.mrf.mxu1 }
 0x174   : > { %1502 = vst [vmem:[#allocation2] sm:$0xff] %v1498_v20 }
 0x1ac   : > { %v1449_v23 = vpop.f32.mrf.mxu0 }
 0x1ad   : > { %v1490_v24 = vpop.f32.mrf.mxu1 }
 0x1ae   : > { %v1491_v8 = vadd.f32 %v1490_v24, %v1449_v23  ;;  %v1451_v25 = vpop.f32.mrf.mxu0 }
 0x1af   : > { %v1492_v27 = vpop.f32.mrf.mxu1 }
 0x1b0   : > { %v1499_v28 = vadd.f32 %v1491_v8, %v547_v7  ;;  %v1493_v29 = vadd.f32 %v1492_v27, %v1451_v25  ;;  %v1453_v30 = vpop.f32.mrf.mxu0  ;;  %1508 = sbr.rel (%p1819_p13) target bundleno = 451 (0x1c3), region = 63 }
 0x1b1   : > { %v1494_v31 = vpop.f32.mrf.mxu1 }
 0x1b2   : > { %1503 = vst [vmem:[#allocation2 + $0x18] sm:$0xff] %v1499_v28  ;;  %v1500_v32 = vadd.f32 %v1493_v29, %v548_v26  ;;  %v1454_v33 = vpop.f32.mrf.mxu0 }
 0x1b3   : > { %v1495_v34 = vpop.f32.mrf.mxu1 }
 0x1b4   : > { %1504 = vst [vmem:[#allocation2 + $0x8] sm:$0xff] %v1500_v32 }
 0x1b5   : > { %v1515_v35 = vlaneseq  ;;  %v1513_v37 = vld [vmem:[%s525_s12] sm:$0xf]  ;;  %v1509_v38 = vld [vmem:[#allocation2 + $0x10] sm:$0xff] }
 0x1b6   : > { %v1510_v43 = vld [vmem:[#allocation2] sm:$0xff] }
 0x1b7   : > { %v1516_v36 = vshrl.u32 %v1515_v35, 7 }
 0x1b9   : > { %v1517_v39 = vsub.s32 0, %v1516_v36  ;;  %v1521_v40 = vsub.s32 1, %v1516_v36  ;;  %v1525_v41 = vsub.s32 2, %v1516_v36  ;;  %v1529_v42 = vsub.s32 3, %v1516_v36  ;;  %v1511_v44 = vld [vmem:[#allocation2 + $0x18] sm:$0xff] }
 0x1bb   : > { %v1512_v45 = vld [vmem:[#allocation2 + $0x8] sm:$0xff]  ;;  %v1518_v46 = vrot.slane %v1513_v37, %v1517_v39  ;;  %v1522_v47 = vrot.slane %v1513_v37, %v1521_v40  ;;  %v1526_v48 = vrot.slane %v1513_v37, %v1525_v41  ;;  %v1530_v49 = vrot.slane %v1513_v37, %v1529_v42 }
 0x1bd   : > { %v1535_v50 = vadd.f32 %v1518_v46, %v1509_v38  ;;  %v1536_v51 = vadd.f32 %v1522_v47, %v1510_v43  ;;  %v1537_v52 = vadd.f32 %v1526_v48, %v1511_v44  ;;  %v1538_v53 = vadd.f32 %v1530_v49, %v1512_v45 }
 0x1bf   : > { %v1539_v54 = vmax.f32 %v1535_v50, 0.0  ;;  %v1540_v55 = vmax.f32 %v1536_v51, 0.0  ;;  %v1541_v56 = vmax.f32 %v1537_v52, 0.0  ;;  %v1542_v57 = vmax.f32 %v1538_v53, 0.0 }
 0x1c1   : > { %1543 = vst [vmem:[%s2493_s15] sm:$0xff] %v1539_v54  ;;  %1544 = vst [vmem:[%s2493_s15 + $0x8] sm:$0xff] %v1540_v55 }
 0x1c2   : > { %1545 = vst [vmem:[%s2493_s15 + $0x10] sm:$0xff] %v1541_v56  ;;  %1546 = vst [vmem:[%s2493_s15 + $0x18] sm:$0xff] %v1542_v57 }
 0x1c3 PF: > { %s13_s18 = sadd.s32 1, %s2130_s18   ;;  %s2675_s12 = smov %s2110_s13 }
 0x1c4   : > { %p10_p0 = scmp.ge.s32.totalorder %s13_s18, 10   ;;  %s2676_s13 = smov %s2204_s25 }
 0x1c5   : > { %s2677_s14 = smov %s2122_s16  ;;  %s2678_s15 = smov %s2126_s17 }
 0x1c6   : > { %s2679_s16 = smov %s2682_s19  ;;  %s2680_s17 = smov %s2686_s20 }
 0x1c7   :  { %12 = sbr.rel (!%p10_p0) target bundleno = 4 (0x4), region = 104 }

// kernel: denoising_autoencoder.13
= control target key start
LH: loop header
LB: loop body
LE: loop exit
PB: predicated region body
PF: predicated region fallthrough
CT: control target
= control target key end

     0   :  { %s2022_s12 = smov 0   ;;  %s2024_s13 = smov 0   ;;  %s2298_s0 = inlined_call_operand.vmem [shape: bf16[24,1024], index: 0, kind: input, shape index: {}]   ;;  %s2299_s1 = inlined_call_operand.vmem [shape: bf16[1024,512], index: 1, kind: input, shape index: {}]   ;;  %s2300_s2 = inlined_call_operand.vmem [shape: f32[1,512], index: 2, kind: input, shape index: {}]   ;;  %s2301_s3 = inlined_call_operand.vmem [shape: f32[24,512], index: 3, kind: output, shape index: {}]  }
   0x1   :  { %s2026_s14 = smov 0   ;;  %s2028_s15 = smov 0  }
   0x2   :  { %s2030_s16 = smov 0  }
   0x3 LB: > { %s25_s17 = sadd.s32 1, %s1995_s15  ;;  %p48_p1 = scmp.ne.s32.totalorder %s1987_s13, %s1983_s12  ;;  %s1999_s16 = sphi %s2030_s16, %s13_s16   ;;  %s1995_s15 = sphi %s2028_s15, %s2305_s15   ;;  %s1991_s14 = sphi %s2026_s14, %s2304_s14   ;;  %s1987_s13 = sphi %s2024_s13, %s2303_s13   ;;  %s1983_s12 = sphi %s2022_s12, %s2302_s12  }
   0x4   : > { %p26_p0 = scmp.ge.s32.totalorder %s25_s17, 2  ;;  %p49_p2 = scmp.eq.s32.totalorder %s1999_s16, 0 }
   0x5   : > { %s41_s19 = sadd.s32 1, %s1987_s13  ;;  %p1565_p5 = scmp.ge.s32.totalorder %s1999_s16, 2 }
   0x6   : > { %s2307_s17 = smov (%p26_p0, %s25_s17), 0  ;;  %p50_p3 = por %p49_p2, %p48_p1 }
   0x7   : > { %s37_s18 = ssub.s32 %s1995_s15, %s2307_s17  ;;  %164 = sbr.rel (%p1565_p5) target bundleno = 19 (0x13), region = 20 }
   0x8   : > { %p39_p4 = scmp.eq.s32.totalorder %s37_s18, 0 }
   0xa   : > { %s2057_s20 = scalar_select %p39_p4, %s1987_s13, %s41_s19  }
   0xc   : > { %167 = sbr.rel (!%p50_p3) target bundleno = 19 (0x13), region = 24  ;;  %s169_s21 = sand.u32 (%p50_p3), 1, %s1987_s13  }
   0xd   : > { %s1714_s22 = sshll.u32 (%p50_p3), %s1995_s15, 4  ;;  %s1716_s23 = smul.u32 (%p50_p3), 48, %s169_s21 }
   0xe   : > { %s177_s26 = scalar_lea.vmem (%p50_p3), %s2298_s0, %s1714_s22 }
   0xf   : > { %v190_v0 = vld [vmem:[%s177_s26] sm:$0xff] (%p50_p3)  ;;  %v192_v1 = vld [vmem:[%s177_s26 + $0x8] sm:$0xff] (%p50_p3)  ;;  %s171_s27 = scalar_lea.vmem (%p50_p3), [#allocation3], %s1716_s23 }
  0x10   : > { %v194_v2 = vld [vmem:[%s177_s26 + $0x20] sm:$0xff] (%p50_p3)  ;;  %v196_v3 = vld [vmem:[%s177_s26 + $0x28] sm:$0xff] (%p50_p3)  ;;  %191 = vst [vmem:[%s171_s27] sm:$0xff] (%p50_p3), %v190_v0  ;;  %193 = vst [vmem:[%s171_s27 + $0x8] sm:$0xff] (%p50_p3), %v192_v1 }
  0x11   : > { %v198_v4 = vld [vmem:[%s177_s26 + $0x40] sm:$0xff]  ;;  %v200_v5 = vld [vmem:[%s177_s26 + $0x48] sm:$0xff]  ;;  %195 = vst [vmem:[%s171_s27 + $0x10] sm:$0xff] %v194_v2  ;;  %197 = vst [vmem:[%s171_s27 + $0x18] sm:$0xff] %v196_v3 }
  0x12   : > { %199 = vst [vmem:[%s171_s27 + $0x20] sm:$0xff] %v198_v4  ;;  %201 = vst [vmem:[%s171_s27 + $0x28] sm:$0xff] %v200_v5 }
  0x13 PF: > { %p1568_p6 = scmp.ge.s32.totalorder %s1999_s16, 1  ;;  %p221_p7 = scmp.lt.s32.totalorder %s1999_s16, 3 }
  0x15   : > { %p222_p8 = pnand %p1568_p6, %p221_p7 }
  0x16   : > { %s228_s28 = sand.u32 (!%p222_p8), 1, %s1983_s12   ;;  %s1569_s29 = sshll.u32 (!%p222_p8), %s1991_s14, 6 }
  0x17   : > { %225 = sbr.rel (%p222_p8) target bundleno = 396 (0x18c), region = 51  ;;  %p274_p9 = scmp.lt.s32.totalorder (!%p222_p8), %s1569_s29, 127 }
  0x18   : > { %s1717_s30 = smul.u32 (!%p222_p8), 48, %s228_s28  ;;  %p1572_p10 = scmp.ne.s32.totalorder (!%p222_p8), %s1991_s14, 0 }
  0x1a   : > { %s2074_s8 = scalar_lea.vmem (!%p222_p8), [#allocation3], %s1717_s30 }
  0x1c   : > { %s2309_s29 = smov (!%p274_p9, %s1569_s29), 127  ;;  %304 = sbr.rel (%p1572_p10) target bundleno = 40 (0x28), region = 59 }
  0x1d   : > { %s1715_s4 = sshll.u32 %s2309_s29, 4 }
  0x1e   : > { %s2072_s7 = scalar_lea.vmem %s2299_s1, %s1715_s4 }
  0x21   : > { %v2001_v6 = vmov 0.0  }
  0x22   : > { %305 = vst [vmem:[#allocation2 + $0x30] sm:$0xff] %v2001_v6  ;;  %306 = vst [vmem:[#allocation2] sm:$0xff] %v2001_v6 }
  0x23   : > { %307 = vst [vmem:[#allocation2 + $0x58] sm:$0xff] %v2001_v6  ;;  %308 = vst [vmem:[#allocation2 + $0x18] sm:$0xff] %v2001_v6 }
  0x24   : > { %309 = vst [vmem:[#allocation2 + $0x50] sm:$0xff] %v2001_v6  ;;  %310 = vst [vmem:[#allocation2 + $0x20] sm:$0xff] %v2001_v6 }
  0x25   : > { %311 = vst [vmem:[#allocation2 + $0x8] sm:$0xff] %v2001_v6  ;;  %312 = vst [vmem:[#allocation2 + $0x38] sm:$0xff] %v2001_v6 }
  0x26   : > { %313 = vst [vmem:[#allocation2 + $0x28] sm:$0xff] %v2001_v6  ;;  %314 = vst [vmem:[#allocation2 + $0x48] sm:$0xff] %v2001_v6 }
  0x27   : > { %315 = vst [vmem:[#allocation2 + $0x10] sm:$0xff] %v2001_v6  ;;  %316 = vst [vmem:[#allocation2 + $0x40] sm:$0xff] %v2001_v6 }
  0x28 PF: > { %v1759_v7 = vld [vmem:[%s2072_s7 + $0xe4] ss:$16 sps:$4 sm:$0xff]   ;;  %v1763_v9 = vld [vmem:[%s2072_s7 + $0xe0] ss:$16 sps:$4 sm:$0xff]   ;;  %v2131_v58 = vld [vmem:[%s2074_s8 + $0xc] ss:$16 sps:$4 sm:$0xff]  }
  0x29   : > { %v1761_v8 = vld [vmem:[%s2072_s7 + $0x2e4] ss:$16 sps:$4 sm:$0xff]   ;;  %1137 = vmatprep.subr.bf16.mxu0 %v1759_v7  ;;  %v1764_v10 = vld [vmem:[%s2072_s7 + $0x2e0] ss:$16 sps:$4 sm:$0xff]   ;;  %1220 = vmatprep.mubr.bf16.mxu1 %v2131_v58  ;;  %p1709_p11 = scmp.ne.s32.totalorder %s1991_s14, 1 }
  0x2a   : > { %1188 = vmatprep.subr.bf16.mxu1 %v1761_v8  ;;  %v1765_v11 = vld [vmem:[%s2072_s7 + $0xc4] ss:$16 sps:$4 sm:$0xff]   ;;  %1138 = vmatpush1.bf16.msra.mxu0 %v1763_v9  ;;  %v1769_v13 = vld [vmem:[%s2072_s7 + $0xc0] ss:$16 sps:$4 sm:$0xff]   ;;  %v1863_v9 = vld [vmem:[%s2072_s7 + $0xec] ss:$16 sps:$4 sm:$0xff]  }
  0x2b   : > { %1189 = vmatpush1.bf16.msra.mxu1 %v1764_v10  ;;  %v1767_v12 = vld [vmem:[%s2072_s7 + $0x2c4] ss:$16 sps:$4 sm:$0xff]   ;;  %1139 = vmatprep.subr.bf16.mxu0 %v1765_v11  ;;  %v1770_v14 = vld [vmem:[%s2072_s7 + $0x2c0] ss:$16 sps:$4 sm:$0xff]   ;;  %v1866_v10 = vld [vmem:[%s2072_s7 + $0x2ec] ss:$16 sps:$4 sm:$0xff]  }
  0x2c   : > { %1190 = vmatprep.subr.bf16.mxu1 %v1767_v12  ;;  %v1771_v15 = vld [vmem:[%s2072_s7 + $0xa4] ss:$16 sps:$4 sm:$0xff]   ;;  %v1775_v17 = vld [vmem:[%s2072_s7 + $0xa0] ss:$16 sps:$4 sm:$0xff]   ;;  %v2155_v12 = vld [vmem:[%s2074_s8 + $0x8] ss:$16 sps:$4 sm:$0xff]  }
  0x2d   : > { %v1773_v16 = vld [vmem:[%s2072_s7 + $0x2a4] ss:$16 sps:$4 sm:$0xff]   ;;  %v1776_v18 = vld [vmem:[%s2072_s7 + $0x2a0] ss:$16 sps:$4 sm:$0xff]  }
  0x2e   : > { %1140 = vmatpush1.bf16.msra.mxu0 %v1769_v13  ;;  %v1777_v19 = vld [vmem:[%s2072_s7 + $0x84] ss:$16 sps:$4 sm:$0xff]   ;;  %v1781_v21 = vld [vmem:[%s2072_s7 + $0x80] ss:$16 sps:$4 sm:$0xff]   ;;  %v1861_v13 = vld [vmem:[%s2072_s7 + $0xe8] ss:$16 sps:$4 sm:$0xff]  }
  0x2f   : > { %1191 = vmatpush1.bf16.msra.mxu1 %v1770_v14  ;;  %1141 = vmatprep.subr.bf16.mxu0 %v1771_v15  ;;  %v1779_v20 = vld [vmem:[%s2072_s7 + $0x284] ss:$16 sps:$4 sm:$0xff]   ;;  %v1782_v22 = vld [vmem:[%s2072_s7 + $0x280] ss:$16 sps:$4 sm:$0xff]   ;;  %v1864_v14 = vld [vmem:[%s2072_s7 + $0x2e8] ss:$16 sps:$4 sm:$0xff]  }
  0x30   : > { %1192 = vmatprep.subr.bf16.mxu1 %v1773_v16  ;;  %v1783_v23 = vld [vmem:[%s2072_s7 + $0x64] ss:$16 sps:$4 sm:$0xff]   ;;  %v1787_v25 = vld [vmem:[%s2072_s7 + $0x60] ss:$16 sps:$4 sm:$0xff]   ;;  %v1869_v15 = vld [vmem:[%s2072_s7 + $0xcc] ss:$16 sps:$4 sm:$0xff]  }
  0x31   : > { %v1785_v24 = vld [vmem:[%s2072_s7 + $0x264] ss:$16 sps:$4 sm:$0xff]   ;;  %v1788_v26 = vld [vmem:[%s2072_s7 + $0x260] ss:$16 sps:$4 sm:$0xff]   ;;  %v1872_v16 = vld [vmem:[%s2072_s7 + $0x2cc] ss:$16 sps:$4 sm:$0xff]  }
  0x32   : > { %1142 = vmatpush1.bf16.msra.mxu0 %v1775_v17  ;;  %v1789_v27 = vld [vmem:[%s2072_s7 + $0x44] ss:$16 sps:$4 sm:$0xff]   ;;  %v1793_v29 = vld [vmem:[%s2072_s7 + $0x40] ss:$16 sps:$4 sm:$0xff]   ;;  %v1867_v17 = vld [vmem:[%s2072_s7 + $0xc8] ss:$16 sps:$4 sm:$0xff]  }
  0x33   : > { %1193 = vmatpush1.bf16.msra.mxu1 %v1776_v18  ;;  %1143 = vmatprep.subr.bf16.mxu0 %v1777_v19  ;;  %v1791_v28 = vld [vmem:[%s2072_s7 + $0x244] ss:$16 sps:$4 sm:$0xff]   ;;  %v1794_v30 = vld [vmem:[%s2072_s7 + $0x240] ss:$16 sps:$4 sm:$0xff]   ;;  %v1870_v18 = vld [vmem:[%s2072_s7 + $0x2c8] ss:$16 sps:$4 sm:$0xff]  }
  0x34   : > { %1194 = vmatprep.subr.bf16.mxu1 %v1779_v20  ;;  %v1795_v31 = vld [vmem:[%s2072_s7 + $0x24] ss:$16 sps:$4 sm:$0xff]   ;;  %v1799_v33 = vld [vmem:[%s2072_s7 + $0x20] ss:$16 sps:$4 sm:$0xff]   ;;  %v1875_v19 = vld [vmem:[%s2072_s7 + $0xac] ss:$16 sps:$4 sm:$0xff]  }
  0x35   : > { %v1797_v32 = vld [vmem:[%s2072_s7 + $0x224] ss:$16 sps:$4 sm:$0xff]   ;;  %v1800_v34 = vld [vmem:[%s2072_s7 + $0x220] ss:$16 sps:$4 sm:$0xff]   ;;  %v1878_v20 = vld [vmem:[%s2072_s7 + $0x2ac] ss:$16 sps:$4 sm:$0xff]  }
  0x36   : > { %1144 = vmatpush1.bf16.msra.mxu0 %v1781_v21  ;;  %v1801_v35 = vld [vmem:[%s2072_s7 + $0x4] ss:$16 sps:$4 sm:$0xff]   ;;  %v1805_v37 = vld [vmem:[%s2072_s7] ss:$16 sps:$4 sm:$0xff]   ;;  %v1873_v21 = vld [vmem:[%s2072_s7 + $0xa8] ss:$16 sps:$4 sm:$0xff]  }
  0x37   : > { %1195 = vmatpush1.bf16.msra.mxu1 %v1782_v22  ;;  %1145 = vmatprep.subr.bf16.mxu0 %v1783_v23  ;;  %v1803_v36 = vld [vmem:[%s2072_s7 + $0x204] ss:$16 sps:$4 sm:$0xff]   ;;  %v1806_v38 = vld [vmem:[%s2072_s7 + $0x200] ss:$16 sps:$4 sm:$0xff]   ;;  %v1876_v22 = vld [vmem:[%s2072_s7 + $0x2a8] ss:$16 sps:$4 sm:$0xff]  }
  0x38   : > { %1196 = vmatprep.subr.bf16.mxu1 %v1785_v24  ;;  %v1807_v39 = vld [vmem:[%s2072_s7 + $0x1e4] ss:$16 sps:$4 sm:$0xff]   ;;  %v1811_v41 = vld [vmem:[%s2072_s7 + $0x1e0] ss:$16 sps:$4 sm:$0xff]   ;;  %v1881_v23 = vld [vmem:[%s2072_s7 + $0x8c] ss:$16 sps:$4 sm:$0xff]  }
  0x39   : > { %v1809_v40 = vld [vmem:[%s2072_s7 + $0x3e4] ss:$16 sps:$4 sm:$0xff]   ;;  %v1812_v42 = vld [vmem:[%s2072_s7 + $0x3e0] ss:$16 sps:$4 sm:$0xff]   ;;  %v1884_v24 = vld [vmem:[%s2072_s7 + $0x28c] ss:$16 sps:$4 sm:$0xff]  }
  0x3a   : > { %1146 = vmatpush1.bf16.msra.mxu0 %v1787_v25  ;;  %v1813_v43 = vld [vmem:[%s2072_s7 + $0x1c4] ss:$16 sps:$4 sm:$0xff]   ;;  %v1817_v45 = vld [vmem:[%s2072_s7 + $0x1c0] ss:$16 sps:$4 sm:$0xff]   ;;  %v1879_v25 = vld [vmem:[%s2072_s7 + $0x88] ss:$16 sps:$4 sm:$0xff]  }
  0x3b   : > { %1197 = vmatpush1.bf16.msra.mxu1 %v1788_v26  ;;  %1147 = vmatprep.subr.bf16.mxu0 %v1789_v27  ;;  %v1815_v44 = vld [vmem:[%s2072_s7 + $0x3c4] ss:$16 sps:$4 sm:$0xff]   ;;  %v1818_v46 = vld [vmem:[%s2072_s7 + $0x3c0] ss:$16 sps:$4 sm:$0xff]   ;;  %v1882_v26 = vld [vmem:[%s2072_s7 + $0x288] ss:$16 sps:$4 sm:$0xff]  }
  0x3c   : > { %1198 = vmatprep.subr.bf16.mxu1 %v1791_v28  ;;  %v1819_v47 = vld [vmem:[%s2072_s7 + $0x1a4] ss:$16 sps:$4 sm:$0xff]   ;;  %v1823_v49 = vld [vmem:[%s2072_s7 + $0x1a0] ss:$16 sps:$4 sm:$0xff]   ;;  %v1887_v27 = vld [vmem:[%s2072_s7 + $0x6c] ss:$16 sps:$4 sm:$0xff]  }
  0x3d   : > { %v1821_v48 = vld [vmem:[%s2072_s7 + $0x3a4] ss:$16 sps:$4 sm:$0xff]   ;;  %v1824_v50 = vld [vmem:[%s2072_s7 + $0x3a0] ss:$16 sps:$4 sm:$0xff]   ;;  %v1890_v28 = vld [vmem:[%s2072_s7 + $0x26c] ss:$16 sps:$4 sm:$0xff]  }
  0x3e   : > { %1148 = vmatpush1.bf16.msra.mxu0 %v1793_v29  ;;  %v1825_v51 = vld [vmem:[%s2072_s7 + $0x184] ss:$16 sps:$4 sm:$0xff]   ;;  %v1829_v53 = vld [vmem:[%s2072_s7 + $0x180] ss:$16 sps:$4 sm:$0xff]   ;;  %v1885_v29 = vld [vmem:[%s2072_s7 + $0x68] ss:$16 sps:$4 sm:$0xff]  }
  0x3f   : > { %1199 = vmatpush1.bf16.msra.mxu1 %v1794_v30  ;;  %1149 = vmatprep.subr.bf16.mxu0 %v1795_v31  ;;  %v1827_v52 = vld [vmem:[%s2072_s7 + $0x384] ss:$16 sps:$4 sm:$0xff]   ;;  %v1830_v54 = vld [vmem:[%s2072_s7 + $0x380] ss:$16 sps:$4 sm:$0xff]   ;;  %v1888_v30 = vld [vmem:[%s2072_s7 + $0x268] ss:$16 sps:$4 sm:$0xff]  }
  0x40   : > { %1200 = vmatprep.subr.bf16.mxu1 %v1797_v32  ;;  %v1831_v55 = vld [vmem:[%s2072_s7 + $0x164] ss:$16 sps:$4 sm:$0xff]   ;;  %v1835_v59 = vld [vmem:[%s2072_s7 + $0x160] ss:$16 sps:$4 sm:$0xff]   ;;  %v334_v32 = vld [vmem:[%s2074_s8 + $0x28] sm:$0xff] }
  0x41   : > { %v2127_v56 = vld [vmem:[%s2074_s8 + $0x4] ss:$16 sps:$4 sm:$0xff]   ;;  %v1836_v60 = vld [vmem:[%s2072_s7 + $0x360] ss:$16 sps:$4 sm:$0xff]  }
  0x42   : > { %1150 = vmatpush1.bf16.msra.mxu0 %v1799_v33  ;;  %v1833_v57 = vld [vmem:[%s2072_s7 + $0x364] ss:$16 sps:$4 sm:$0xff]   ;;  %1169 = vmatprep.mubr.bf16.mxu0 %v2127_v56  ;;  %v1841_v63 = vld [vmem:[%s2072_s7 + $0x140] ss:$16 sps:$4 sm:$0xff]   ;;  %v1893_v33 = vld [vmem:[%s2072_s7 + $0x4c] ss:$16 sps:$4 sm:$0xff]  }
  0x43   : > { %1201 = vmatpush1.bf16.msra.mxu1 %v1800_v34  ;;  %1151 = vmatprep.subr.bf16.mxu0 %v1801_v35  ;;  %v1837_v61 = vld [vmem:[%s2072_s7 + $0x144] ss:$16 sps:$4 sm:$0xff]   ;;  %v1842_v0 = vld [vmem:[%s2072_s7 + $0x340] ss:$16 sps:$4 sm:$0xff]   ;;  %v1896_v34 = vld [vmem:[%s2072_s7 + $0x24c] ss:$16 sps:$4 sm:$0xff]  }
  0x44   : > { %1202 = vmatprep.subr.bf16.mxu1 %v1803_v36  ;;  %v1839_v62 = vld [vmem:[%s2072_s7 + $0x344] ss:$16 sps:$4 sm:$0xff]   ;;  %v1847_v3 = vld [vmem:[%s2072_s7 + $0x120] ss:$16 sps:$4 sm:$0xff]   ;;  %v2183_v36 = vcombine.high %v334_v32, %v334_v32 }
  0x45   : > { %v1843_v1 = vld [vmem:[%s2072_s7 + $0x124] ss:$16 sps:$4 sm:$0xff]   ;;  %v1848_v4 = vld [vmem:[%s2072_s7 + $0x320] ss:$16 sps:$4 sm:$0xff]  }
  0x46   : > { %1152 = vmatpush1.bf16.msra.mxu0 %v1805_v37  ;;  %v1845_v2 = vld [vmem:[%s2072_s7 + $0x324] ss:$16 sps:$4 sm:$0xff]   ;;  %v1853_v7 = vld [vmem:[%s2072_s7 + $0x100] ss:$16 sps:$4 sm:$0xff]  }
  0x47   : > { %1203 = vmatpush1.bf16.msra.mxu1 %v1806_v38  ;;  %1153 = vmatprep.subr.bf16.mxu0 %v1807_v39  ;;  %v1849_v5 = vld [vmem:[%s2072_s7 + $0x104] ss:$16 sps:$4 sm:$0xff]   ;;  %v1854_v8 = vld [vmem:[%s2072_s7 + $0x300] ss:$16 sps:$4 sm:$0xff]   ;;  %v2187_v38 = vcombine.low %v334_v32, %v334_v32  ;;  %v1891_v39 = vld [vmem:[%s2072_s7 + $0x48] ss:$16 sps:$4 sm:$0xff]  }
  0x48   : > { %1204 = vmatprep.subr.bf16.mxu1 %v1809_v40  ;;  %v1851_v6 = vld [vmem:[%s2072_s7 + $0x304] ss:$16 sps:$4 sm:$0xff]   ;;  %v2152_v11 = vld [vmem:[%s2074_s8] ss:$16 sps:$4 sm:$0xff]   ;;  %v1894_v40 = vld [vmem:[%s2072_s7 + $0x248] ss:$16 sps:$4 sm:$0xff]  }
  0x49   : > { %v333_v31 = vld [vmem:[%s2074_s8 + $0x20] sm:$0xff] }
  0x4a   : > { %1154 = vmatpush2.bf16.msra.mxu0 %v1811_v41  ;;  %v2181_v35 = vcombine.high %v333_v31, %v333_v31  ;;  %v2185_v37 = vcombine.low %v333_v31, %v333_v31  ;;  %v1899_v41 = vld [vmem:[%s2072_s7 + $0x2c] ss:$16 sps:$4 sm:$0xff]   ;;  %v322_v32 = vld [vmem:[#allocation2 + $0x20] sm:$0xff] }
  0x4b   : > { %1205 = vmatpush2.bf16.msra.mxu1 %v1812_v42  ;;  %1155 = vmatprep.subr.bf16.mxu0 %v1813_v43  ;;  %v1902_v42 = vld [vmem:[%s2072_s7 + $0x22c] ss:$16 sps:$4 sm:$0xff]   ;;  %v1897_v43 = vld [vmem:[%s2072_s7 + $0x28] ss:$16 sps:$4 sm:$0xff]  }
  0x4c   : > { %1206 = vmatprep.subr.bf16.mxu1 %v1815_v44  ;;  %v1900_v44 = vld [vmem:[%s2072_s7 + $0x228] ss:$16 sps:$4 sm:$0xff]  }
  0x4e   : > { %1156 = vmatpush2.bf16.msra.mxu0 %v1817_v45  ;;  %v1905_v45 = vld [vmem:[%s2072_s7 + $0xc] ss:$16 sps:$4 sm:$0xff]  }
  0x4f   : > { %1207 = vmatpush2.bf16.msra.mxu1 %v1818_v46  ;;  %1157 = vmatprep.subr.bf16.mxu0 %v1819_v47  ;;  %v1908_v46 = vld [vmem:[%s2072_s7 + $0x20c] ss:$16 sps:$4 sm:$0xff]   ;;  %v1903_v47 = vld [vmem:[%s2072_s7 + $0x8] ss:$16 sps:$4 sm:$0xff]  }
  0x50   : > { %1208 = vmatprep.subr.bf16.mxu1 %v1821_v48  ;;  %v1906_v48 = vld [vmem:[%s2072_s7 + $0x208] ss:$16 sps:$4 sm:$0xff]  }
  0x52   : > { %1158 = vmatpush2.bf16.msra.mxu0 %v1823_v49  ;;  %v1911_v49 = vld [vmem:[%s2072_s7 + $0x1ec] ss:$16 sps:$4 sm:$0xff]  }
  0x53   : > { %1209 = vmatpush2.bf16.msra.mxu1 %v1824_v50  ;;  %1159 = vmatprep.subr.bf16.mxu0 %v1825_v51  ;;  %v1914_v50 = vld [vmem:[%s2072_s7 + $0x3ec] ss:$16 sps:$4 sm:$0xff]   ;;  %v1909_v51 = vld [vmem:[%s2072_s7 + $0x1e8] ss:$16 sps:$4 sm:$0xff]  }
  0x54   : > { %1210 = vmatprep.subr.bf16.mxu1 %v1827_v52  ;;  %v1912_v52 = vld [vmem:[%s2072_s7 + $0x3e8] ss:$16 sps:$4 sm:$0xff]  }
  0x56   : > { %1160 = vmatpush2.bf16.msra.mxu0 %v1829_v53  ;;  %v1917_v53 = vld [vmem:[%s2072_s7 + $0x1cc] ss:$16 sps:$4 sm:$0xff]  }
  0x57   : > { %1211 = vmatpush2.bf16.msra.mxu1 %v1830_v54  ;;  %1161 = vmatprep.subr.bf16.mxu0 %v1831_v55  ;;  %v1920_v54 = vld [vmem:[%s2072_s7 + $0x3cc] ss:$16 sps:$4 sm:$0xff]   ;;  %v1915_v55 = vld [vmem:[%s2072_s7 + $0x1c8] ss:$16 sps:$4 sm:$0xff]  }
  0x58   : > { %1212 = vmatprep.subr.bf16.mxu1 %v1833_v57  ;;  %v1923_v57 = vld [vmem:[%s2072_s7 + $0x1ac] ss:$16 sps:$4 sm:$0xff]  }
  0x5a   : > { %1162 = vmatpush2.bf16.msra.mxu0 %v1835_v59  ;;  %v1921_v59 = vld [vmem:[%s2072_s7 + $0x1a8] ss:$16 sps:$4 sm:$0xff]  }
  0x5b   : > { %1213 = vmatpush2.bf16.msra.mxu1 %v1836_v60  ;;  %1163 = vmatprep.subr.bf16.mxu0 %v1837_v61  ;;  %v1924_v60 = vld [vmem:[%s2072_s7 + $0x3a8] ss:$16 sps:$4 sm:$0xff]   ;;  %v1929_v61 = vld [vmem:[%s2072_s7 + $0x18c] ss:$16 sps:$4 sm:$0xff]  }
  0x5c   : > { %1214 = vmatprep.subr.bf16.mxu1 %v1839_v62  ;;  %v1932_v62 = vld [vmem:[%s2072_s7 + $0x38c] ss:$16 sps:$4 sm:$0xff]  }
  0x5e   : > { %1164 = vmatpush2.bf16.msra.mxu0 %v1841_v63  ;;  %v1927_v63 = vld [vmem:[%s2072_s7 + $0x188] ss:$16 sps:$4 sm:$0xff]  }
  0x5f   : > { %1215 = vmatpush2.bf16.msra.mxu1 %v1842_v0  ;;  %1165 = vmatprep.subr.bf16.mxu0 %v1843_v1  ;;  %v1930_v0 = vld [vmem:[%s2072_s7 + $0x388] ss:$16 sps:$4 sm:$0xff]   ;;  %v1935_v1 = vld [vmem:[%s2072_s7 + $0x16c] ss:$16 sps:$4 sm:$0xff]  }
  0x60   : > { %1216 = vmatprep.subr.bf16.mxu1 %v1845_v2  ;;  %v1938_v2 = vld [vmem:[%s2072_s7 + $0x36c] ss:$16 sps:$4 sm:$0xff]  }
  0x62   : > { %1166 = vmatpush2.bf16.msra.mxu0 %v1847_v3  ;;  %v1933_v3 = vld [vmem:[%s2072_s7 + $0x168] ss:$16 sps:$4 sm:$0xff]  }
  0x63   : > { %1217 = vmatpush2.bf16.msra.mxu1 %v1848_v4  ;;  %1167 = vmatprep.subr.bf16.mxu0 %v1849_v5  ;;  %v1936_v4 = vld [vmem:[%s2072_s7 + $0x368] ss:$16 sps:$4 sm:$0xff]   ;;  %v1945_v5 = vld [vmem:[%s2072_s7 + $0x14c] ss:$16 sps:$4 sm:$0xff]  }
  0x64   : > { %1218 = vmatprep.subr.bf16.mxu1 %v1851_v6  ;;  %v1948_v6 = vld [vmem:[%s2072_s7 + $0x34c] ss:$16 sps:$4 sm:$0xff]  }
  0x66   : > { %1168 = vmatpush2.bf16.msra.mxu0 %v1853_v7  ;;  %v1943_v7 = vld [vmem:[%s2072_s7 + $0x148] ss:$16 sps:$4 sm:$0xff]  }
  0x67   : > { %1219 = vmatpush2.bf16.msra.mxu1 %v1854_v8  ;;  %1239 = vmatprep.subr.bf16.mxu0 %v1863_v9  ;;  %v1946_v8 = vld [vmem:[%s2072_s7 + $0x348] ss:$16 sps:$4 sm:$0xff]   ;;  %v1951_v9 = vld [vmem:[%s2072_s7 + $0x12c] ss:$16 sps:$4 sm:$0xff]  }
  0x68   : > { %1290 = vmatprep.subr.bf16.mxu1 %v1866_v10  ;;  %v1954_v10 = vld [vmem:[%s2072_s7 + $0x32c] ss:$16 sps:$4 sm:$0xff]  }
  0x69   : > { %1170 = vmatmul.mubr.bf16.vlgmr.msra.gmra.mxu0 %v2152_v11 }
  0x6a   : > { %1221 = vmatmul.mubr.bf16.vlgmr.msra.gmra.mxu1 %v2155_v12  ;;  %1240 = vmatpush1.bf16.msra.mxu0 %v1861_v13  ;;  %v1949_v13 = vld [vmem:[%s2072_s7 + $0x128] ss:$16 sps:$4 sm:$0xff]  }
  0x6b   : > { %1291 = vmatpush1.bf16.msra.mxu1 %v1864_v14  ;;  %1241 = vmatprep.subr.bf16.mxu0 %v1869_v15  ;;  %v1952_v14 = vld [vmem:[%s2072_s7 + $0x328] ss:$16 sps:$4 sm:$0xff]   ;;  %v1957_v15 = vld [vmem:[%s2072_s7 + $0x10c] ss:$16 sps:$4 sm:$0xff]  }
  0x6c   : > { %1292 = vmatprep.subr.bf16.mxu1 %v1872_v16  ;;  %1179 = vmatprep.mubr.bf16.mxu0 %v2181_v35  ;;  %v1960_v16 = vld [vmem:[%s2072_s7 + $0x30c] ss:$16 sps:$4 sm:$0xff]  }
  0x6d   : > { %1230 = vmatprep.mubr.bf16.mxu1 %v2183_v36 }
  0x6e   : > { %1242 = vmatpush1.bf16.msra.mxu0 %v1867_v17  ;;  %v1955_v17 = vld [vmem:[%s2072_s7 + $0x108] ss:$16 sps:$4 sm:$0xff]  }
  0x6f   : > { %1293 = vmatpush1.bf16.msra.mxu1 %v1870_v18  ;;  %1243 = vmatprep.subr.bf16.mxu0 %v1875_v19  ;;  %v1958_v18 = vld [vmem:[%s2072_s7 + $0x308] ss:$16 sps:$4 sm:$0xff]  }
  0x70   : > { %1294 = vmatprep.subr.bf16.mxu1 %v1878_v20  ;;  %v317_v20 = vld [vmem:[#allocation2 + $0x30] sm:$0xff] }
  0x71   : > { %1180 = vmatmul.mubr.bf16.gmra.mxu0 %v2185_v37 }
  0x72   : > { %1244 = vmatpush1.bf16.msra.mxu0 %v1873_v21  ;;  %1231 = vmatmul.mubr.bf16.gmra.mxu1 %v2187_v38 }
  0x73   : > { %1295 = vmatpush1.bf16.msra.mxu1 %v1876_v22  ;;  %1245 = vmatprep.subr.bf16.mxu0 %v1881_v23 }
  0x74   : > { %1296 = vmatprep.subr.bf16.mxu1 %v1884_v24  ;;  %1271 = vmatprep.mubr.bf16.mxu0 %v2127_v56  ;;  %v1918_v56 = vld [vmem:[%s2072_s7 + $0x3c8] ss:$16 sps:$4 sm:$0xff]   ;;  %v318_v24 = vld [vmem:[#allocation2] sm:$0xff] }
  0x75   : > { %1322 = vmatprep.mubr.bf16.mxu1 %v2131_v58  ;;  %v1926_v58 = vld [vmem:[%s2072_s7 + $0x3ac] ss:$16 sps:$4 sm:$0xff]  }
  0x76   : > { %1246 = vmatpush1.bf16.msra.mxu0 %v1879_v25 }
  0x77   : > { %1297 = vmatpush1.bf16.msra.mxu1 %v1882_v26  ;;  %1247 = vmatprep.subr.bf16.mxu0 %v1887_v27 }
  0x78   : > { %1298 = vmatprep.subr.bf16.mxu1 %v1890_v28  ;;  %v321_v28 = vld [vmem:[#allocation2 + $0x50] sm:$0xff] }
  0x7a   : > { %1248 = vmatpush1.bf16.msra.mxu0 %v1885_v29 }
  0x7b   : > { %1299 = vmatpush1.bf16.msra.mxu1 %v1888_v30  ;;  %1249 = vmatprep.subr.bf16.mxu0 %v1893_v33 }
  0x7c   : > { %1300 = vmatprep.subr.bf16.mxu1 %v1896_v34 }
  0x7e   : > { %1250 = vmatpush1.bf16.msra.mxu0 %v1891_v39 }
  0x7f   : > { %1301 = vmatpush1.bf16.msra.mxu1 %v1894_v40  ;;  %1251 = vmatprep.subr.bf16.mxu0 %v1899_v41 }
  0x80   : > { %1302 = vmatprep.subr.bf16.mxu1 %v1902_v42  ;;  %v326_v42 = vld [vmem:[#allocation2 + $0x48] sm:$0xff] }
  0x82   : > { %1252 = vmatpush1.bf16.msra.mxu0 %v1897_v43 }
  0x83   : > { %1303 = vmatpush1.bf16.msra.mxu1 %v1900_v44  ;;  %1253 = vmatprep.subr.bf16.mxu0 %v1905_v45 }
  0x84   : > { %1304 = vmatprep.subr.bf16.mxu1 %v1908_v46 }
  0x86   : > { %1254 = vmatpush1.bf16.msra.mxu0 %v1903_v47 }
  0x87   : > { %1305 = vmatpush1.bf16.msra.mxu1 %v1906_v48  ;;  %1255 = vmatprep.subr.bf16.mxu0 %v1911_v49 }
  0x88   : > { %1306 = vmatprep.subr.bf16.mxu1 %v1914_v50 }
  0x8a   : > { %1256 = vmatpush2.bf16.msra.mxu0 %v1909_v51 }
  0x8b   : > { %1307 = vmatpush2.bf16.msra.mxu1 %v1912_v52  ;;  %1257 = vmatprep.subr.bf16.mxu0 %v1917_v53  ;;  %v319_v52 = vld [vmem:[#allocation2 + $0x58] sm:$0xff] }
  0x8c   : > { %1308 = vmatprep.subr.bf16.mxu1 %v1920_v54 }
  0x8e   : > { %1258 = vmatpush2.bf16.msra.mxu0 %v1915_v55 }
  0x8f   : > { %1309 = vmatpush2.bf16.msra.mxu1 %v1918_v56  ;;  %1259 = vmatprep.subr.bf16.mxu0 %v1923_v57  ;;  %v320_v56 = vld [vmem:[#allocation2 + $0x18] sm:$0xff] }
  0x90   : > { %1310 = vmatprep.subr.bf16.mxu1 %v1926_v58 }
  0x92   : > { %1260 = vmatpush2.bf16.msra.mxu0 %v1921_v59 }
  0x93   : > { %1311 = vmatpush2.bf16.msra.mxu1 %v1924_v60  ;;  %1261 = vmatprep.subr.bf16.mxu0 %v1929_v61  ;;  %v323_v61 = vld [vmem:[#allocation2 + $0x8] sm:$0xff] }
  0x94   : > { %1312 = vmatprep.subr.bf16.mxu1 %v1932_v62 }
  0x96   : > { %1262 = vmatpush2.bf16.msra.mxu0 %v1927_v63 }
  0x97   : > { %1313 = vmatpush2.bf16.msra.mxu1 %v1930_v0  ;;  %1263 = vmatprep.subr.bf16.mxu0 %v1935_v1 }
  0x98   : > { %1314 = vmatprep.subr.bf16.mxu1 %v1938_v2  ;;  %v324_v2 = vld [vmem:[#allocation2 + $0x38] sm:$0xff] }
  0x9a   : > { %1264 = vmatpush2.bf16.msra.mxu0 %v1933_v3 }
  0x9b   : > { %1315 = vmatpush2.bf16.msra.mxu1 %v1936_v4  ;;  %1265 = vmatprep.subr.bf16.mxu0 %v1945_v5 }
  0x9c   : > { %1316 = vmatprep.subr.bf16.mxu1 %v1948_v6 }
  0x9e   : > { %1266 = vmatpush2.bf16.msra.mxu0 %v1943_v7  ;;  %v327_v7 = vld [vmem:[#allocation2 + $0x10] sm:$0xff] }
  0x9f   : > { %1317 = vmatpush2.bf16.msra.mxu1 %v1946_v8  ;;  %1267 = vmatprep.subr.bf16.mxu0 %v1951_v9 }
  0xa0   : > { %1318 = vmatprep.subr.bf16.mxu1 %v1954_v10 }
  0xa2   : > { %1268 = vmatpush2.bf16.msra.mxu0 %v1949_v13 }
  0xa3   : > { %1319 = vmatpush2.bf16.msra.mxu1 %v1952_v14  ;;  %1269 = vmatprep.subr.bf16.mxu0 %v1957_v15  ;;  %v328_v14 = vld [vmem:[#allocation2 + $0x40] sm:$0xff] }
  0xa4   : > { %1320 = vmatprep.subr.bf16.mxu1 %v1960_v16 }
  0xa6   : > { %1270 = vmatpush2.bf16.msra.mxu0 %v1955_v17 }
  0xa7   : > { %1321 = vmatpush2.bf16.msra.mxu1 %v1958_v18 }
  0xa9   : > { %1272 = vmatmul.mubr.bf16.vlgmr.msra.gmra.mxu0 %v2152_v11 }
  0xaa   : > { %1323 = vmatmul.mubr.bf16.vlgmr.msra.gmra.mxu1 %v2155_v12  ;;  %1281 = vmatprep.mubr.bf16.mxu0 %v2181_v35 }
  0xab   : > { %1332 = vmatprep.mubr.bf16.mxu1 %v2183_v36 }
  0xb1   : > { %1282 = vmatmul.mubr.bf16.gmra.mxu0 %v2185_v37 }
  0xb2   : > { %1333 = vmatmul.mubr.bf16.gmra.mxu1 %v2187_v38  ;;  %v325_v38 = vld [vmem:[#allocation2 + $0x28] sm:$0xff] }
 0x129   : > { %v1171_v19 = vpop.f32.mrf.mxu0 }
 0x12a   : > { %v1222_v21 = vpop.f32.mrf.mxu1 }
 0x12b   : > { %v1223_v22 = vadd.f32 %v1222_v21, %v1171_v19  ;;  %v1173_v23 = vpop.f32.mrf.mxu0 }
 0x12c   : > { %v1224_v25 = vpop.f32.mrf.mxu1 }
 0x12d   : > { %v1341_v26 = vadd.f32 %v1223_v22, %v317_v20  ;;  %v1225_v27 = vadd.f32 %v1224_v25, %v1173_v23  ;;  %v1175_v11 = vpop.f32.mrf.mxu0 }
 0x12e   : > { %v1226_v12 = vpop.f32.mrf.mxu1 }
 0x12f   : > { %1353 = vst [vmem:[#allocation2 + $0x30] sm:$0xff] %v1341_v26  ;;  %v1342_v29 = vadd.f32 %v1225_v27, %v318_v24  ;;  %v1227_v30 = vadd.f32 %v1226_v12, %v1175_v11  ;;  %v1177_v31 = vpop.f32.mrf.mxu0 }
 0x130   : > { %v1228_v33 = vpop.f32.mrf.mxu1 }
 0x131   : > { %1354 = vst [vmem:[#allocation2] sm:$0xff] %v1342_v29  ;;  %v1345_v34 = vadd.f32 %v1227_v30, %v321_v28  ;;  %v1229_v35 = vadd.f32 %v1228_v33, %v1177_v31  ;;  %v1181_v37 = vpop.f32.mrf.mxu0 }
 0x132   : > { %v1232_v39 = vpop.f32.mrf.mxu1 }
 0x133   : > { %1357 = vst [vmem:[#allocation2 + $0x50] sm:$0xff] %v1345_v34  ;;  %v1346_v36 = vadd.f32 %v1229_v35, %v322_v32  ;;  %v1233_v40 = vadd.f32 %v1232_v39, %v1181_v37  ;;  %v1183_v41 = vpop.f32.mrf.mxu0 }
 0x134   : > { %v1234_v43 = vpop.f32.mrf.mxu1 }
 0x135   : > { %1358 = vst [vmem:[#allocation2 + $0x20] sm:$0xff] %v1346_v36  ;;  %v1349_v44 = vadd.f32 %v1233_v40, %v325_v38  ;;  %v1235_v45 = vadd.f32 %v1234_v43, %v1183_v41  ;;  %v1185_v46 = vpop.f32.mrf.mxu0 }
 0x136   : > { %v1236_v47 = vpop.f32.mrf.mxu1 }
 0x137   : > { %1361 = vst [vmem:[#allocation2 + $0x28] sm:$0xff] %v1349_v44  ;;  %v1350_v48 = vadd.f32 %v1235_v45, %v326_v42  ;;  %v1186_v49 = vpop.f32.mrf.mxu0 }
 0x138   : > { %v1237_v50 = vpop.f32.mrf.mxu1 }
 0x139   : > { %1362 = vst [vmem:[#allocation2 + $0x48] sm:$0xff] %v1350_v48 }
 0x169   : > { %v1273_v51 = vpop.f32.mrf.mxu0 }
 0x16a   : > { %v1324_v53 = vpop.f32.mrf.mxu1 }
 0x16b   : > { %v1325_v54 = vadd.f32 %v1324_v53, %v1273_v51  ;;  %v1275_v55 = vpop.f32.mrf.mxu0 }
 0x16c   : > { %v1326_v57 = vpop.f32.mrf.mxu1 }
 0x16d   : > { %v1343_v58 = vadd.f32 %v1325_v54, %v319_v52  ;;  %v1327_v59 = vadd.f32 %v1326_v57, %v1275_v55  ;;  %v1277_v60 = vpop.f32.mrf.mxu0 }
 0x16e   : > { %v1328_v62 = vpop.f32.mrf.mxu1 }
 0x16f   : > { %1355 = vst [vmem:[#allocation2 + $0x58] sm:$0xff] %v1343_v58  ;;  %v1344_v63 = vadd.f32 %v1327_v59, %v320_v56  ;;  %v1329_v0 = vadd.f32 %v1328_v62, %v1277_v60  ;;  %v1279_v1 = vpop.f32.mrf.mxu0 }
 0x170   : > { %v1330_v3 = vpop.f32.mrf.mxu1 }
 0x171   : > { %1356 = vst [vmem:[#allocation2 + $0x18] sm:$0xff] %v1344_v63  ;;  %v1347_v4 = vadd.f32 %v1329_v0, %v323_v61  ;;  %v1331_v5 = vadd.f32 %v1330_v3, %v1279_v1  ;;  %v1283_v6 = vpop.f32.mrf.mxu0 }
 0x172   : > { %v1334_v8 = vpop.f32.mrf.mxu1 }
 0x173   : > { %1359 = vst [vmem:[#allocation2 + $0x8] sm:$0xff] %v1347_v4  ;;  %v1348_v9 = vadd.f32 %v1331_v5, %v324_v2  ;;  %v1335_v10 = vadd.f32 %v1334_v8, %v1283_v6  ;;  %v1285_v13 = vpop.f32.mrf.mxu0 }
 0x174   : > { %v1336_v15 = vpop.f32.mrf.mxu1 }
 0x175   : > { %1360 = vst [vmem:[#allocation2 + $0x38] sm:$0xff] %v1348_v9  ;;  %v1351_v16 = vadd.f32 %v1335_v10, %v327_v7  ;;  %v1337_v17 = vadd.f32 %v1336_v15, %v1285_v13  ;;  %v1287_v18 = vpop.f32.mrf.mxu0  ;;  %1368 = sbr.rel (%p1709_p11) target bundleno = 396 (0x18c), region = 63 }
 0x176   : > { %v1338_v19 = vpop.f32.mrf.mxu1 }
 0x177   : > { %1363 = vst [vmem:[#allocation2 + $0x10] sm:$0xff] %v1351_v16  ;;  %v1352_v20 = vadd.f32 %v1337_v17, %v328_v14  ;;  %v1288_v21 = vpop.f32.mrf.mxu0 }
 0x178   : > { %v1339_v22 = vpop.f32.mrf.mxu1 }
 0x179   : > { %1364 = vst [vmem:[#allocation2 + $0x40] sm:$0xff] %v1352_v20 }
 0x17a   : > { %v1383_v23 = vlaneseq  ;;  %v1381_v25 = vld [vmem:[%s2300_s2] sm:$0xf]  ;;  %v1369_v26 = vld [vmem:[#allocation2 + $0x30] sm:$0xff]  ;;  %v1371_v30 = vld [vmem:[#allocation2 + $0x58] sm:$0xff] }
 0x17b   : > { %v1370_v11 = vld [vmem:[#allocation2] sm:$0xff]  ;;  %v1372_v31 = vld [vmem:[#allocation2 + $0x18] sm:$0xff]  ;;  %v1373_v32 = vld [vmem:[#allocation2 + $0x50] sm:$0xff] }
 0x17c   : > { %v1384_v24 = vshrl.u32 %v1383_v23, 7  ;;  %v1374_v37 = vld [vmem:[#allocation2 + $0x20] sm:$0xff]  ;;  %v1375_v38 = vld [vmem:[#allocation2 + $0x8] sm:$0xff]  ;;  %v1376_v39 = vld [vmem:[#allocation2 + $0x38] sm:$0xff] }
 0x17d   : > { %v1377_v44 = vld [vmem:[#allocation2 + $0x28] sm:$0xff] }
 0x17e   : > { %v1385_v27 = vsub.s32 0, %v1384_v24  ;;  %v1389_v28 = vsub.s32 1, %v1384_v24  ;;  %v1393_v12 = vsub.s32 2, %v1384_v24  ;;  %v1397_v29 = vsub.s32 3, %v1384_v24  ;;  %v1378_v49 = vld [vmem:[#allocation2 + $0x48] sm:$0xff]  ;;  %v1379_v50 = vld [vmem:[#allocation2 + $0x10] sm:$0xff] }
 0x180   : > { %v1386_v33 = vrot.slane %v1381_v25, %v1385_v27  ;;  %v1390_v34 = vrot.slane %v1381_v25, %v1389_v28  ;;  %v1394_v35 = vrot.slane %v1381_v25, %v1393_v12  ;;  %v1398_v36 = vrot.slane %v1381_v25, %v1397_v29  ;;  %v1380_v51 = vld [vmem:[#allocation2 + $0x40] sm:$0xff] }
 0x182   : > { %v1403_v40 = vadd.f32 %v1386_v33, %v1369_v26  ;;  %v1404_v41 = vadd.f32 %v1390_v34, %v1370_v11  ;;  %v1405_v42 = vadd.f32 %v1394_v35, %v1371_v30  ;;  %v1406_v43 = vadd.f32 %v1398_v36, %v1372_v31 }
 0x183   : > { %v1407_v45 = vadd.f32 %v1386_v33, %v1373_v32  ;;  %v1408_v46 = vadd.f32 %v1390_v34, %v1374_v37  ;;  %v1409_v47 = vadd.f32 %v1394_v35, %v1375_v38  ;;  %v1410_v48 = vadd.f32 %v1398_v36, %v1376_v39 }
 0x184   : > { %v1415_v52 = vmax.f32 %v1403_v40, 0.0  ;;  %v1416_v53 = vmax.f32 %v1404_v41, 0.0  ;;  %v1417_v54 = vmax.f32 %v1405_v42, 0.0  ;;  %v1418_v55 = vmax.f32 %v1406_v43, 0.0 }
 0x185   : > { %v1419_v56 = vmax.f32 %v1407_v45, 0.0  ;;  %v1420_v57 = vmax.f32 %v1408_v46, 0.0  ;;  %v1421_v58 = vmax.f32 %v1409_v47, 0.0  ;;  %v1422_v59 = vmax.f32 %v1410_v48, 0.0 }
 0x186   : > { %1427 = vst [vmem:[%s2301_s3] sm:$0xff] %v1415_v52  ;;  %1428 = vst [vmem:[%s2301_s3 + $0x8] sm:$0xff] %v1416_v53  ;;  %v1411_v60 = vadd.f32 %v1386_v33, %v1377_v44  ;;  %v1412_v61 = vadd.f32 %v1390_v34, %v1378_v49  ;;  %v1413_v62 = vadd.f32 %v1394_v35, %v1379_v50 }
 0x187   : > { %1429 = vst [vmem:[%s2301_s3 + $0x10] sm:$0xff] %v1417_v54  ;;  %1430 = vst [vmem:[%s2301_s3 + $0x18] sm:$0xff] %v1418_v55  ;;  %v1414_v63 = vadd.f32 %v1398_v36, %v1380_v51 }
 0x188   : > { %1431 = vst [vmem:[%s2301_s3 + $0x20] sm:$0xff] %v1419_v56  ;;  %1432 = vst [vmem:[%s2301_s3 + $0x28] sm:$0xff] %v1420_v57  ;;  %v1423_v0 = vmax.f32 %v1411_v60, 0.0  ;;  %v1424_v1 = vmax.f32 %v1412_v61, 0.0  ;;  %v1425_v2 = vmax.f32 %v1413_v62, 0.0 }
 0x189   : > { %1433 = vst [vmem:[%s2301_s3 + $0x30] sm:$0xff] %v1421_v58  ;;  %1434 = vst [vmem:[%s2301_s3 + $0x38] sm:$0xff] %v1422_v59  ;;  %v1426_v3 = vmax.f32 %v1414_v63, 0.0 }
 0x18a   : > { %1435 = vst [vmem:[%s2301_s3 + $0x40] sm:$0xff] %v1423_v0  ;;  %1436 = vst [vmem:[%s2301_s3 + $0x48] sm:$0xff] %v1424_v1 }
 0x18b   : > { %1437 = vst [vmem:[%s2301_s3 + $0x50] sm:$0xff] %v1425_v2  ;;  %1438 = vst [vmem:[%s2301_s3 + $0x58] sm:$0xff] %v1426_v3 }
 0x18c PF: > { %s13_s16 = sadd.s32 1, %s1999_s16   ;;  %s2302_s12 = smov %s1987_s13 }
 0x18d   : > { %p10_p12 = scmp.ge.s32.totalorder %s13_s16, 4   ;;  %s2303_s13 = smov %s2057_s20 }
 0x18e   : > { %s2304_s14 = smov %s1995_s15  ;;  %s2305_s15 = smov %s2307_s17 }
 0x18f   :  { %12 = sbr.rel (!%p10_p12) target bundleno = 3 (0x3), region = 104 }

// kernel: denoising_autoencoder.14
= control target key start
LH: loop header
LB: loop body
LE: loop exit
PB: predicated region body
PF: predicated region fallthrough
CT: control target
= control target key end

     0   :  { %s1278_s1 = inlined_call_operand.vmem [shape: bf16[512,256], index: 1, kind: input, shape index: {}]   ;;  %s1279_s0 = inlined_call_operand.vmem [shape: bf16[56,512], index: 0, kind: input, shape index: {}]   ;;  %s1280_s2 = inlined_call_operand.vmem [shape: f32[1,256], index: 2, kind: input, shape index: {}]   ;;  %s1281_s3 = inlined_call_operand.vmem [shape: f32[56,256], index: 3, kind: output, shape index: {}]  }
   0x1   :  { %v843_v0 = vld [vmem:[%s1278_s1 + $0x74] ss:$8 sps:$4 sm:$0xff]   ;;  %v847_v2 = vld [vmem:[%s1278_s1 + $0x70] ss:$8 sps:$4 sm:$0xff]   ;;  %v849_v4 = vld [vmem:[%s1278_s1 + $0x64] ss:$8 sps:$4 sm:$0xff]  }
   0x2   :  { %v845_v1 = vld [vmem:[%s1278_s1 + $0x174] ss:$8 sps:$4 sm:$0xff]   ;;  %518 = vmatprep.subr.bf16.mxu0 %v843_v0  ;;  %v848_v3 = vld [vmem:[%s1278_s1 + $0x170] ss:$8 sps:$4 sm:$0xff]   ;;  %v851_v5 = vld [vmem:[%s1278_s1 + $0x164] ss:$8 sps:$4 sm:$0xff]  }
   0x3   :  { %589 = vmatprep.subr.bf16.mxu1 %v845_v1  ;;  %519 = vmatpush1.bf16.msra.mxu0 %v847_v2  ;;  %v853_v6 = vld [vmem:[%s1278_s1 + $0x60] ss:$8 sps:$4 sm:$0xff]   ;;  %v855_v8 = vld [vmem:[%s1278_s1 + $0x54] ss:$8 sps:$4 sm:$0xff]   ;;  %v859_v10 = vld [vmem:[%s1278_s1 + $0x50] ss:$8 sps:$4 sm:$0xff]  }
   0x4   :  { %590 = vmatpush1.bf16.msra.mxu1 %v848_v3  ;;  %520 = vmatprep.subr.bf16.mxu0 %v849_v4  ;;  %v854_v7 = vld [vmem:[%s1278_s1 + $0x160] ss:$8 sps:$4 sm:$0xff]   ;;  %v857_v9 = vld [vmem:[%s1278_s1 + $0x154] ss:$8 sps:$4 sm:$0xff]   ;;  %v860_v11 = vld [vmem:[%s1278_s1 + $0x150] ss:$8 sps:$4 sm:$0xff]  }
   0x5   :  { %591 = vmatprep.subr.bf16.mxu1 %v851_v5  ;;  %v861_v12 = vld [vmem:[%s1278_s1 + $0x44] ss:$8 sps:$4 sm:$0xff]   ;;  %v865_v14 = vld [vmem:[%s1278_s1 + $0x40] ss:$8 sps:$4 sm:$0xff]   ;;  %v867_v16 = vld [vmem:[%s1278_s1 + $0x34] ss:$8 sps:$4 sm:$0xff]  }
   0x6   :  { %v863_v13 = vld [vmem:[%s1278_s1 + $0x144] ss:$8 sps:$4 sm:$0xff]   ;;  %v866_v15 = vld [vmem:[%s1278_s1 + $0x140] ss:$8 sps:$4 sm:$0xff]   ;;  %v869_v17 = vld [vmem:[%s1278_s1 + $0x134] ss:$8 sps:$4 sm:$0xff]  }
   0x7   :  { %521 = vmatpush1.bf16.msra.mxu0 %v853_v6  ;;  %v871_v18 = vld [vmem:[%s1278_s1 + $0x30] ss:$8 sps:$4 sm:$0xff]   ;;  %v873_v20 = vld [vmem:[%s1278_s1 + $0x24] ss:$8 sps:$4 sm:$0xff]   ;;  %v877_v22 = vld [vmem:[%s1278_s1 + $0x20] ss:$8 sps:$4 sm:$0xff]  }
   0x8   :  { %592 = vmatpush1.bf16.msra.mxu1 %v854_v7  ;;  %522 = vmatprep.subr.bf16.mxu0 %v855_v8  ;;  %v872_v19 = vld [vmem:[%s1278_s1 + $0x130] ss:$8 sps:$4 sm:$0xff]   ;;  %v875_v21 = vld [vmem:[%s1278_s1 + $0x124] ss:$8 sps:$4 sm:$0xff]   ;;  %v878_v23 = vld [vmem:[%s1278_s1 + $0x120] ss:$8 sps:$4 sm:$0xff]  }
   0x9   :  { %593 = vmatprep.subr.bf16.mxu1 %v857_v9  ;;  %v879_v24 = vld [vmem:[%s1278_s1 + $0x14] ss:$8 sps:$4 sm:$0xff]   ;;  %v883_v26 = vld [vmem:[%s1278_s1 + $0x10] ss:$8 sps:$4 sm:$0xff]   ;;  %v885_v28 = vld [vmem:[%s1278_s1 + $0x4] ss:$8 sps:$4 sm:$0xff]  }
   0xa   :  { %v881_v25 = vld [vmem:[%s1278_s1 + $0x114] ss:$8 sps:$4 sm:$0xff]   ;;  %v884_v27 = vld [vmem:[%s1278_s1 + $0x110] ss:$8 sps:$4 sm:$0xff]   ;;  %v887_v29 = vld [vmem:[%s1278_s1 + $0x104] ss:$8 sps:$4 sm:$0xff]  }
   0xb   :  { %523 = vmatpush1.bf16.msra.mxu0 %v859_v10  ;;  %v889_v30 = vld [vmem:[%s1278_s1] ss:$8 sps:$4 sm:$0xff]   ;;  %v891_v32 = vld [vmem:[%s1278_s1 + $0xf4] ss:$8 sps:$4 sm:$0xff]   ;;  %v895_v34 = vld [vmem:[%s1278_s1 + $0xf0] ss:$8 sps:$4 sm:$0xff]  }
   0xc   :  { %594 = vmatpush1.bf16.msra.mxu1 %v860_v11  ;;  %524 = vmatprep.subr.bf16.mxu0 %v861_v12  ;;  %v890_v31 = vld [vmem:[%s1278_s1 + $0x100] ss:$8 sps:$4 sm:$0xff]   ;;  %v893_v33 = vld [vmem:[%s1278_s1 + $0x1f4] ss:$8 sps:$4 sm:$0xff]   ;;  %v896_v35 = vld [vmem:[%s1278_s1 + $0x1f0] ss:$8 sps:$4 sm:$0xff]  }
   0xd   :  { %595 = vmatprep.subr.bf16.mxu1 %v863_v13  ;;  %v897_v36 = vld [vmem:[%s1278_s1 + $0xe4] ss:$8 sps:$4 sm:$0xff]   ;;  %v901_v38 = vld [vmem:[%s1278_s1 + $0xe0] ss:$8 sps:$4 sm:$0xff]   ;;  %v903_v40 = vld [vmem:[%s1278_s1 + $0xd4] ss:$8 sps:$4 sm:$0xff]  }
   0xe   :  { %v899_v37 = vld [vmem:[%s1278_s1 + $0x1e4] ss:$8 sps:$4 sm:$0xff]   ;;  %v902_v39 = vld [vmem:[%s1278_s1 + $0x1e0] ss:$8 sps:$4 sm:$0xff]   ;;  %v905_v41 = vld [vmem:[%s1278_s1 + $0x1d4] ss:$8 sps:$4 sm:$0xff]  }
   0xf   :  { %525 = vmatpush1.bf16.msra.mxu0 %v865_v14  ;;  %v907_v42 = vld [vmem:[%s1278_s1 + $0xd0] ss:$8 sps:$4 sm:$0xff]   ;;  %v909_v44 = vld [vmem:[%s1278_s1 + $0xc4] ss:$8 sps:$4 sm:$0xff]   ;;  %v913_v46 = vld [vmem:[%s1278_s1 + $0xc0] ss:$8 sps:$4 sm:$0xff]  }
  0x10   :  { %596 = vmatpush1.bf16.msra.mxu1 %v866_v15  ;;  %526 = vmatprep.subr.bf16.mxu0 %v867_v16  ;;  %v908_v43 = vld [vmem:[%s1278_s1 + $0x1d0] ss:$8 sps:$4 sm:$0xff]   ;;  %v911_v45 = vld [vmem:[%s1278_s1 + $0x1c4] ss:$8 sps:$4 sm:$0xff]   ;;  %v914_v47 = vld [vmem:[%s1278_s1 + $0x1c0] ss:$8 sps:$4 sm:$0xff]  }
  0x11   :  { %597 = vmatprep.subr.bf16.mxu1 %v869_v17  ;;  %v915_v48 = vld [vmem:[%s1278_s1 + $0xb4] ss:$8 sps:$4 sm:$0xff]   ;;  %v919_v52 = vld [vmem:[%s1278_s1 + $0xb0] ss:$8 sps:$4 sm:$0xff]   ;;  %v921_v54 = vld [vmem:[%s1278_s1 + $0xa4] ss:$8 sps:$4 sm:$0xff]  }
  0x12   :  { %v941_v49 = vld [vmem:[%s1279_s0 + $0x4] ss:$16 sps:$4 sm:$0xff]   ;;  %v944_v51 = vld [vmem:[%s1279_s0 + $0xc] ss:$16 sps:$4 sm:$0xff]   ;;  %v920_v53 = vld [vmem:[%s1278_s1 + $0x1b0] ss:$8 sps:$4 sm:$0xff]  }
  0x13   :  { %527 = vmatpush1.bf16.msra.mxu0 %v871_v18  ;;  %v917_v50 = vld [vmem:[%s1278_s1 + $0x1b4] ss:$8 sps:$4 sm:$0xff]   ;;  %550 = vmatprep.mubr.bf16.mxu0 %v941_v49  ;;  %v923_v55 = vld [vmem:[%s1278_s1 + $0x1a4] ss:$8 sps:$4 sm:$0xff]   ;;  %v925_v56 = vld [vmem:[%s1278_s1 + $0xa0] ss:$8 sps:$4 sm:$0xff]   ;;  %v707_v18 = vlaneseq }
  0x14   :  { %598 = vmatpush1.bf16.msra.mxu1 %v872_v19  ;;  %528 = vmatprep.subr.bf16.mxu0 %v873_v20  ;;  %v926_v57 = vld [vmem:[%s1278_s1 + $0x1a0] ss:$8 sps:$4 sm:$0xff]   ;;  %v927_v58 = vld [vmem:[%s1278_s1 + $0x94] ss:$8 sps:$4 sm:$0xff]   ;;  %v931_v60 = vld [vmem:[%s1278_s1 + $0x90] ss:$8 sps:$4 sm:$0xff]  }
  0x15   :  { %599 = vmatprep.subr.bf16.mxu1 %v875_v21  ;;  %621 = vmatprep.mubr.bf16.mxu1 %v944_v51  ;;  %v929_v59 = vld [vmem:[%s1278_s1 + $0x194] ss:$8 sps:$4 sm:$0xff]   ;;  %v932_v61 = vld [vmem:[%s1278_s1 + $0x190] ss:$8 sps:$4 sm:$0xff]   ;;  %v933_v62 = vld [vmem:[%s1278_s1 + $0x84] ss:$8 sps:$4 sm:$0xff]  }
  0x16   :  { %v935_v63 = vld [vmem:[%s1278_s1 + $0x184] ss:$8 sps:$4 sm:$0xff]   ;;  %v937_v0 = vld [vmem:[%s1278_s1 + $0x80] ss:$8 sps:$4 sm:$0xff]   ;;  %v708_v19 = vshrl.u32 %v707_v18, 7 }
  0x17   :  { %529 = vmatpush1.bf16.msra.mxu0 %v877_v22  ;;  %v938_v1 = vld [vmem:[%s1278_s1 + $0x180] ss:$8 sps:$4 sm:$0xff]   ;;  %v945_v4 = vld [vmem:[%s1279_s0 + $0x24] ss:$16 sps:$4 sm:$0xff]   ;;  %v947_v5 = vld [vmem:[%s1279_s0 + $0x2c] ss:$16 sps:$4 sm:$0xff]  }
  0x18   :  { %600 = vmatpush1.bf16.msra.mxu1 %v878_v23  ;;  %530 = vmatprep.subr.bf16.mxu0 %v879_v24  ;;  %v939_v2 = vld [vmem:[%s1279_s0] ss:$16 sps:$4 sm:$0xff]   ;;  %v942_v3 = vld [vmem:[%s1279_s0 + $0x8] ss:$16 sps:$4 sm:$0xff]   ;;  %v951_v8 = vld [vmem:[%s1279_s0 + $0x44] ss:$16 sps:$4 sm:$0xff]  }
  0x19   :  { %601 = vmatprep.subr.bf16.mxu1 %v881_v25  ;;  %v949_v6 = vld [vmem:[%s1279_s0 + $0x20] ss:$16 sps:$4 sm:$0xff]   ;;  %v950_v7 = vld [vmem:[%s1279_s0 + $0x28] ss:$16 sps:$4 sm:$0xff]   ;;  %v953_v9 = vld [vmem:[%s1279_s0 + $0x4c] ss:$16 sps:$4 sm:$0xff]  }
  0x1a   :  { %v58_v10 = vld [vmem:[%s1279_s0 + $0x60] sm:$0xff]  ;;  %v59_v11 = vld [vmem:[%s1279_s0 + $0x68] sm:$0xff]  ;;  %v709_v20 = vsub.s32 0, %v708_v19  ;;  %v713_v22 = vsub.s32 1, %v708_v19 }
  0x1b   :  { %531 = vmatpush1.bf16.msra.mxu0 %v883_v26  ;;  %v955_v12 = vld [vmem:[%s1279_s0 + $0x40] ss:$16 sps:$4 sm:$0xff]   ;;  %v956_v13 = vld [vmem:[%s1279_s0 + $0x48] ss:$16 sps:$4 sm:$0xff]   ;;  %v776_v14 = vcombine.high %v58_v10, %v58_v10  ;;  %v778_v15 = vcombine.high %v59_v11, %v59_v11  ;;  %v775_v16 = vcombine.low %v58_v10, %v58_v10  ;;  %v777_v17 = vcombine.low %v59_v11, %v59_v11 }
  0x1c   :  { %602 = vmatpush1.bf16.msra.mxu1 %v884_v27  ;;  %532 = vmatprep.subr.bf16.mxu0 %v885_v28  ;;  %v705_v21 = vld [vmem:[%s1280_s2] sm:$0x3] }
  0x1d   :  { %603 = vmatprep.subr.bf16.mxu1 %v887_v29  ;;  %v1218_v23 = vrot.slane %v705_v21, %v709_v20  ;;  %v1220_v27 = vrot.slane %v705_v21, %v713_v22 }
  0x1f   :  { %533 = vmatpush1.bf16.msra.mxu0 %v889_v30 }
  0x20   :  { %604 = vmatpush1.bf16.msra.mxu1 %v890_v31  ;;  %534 = vmatprep.subr.bf16.mxu0 %v891_v32 }
  0x21   :  { %605 = vmatprep.subr.bf16.mxu1 %v893_v33 }
  0x23   :  { %535 = vmatpush2.bf16.msra.mxu0 %v895_v34 }
  0x24   :  { %606 = vmatpush2.bf16.msra.mxu1 %v896_v35  ;;  %536 = vmatprep.subr.bf16.mxu0 %v897_v36 }
  0x25   :  { %607 = vmatprep.subr.bf16.mxu1 %v899_v37 }
  0x27   :  { %537 = vmatpush2.bf16.msra.mxu0 %v901_v38 }
  0x28   :  { %608 = vmatpush2.bf16.msra.mxu1 %v902_v39  ;;  %538 = vmatprep.subr.bf16.mxu0 %v903_v40 }
  0x29   :  { %609 = vmatprep.subr.bf16.mxu1 %v905_v41 }
  0x2b   :  { %539 = vmatpush2.bf16.msra.mxu0 %v907_v42 }
  0x2c   :  { %610 = vmatpush2.bf16.msra.mxu1 %v908_v43  ;;  %540 = vmatprep.subr.bf16.mxu0 %v909_v44 }
  0x2d   :  { %611 = vmatprep.subr.bf16.mxu1 %v911_v45 }
  0x2f   :  { %541 = vmatpush2.bf16.msra.mxu0 %v913_v46 }
  0x30   :  { %612 = vmatpush2.bf16.msra.mxu1 %v914_v47  ;;  %542 = vmatprep.subr.bf16.mxu0 %v915_v48 }
  0x31   :  { %613 = vmatprep.subr.bf16.mxu1 %v917_v50 }
  0x33   :  { %543 = vmatpush2.bf16.msra.mxu0 %v919_v52 }
  0x34   :  { %614 = vmatpush2.bf16.msra.mxu1 %v920_v53  ;;  %544 = vmatprep.subr.bf16.mxu0 %v921_v54 }
  0x35   :  { %615 = vmatprep.subr.bf16.mxu1 %v923_v55 }
  0x37   :  { %545 = vmatpush2.bf16.msra.mxu0 %v925_v56 }
  0x38   :  { %616 = vmatpush2.bf16.msra.mxu1 %v926_v57  ;;  %546 = vmatprep.subr.bf16.mxu0 %v927_v58 }
  0x39   :  { %617 = vmatprep.subr.bf16.mxu1 %v929_v59 }
  0x3b   :  { %547 = vmatpush2.bf16.msra.mxu0 %v931_v60 }
  0x3c   :  { %618 = vmatpush2.bf16.msra.mxu1 %v932_v61  ;;  %548 = vmatprep.subr.bf16.mxu0 %v933_v62 }
  0x3d   :  { %619 = vmatprep.subr.bf16.mxu1 %v935_v63 }
  0x3f   :  { %549 = vmatpush2.bf16.msra.mxu0 %v937_v0 }
  0x40   :  { %620 = vmatpush2.bf16.msra.mxu1 %v938_v1 }
  0x42   :  { %551 = vmatmul.mubr.bf16.vlgmr.msra.gmra.mxu0 %v939_v2 }
  0x43   :  { %622 = vmatmul.mubr.bf16.vlgmr.msra.gmra.mxu1 %v942_v3  ;;  %560 = vmatprep.mubr.bf16.mxu0 %v945_v4 }
  0x44   :  { %631 = vmatprep.mubr.bf16.mxu1 %v947_v5 }
  0x4a   :  { %561 = vmatmul.mubr.bf16.gmra.mxu0 %v949_v6 }
  0x4b   :  { %632 = vmatmul.mubr.bf16.gmra.mxu1 %v950_v7  ;;  %570 = vmatprep.mubr.bf16.mxu0 %v951_v8 }
  0x4c   :  { %641 = vmatprep.mubr.bf16.mxu1 %v953_v9 }
  0x52   :  { %571 = vmatmul.mubr.bf16.gmra.mxu0 %v955_v12 }
  0x53   :  { %642 = vmatmul.mubr.bf16.gmra.mxu1 %v956_v13  ;;  %580 = vmatprep.mubr.bf16.mxu0 %v776_v14 }
  0x54   :  { %651 = vmatprep.mubr.bf16.mxu1 %v778_v15 }
  0x5a   :  { %581 = vmatmul.mubr.bf16.gmra.mxu0 %v775_v16 }
  0x5b   :  { %652 = vmatmul.mubr.bf16.gmra.mxu1 %v777_v17 }
 0x102   :  { %v552_v24 = vpop.f32.mrf.mxu0 }
 0x103   :  { %v623_v25 = vpop.f32.mrf.mxu1 }
 0x104   :  { %v624_v26 = vadd.f32 %v623_v25, %v552_v24  ;;  %v554_v28 = vpop.f32.mrf.mxu0 }
 0x105   :  { %v625_v29 = vpop.f32.mrf.mxu1 }
 0x106   :  { %v717_v30 = vadd.f32 %v1218_v23, %v624_v26  ;;  %v626_v31 = vadd.f32 %v625_v29, %v554_v28  ;;  %v556_v32 = vpop.f32.mrf.mxu0 }
 0x107   :  { %v627_v33 = vpop.f32.mrf.mxu1 }
 0x108   :  { %v731_v34 = vmax.f32 %v717_v30, 0.0  ;;  %v718_v35 = vadd.f32 %v1220_v27, %v626_v31  ;;  %v628_v36 = vadd.f32 %v627_v33, %v556_v32  ;;  %v558_v37 = vpop.f32.mrf.mxu0 }
 0x109   :  { %v629_v38 = vpop.f32.mrf.mxu1 }
 0x10a   :  { %745 = vst [vmem:[%s1281_s3] sm:$0xff] %v731_v34  ;;  %v732_v39 = vmax.f32 %v718_v35, 0.0  ;;  %v719_v40 = vadd.f32 %v1218_v23, %v628_v36  ;;  %v630_v41 = vadd.f32 %v629_v38, %v558_v37  ;;  %v562_v42 = vpop.f32.mrf.mxu0 }
 0x10b   :  { %v633_v43 = vpop.f32.mrf.mxu1 }
 0x10c   :  { %746 = vst [vmem:[%s1281_s3 + $0x8] sm:$0xff] %v732_v39  ;;  %v733_v44 = vmax.f32 %v719_v40, 0.0  ;;  %v720_v45 = vadd.f32 %v1220_v27, %v630_v41  ;;  %v634_v46 = vadd.f32 %v633_v43, %v562_v42  ;;  %v564_v47 = vpop.f32.mrf.mxu0 }
 0x10d   :  { %v635_v48 = vpop.f32.mrf.mxu1 }
 0x10e   :  { %747 = vst [vmem:[%s1281_s3 + $0x10] sm:$0xff] %v733_v44  ;;  %v734_v49 = vmax.f32 %v720_v45, 0.0  ;;  %v721_v50 = vadd.f32 %v1218_v23, %v634_v46  ;;  %v636_v51 = vadd.f32 %v635_v48, %v564_v47  ;;  %v566_v52 = vpop.f32.mrf.mxu0 }
 0x10f   :  { %v637_v53 = vpop.f32.mrf.mxu1 }
 0x110   :  { %748 = vst [vmem:[%s1281_s3 + $0x18] sm:$0xff] %v734_v49  ;;  %v735_v54 = vmax.f32 %v721_v50, 0.0  ;;  %v722_v55 = vadd.f32 %v1220_v27, %v636_v51  ;;  %v638_v56 = vadd.f32 %v637_v53, %v566_v52  ;;  %v568_v57 = vpop.f32.mrf.mxu0 }
 0x111   :  { %v639_v58 = vpop.f32.mrf.mxu1 }
 0x112   :  { %749 = vst [vmem:[%s1281_s3 + $0x20] sm:$0xff] %v735_v54  ;;  %v736_v59 = vmax.f32 %v722_v55, 0.0  ;;  %v723_v60 = vadd.f32 %v1218_v23, %v638_v56  ;;  %v640_v61 = vadd.f32 %v639_v58, %v568_v57  ;;  %v572_v62 = vpop.f32.mrf.mxu0 }
 0x113   :  { %v643_v63 = vpop.f32.mrf.mxu1 }
 0x114   :  { %750 = vst [vmem:[%s1281_s3 + $0x28] sm:$0xff] %v736_v59  ;;  %v737_v0 = vmax.f32 %v723_v60, 0.0  ;;  %v724_v1 = vadd.f32 %v1220_v27, %v640_v61  ;;  %v644_v2 = vadd.f32 %v643_v63, %v572_v62  ;;  %v574_v3 = vpop.f32.mrf.mxu0 }
 0x115   :  { %v645_v4 = vpop.f32.mrf.mxu1 }
 0x116   :  { %751 = vst [vmem:[%s1281_s3 + $0x30] sm:$0xff] %v737_v0  ;;  %v738_v5 = vmax.f32 %v724_v1, 0.0  ;;  %v725_v6 = vadd.f32 %v1218_v23, %v644_v2  ;;  %v646_v7 = vadd.f32 %v645_v4, %v574_v3  ;;  %v576_v8 = vpop.f32.mrf.mxu0 }
 0x117   :  { %v647_v9 = vpop.f32.mrf.mxu1 }
 0x118   :  { %752 = vst [vmem:[%s1281_s3 + $0x38] sm:$0xff] %v738_v5  ;;  %v739_v10 = vmax.f32 %v725_v6, 0.0  ;;  %v726_v11 = vadd.f32 %v1220_v27, %v646_v7  ;;  %v648_v12 = vadd.f32 %v647_v9, %v576_v8  ;;  %v578_v13 = vpop.f32.mrf.mxu0 }
 0x119   :  { %v649_v14 = vpop.f32.mrf.mxu1 }
 0x11a   :  { %753 = vst [vmem:[%s1281_s3 + $0x40] sm:$0xff] %v739_v10  ;;  %v740_v15 = vmax.f32 %v726_v11, 0.0  ;;  %v727_v16 = vadd.f32 %v1218_v23, %v648_v12  ;;  %v650_v17 = vadd.f32 %v649_v14, %v578_v13  ;;  %v582_v18 = vpop.f32.mrf.mxu0 }
 0x11b   :  { %v653_v19 = vpop.f32.mrf.mxu1 }
 0x11c   :  { %754 = vst [vmem:[%s1281_s3 + $0x48] sm:$0xff] %v740_v15  ;;  %v741_v20 = vmax.f32 %v727_v16, 0.0  ;;  %v728_v21 = vadd.f32 %v1220_v27, %v650_v17  ;;  %v654_v22 = vadd.f32 %v653_v19, %v582_v18  ;;  %v584_v24 = vpop.f32.mrf.mxu0 }
 0x11d   :  { %v655_v25 = vpop.f32.mrf.mxu1 }
 0x11e   :  { %755 = vst [vmem:[%s1281_s3 + $0x50] sm:$0xff] %v741_v20  ;;  %v742_v26 = vmax.f32 %v728_v21, 0.0  ;;  %v729_v28 = vadd.f32 %v1218_v23, %v654_v22  ;;  %v656_v29 = vadd.f32 %v655_v25, %v584_v24  ;;  %v586_v30 = vpop.f32.mrf.mxu0 }
 0x11f   :  { %v657_v31 = vpop.f32.mrf.mxu1 }
 0x120   :  { %756 = vst [vmem:[%s1281_s3 + $0x58] sm:$0xff] %v742_v26  ;;  %v743_v32 = vmax.f32 %v729_v28, 0.0  ;;  %v730_v33 = vadd.f32 %v1220_v27, %v656_v29  ;;  %v587_v34 = vpop.f32.mrf.mxu0 }
 0x121   :  { %v658_v35 = vpop.f32.mrf.mxu1 }
 0x122   :  { %757 = vst [vmem:[%s1281_s3 + $0x60] sm:$0xff] %v743_v32  ;;  %v744_v36 = vmax.f32 %v730_v33, 0.0 }
 0x124   :  { %758 = vst [vmem:[%s1281_s3 + $0x68] sm:$0xff] %v744_v36 }

// kernel: denoising_autoencoder.15
= control target key start
LH: loop header
LB: loop body
LE: loop exit
PB: predicated region body
PF: predicated region fallthrough
CT: control target
= control target key end

     0   :  { %s1192_s1 = inlined_call_operand.vmem [shape: bf16[256,128], index: 1, kind: input, shape index: {}]   ;;  %s1193_s0 = inlined_call_operand.vmem [shape: bf16[168,256], index: 0, kind: input, shape index: {}]   ;;  %s1194_s2 = inlined_call_operand.vmem [shape: f32[1,128], index: 2, kind: input, shape index: {}]   ;;  %s1195_s3 = inlined_call_operand.vmem [shape: f32[168,128], index: 3, kind: output, shape index: {}]  }
   0x1   :  { %v840_v0 = vld [vmem:[%s1192_s1 + $0x78] sm:$0xff]   ;;  %v842_v2 = vld [vmem:[%s1192_s1 + $0x70] sm:$0xff]   ;;  %v844_v4 = vld [vmem:[%s1192_s1 + $0x68] sm:$0xff]  }
   0x2   :  { %v841_v1 = vld [vmem:[%s1192_s1 + $0x38] sm:$0xff]   ;;  %742 = vmatprep.subr.bf16.mxu0 %v840_v0  ;;  %824 = vmatprep.subr.bf16.mxu1 %v840_v0  ;;  %v843_v3 = vld [vmem:[%s1192_s1 + $0x30] sm:$0xff]   ;;  %v845_v5 = vld [vmem:[%s1192_s1 + $0x28] sm:$0xff]  }
   0x3   :  { %743 = vmatpush3.bf16.msra.mxu0 %v841_v1  ;;  %832 = vmatpush3.bf16.msra.mxu1 %v841_v1  ;;  %v846_v6 = vld [vmem:[%s1192_s1 + $0x60] sm:$0xff]   ;;  %v848_v8 = vld [vmem:[%s1192_s1 + $0x58] sm:$0xff]   ;;  %v850_v10 = vld [vmem:[%s1192_s1 + $0x50] sm:$0xff]  }
   0x4   :  { %744 = vmatprep.subr.bf16.mxu0 %v842_v2  ;;  %825 = vmatprep.subr.bf16.mxu1 %v842_v2  ;;  %v847_v7 = vld [vmem:[%s1192_s1 + $0x20] sm:$0xff]   ;;  %v849_v9 = vld [vmem:[%s1192_s1 + $0x18] sm:$0xff]   ;;  %v851_v13 = vld [vmem:[%s1192_s1 + $0x10] sm:$0xff]  }
   0x5   :  { %v858_v11 = vld [vmem:[%s1193_s0 + $0x4] ss:$8 sps:$4 sm:$0xff]   ;;  %v856_v18 = vld [vmem:[%s1193_s0] ss:$8 sps:$4 sm:$0xff]   ;;  %v862_v20 = vld [vmem:[%s1193_s0 + $0x14] ss:$8 sps:$4 sm:$0xff]  }
   0x6   :  { %v861_v12 = vld [vmem:[%s1193_s0 + $0x64] ss:$8 sps:$4 sm:$0xff]   ;;  %349 = vmatprep.mubr.bf16.mxu0 %v858_v11  ;;  %v859_v19 = vld [vmem:[%s1193_s0 + $0x60] ss:$8 sps:$4 sm:$0xff]   ;;  %v865_v21 = vld [vmem:[%s1193_s0 + $0x74] ss:$8 sps:$4 sm:$0xff]  }
   0x7   :  { %745 = vmatpush3.bf16.msra.mxu0 %v843_v3  ;;  %833 = vmatpush3.bf16.msra.mxu1 %v843_v3  ;;  %v852_v14 = vld [vmem:[%s1192_s1 + $0x48] sm:$0xff]   ;;  %v854_v16 = vld [vmem:[%s1192_s1 + $0x40] sm:$0xff]   ;;  %v864_v22 = vld [vmem:[%s1193_s0 + $0x10] ss:$8 sps:$4 sm:$0xff]  }
   0x8   :  { %746 = vmatprep.subr.bf16.mxu0 %v844_v4  ;;  %826 = vmatprep.subr.bf16.mxu1 %v844_v4  ;;  %v853_v15 = vld [vmem:[%s1192_s1 + $0x8] sm:$0xff]   ;;  %v855_v17 = vld [vmem:[%s1192_s1] sm:$0xff]   ;;  %v867_v23 = vld [vmem:[%s1193_s0 + $0x70] ss:$8 sps:$4 sm:$0xff]  }
   0x9   :  { %397 = vmatprep.mubr.bf16.mxu1 %v861_v12  ;;  %v868_v24 = vld [vmem:[%s1193_s0 + $0x24] ss:$8 sps:$4 sm:$0xff]   ;;  %v870_v26 = vld [vmem:[%s1193_s0 + $0x20] ss:$8 sps:$4 sm:$0xff]   ;;  %v874_v28 = vld [vmem:[%s1193_s0 + $0x34] ss:$8 sps:$4 sm:$0xff]  }
   0xa   :  { %v871_v25 = vld [vmem:[%s1193_s0 + $0x84] ss:$8 sps:$4 sm:$0xff]   ;;  %v873_v27 = vld [vmem:[%s1193_s0 + $0x80] ss:$8 sps:$4 sm:$0xff]   ;;  %v877_v29 = vld [vmem:[%s1193_s0 + $0x94] ss:$8 sps:$4 sm:$0xff]  }
   0xb   :  { %747 = vmatpush3.bf16.msra.mxu0 %v845_v5  ;;  %834 = vmatpush3.bf16.msra.mxu1 %v845_v5  ;;  %v81_v30 = vld [vmem:[%s1193_s0 + $0xa0] sm:$0xff]  ;;  %v876_v31 = vld [vmem:[%s1193_s0 + $0x30] ss:$8 sps:$4 sm:$0xff]   ;;  %v885_v37 = vld [vmem:[%s1193_s0 + $0x54] ss:$8 sps:$4 sm:$0xff]  }
   0xc   :  { %748 = vmatprep.subr.bf16.mxu0 %v846_v6  ;;  %827 = vmatprep.subr.bf16.mxu1 %v846_v6  ;;  %v879_v32 = vld [vmem:[%s1193_s0 + $0x90] ss:$8 sps:$4 sm:$0xff]   ;;  %v880_v33 = vld [vmem:[%s1193_s0 + $0x44] ss:$8 sps:$4 sm:$0xff]   ;;  %v703_v34 = vcombine.high %v81_v30, %v81_v30  ;;  %v882_v35 = vld [vmem:[%s1193_s0 + $0x40] ss:$8 sps:$4 sm:$0xff]   ;;  %v702_v36 = vcombine.low %v81_v30, %v81_v30 }
   0xd   :  { %v887_v38 = vld [vmem:[%s1193_s0 + $0x50] ss:$8 sps:$4 sm:$0xff]   ;;  %v1106_v42 = vld [vmem:[%s1194_s2] ss:$0 sm:$0xff] }
   0xf   :  { %749 = vmatpush3.bf16.msra.mxu0 %v847_v7  ;;  %835 = vmatpush3.bf16.msra.mxu1 %v847_v7 }
  0x10   :  { %750 = vmatprep.subr.bf16.mxu0 %v848_v8  ;;  %828 = vmatprep.subr.bf16.mxu1 %v848_v8 }
  0x13   :  { %751 = vmatpush3.bf16.msra.mxu0 %v849_v9  ;;  %836 = vmatpush3.bf16.msra.mxu1 %v849_v9 }
  0x14   :  { %752 = vmatprep.subr.bf16.mxu0 %v850_v10  ;;  %829 = vmatprep.subr.bf16.mxu1 %v850_v10 }
  0x17   :  { %753 = vmatpush3.bf16.msra.mxu0 %v851_v13  ;;  %837 = vmatpush3.bf16.msra.mxu1 %v851_v13 }
  0x18   :  { %754 = vmatprep.subr.bf16.mxu0 %v852_v14  ;;  %830 = vmatprep.subr.bf16.mxu1 %v852_v14 }
  0x1b   :  { %755 = vmatpush3.bf16.msra.mxu0 %v853_v15  ;;  %838 = vmatpush3.bf16.msra.mxu1 %v853_v15 }
  0x1c   :  { %756 = vmatprep.subr.bf16.mxu0 %v854_v16  ;;  %831 = vmatprep.subr.bf16.mxu1 %v854_v16 }
  0x1f   :  { %757 = vmatpush3.bf16.msra.mxu0 %v855_v17  ;;  %839 = vmatpush3.bf16.msra.mxu1 %v855_v17 }
  0x22   :  { %350 = vmatmul.mubr.bf16.vlgmr.msra.gmra.mxu0 %v856_v18  ;;  %398 = vmatmul.mubr.bf16.vlgmr.msra.gmra.mxu1 %v859_v19 }
  0x23   :  { %357 = vmatprep.mubr.bf16.mxu0 %v862_v20  ;;  %405 = vmatprep.mubr.bf16.mxu1 %v865_v21 }
  0x2a   :  { %358 = vmatmul.mubr.bf16.gmra.mxu0 %v864_v22  ;;  %406 = vmatmul.mubr.bf16.gmra.mxu1 %v867_v23 }
  0x2b   :  { %365 = vmatprep.mubr.bf16.mxu0 %v868_v24  ;;  %413 = vmatprep.mubr.bf16.mxu1 %v871_v25 }
  0x32   :  { %366 = vmatmul.mubr.bf16.gmra.mxu0 %v870_v26  ;;  %414 = vmatmul.mubr.bf16.gmra.mxu1 %v873_v27 }
  0x33   :  { %373 = vmatprep.mubr.bf16.mxu0 %v874_v28  ;;  %421 = vmatprep.mubr.bf16.mxu1 %v877_v29 }
  0x3a   :  { %374 = vmatmul.mubr.bf16.gmra.mxu0 %v876_v31  ;;  %422 = vmatmul.mubr.bf16.gmra.mxu1 %v879_v32 }
  0x3b   :  { %381 = vmatprep.mubr.bf16.mxu0 %v880_v33  ;;  %429 = vmatprep.mubr.bf16.mxu1 %v703_v34 }
  0x42   :  { %382 = vmatmul.mubr.bf16.gmra.mxu0 %v882_v35  ;;  %430 = vmatmul.mubr.bf16.gmra.mxu1 %v702_v36 }
  0x43   :  { %389 = vmatprep.mubr.bf16.mxu0 %v885_v37 }
  0x4a   :  { %390 = vmatmul.mubr.bf16.gmra.mxu0 %v887_v38 }
  0xe2   :  { %v758_v39 = vpop.f32.mrf.mxu0  ;;  %v794_v40 = vpop.f32.mrf.mxu1 }
  0xe4   :  { %v759_v41 = vpop.f32.mrf.mxu0  ;;  %v795_v43 = vpop.f32.mrf.mxu1 }
  0xe5   :  { %v760_v44 = vadd.f32 %v759_v41, %v758_v39  ;;  %v796_v45 = vadd.f32 %v795_v43, %v794_v40 }
  0xe6   :  { %v761_v46 = vpop.f32.mrf.mxu0  ;;  %v797_v47 = vpop.f32.mrf.mxu1 }
  0xe7   :  { %v510_v48 = vadd.f32 %v760_v44, %v1106_v42  ;;  %v522_v49 = vadd.f32 %v796_v45, %v1106_v42 }
  0xe8   :  { %v762_v50 = vpop.f32.mrf.mxu0  ;;  %v798_v51 = vpop.f32.mrf.mxu1 }
  0xe9   :  { %v721_v52 = vmul.f32 -1.442695, %v510_v48  ;;  %v763_v53 = vadd.f32 %v762_v50, %v761_v46  ;;  %v733_v54 = vmul.f32 -1.442695, %v522_v49  ;;  %v799_v55 = vadd.f32 %v798_v51, %v797_v47 }
  0xea   :  { %v764_v56 = vpop.f32.mrf.mxu0  ;;  %v800_v57 = vpop.f32.mrf.mxu1 }
  0xeb   :  { %888 = vpow2.f32 %v721_v52  ;;  %v511_v58 = vadd.f32 %v763_v53, %v1106_v42  ;;  %v523_v59 = vadd.f32 %v799_v55, %v1106_v42 }
  0xec   :  { %890 = vpow2.f32 %v733_v54  ;;  %v765_v60 = vpop.f32.mrf.mxu0  ;;  %v801_v61 = vpop.f32.mrf.mxu1 }
  0xed   :  { %v722_v62 = vmul.f32 -1.442695, %v511_v58  ;;  %v766_v63 = vadd.f32 %v765_v60, %v764_v56  ;;  %v734_v0 = vmul.f32 -1.442695, %v523_v59  ;;  %v802_v1 = vadd.f32 %v801_v61, %v800_v57 }
  0xee   :  { %v767_v2 = vpop.f32.mrf.mxu0  ;;  %v803_v3 = vpop.f32.mrf.mxu1 }
  0xef   :  { %892 = vpow2.f32 %v722_v62  ;;  %v512_v4 = vadd.f32 %v766_v63, %v1106_v42  ;;  %v524_v5 = vadd.f32 %v802_v1, %v1106_v42 }
  0xf0   :  { %894 = vpow2.f32 %v734_v0  ;;  %v768_v6 = vpop.f32.mrf.mxu0  ;;  %v804_v7 = vpop.f32.mrf.mxu1 }
  0xf1   :  { %v723_v8 = vmul.f32 -1.442695, %v512_v4  ;;  %v769_v9 = vadd.f32 %v768_v6, %v767_v2  ;;  %v735_v10 = vmul.f32 -1.442695, %v524_v5  ;;  %v805_v11 = vadd.f32 %v804_v7, %v803_v3 }
  0xf2   :  { %v770_v12 = vpop.f32.mrf.mxu0  ;;  %v806_v13 = vpop.f32.mrf.mxu1 }
  0xf3   :  { %896 = vpow2.f32 %v723_v8  ;;  %v513_v14 = vadd.f32 %v769_v9, %v1106_v42  ;;  %v525_v15 = vadd.f32 %v805_v11, %v1106_v42 }
  0xf4   :  { %898 = vpow2.f32 %v735_v10  ;;  %v771_v16 = vpop.f32.mrf.mxu0  ;;  %v807_v17 = vpop.f32.mrf.mxu1 }
  0xf5   :  { %v724_v18 = vmul.f32 -1.442695, %v513_v14  ;;  %v772_v19 = vadd.f32 %v771_v16, %v770_v12  ;;  %v736_v20 = vmul.f32 -1.442695, %v525_v15  ;;  %v808_v21 = vadd.f32 %v807_v17, %v806_v13 }
  0xf6   :  { %v773_v22 = vpop.f32.mrf.mxu0  ;;  %v809_v23 = vpop.f32.mrf.mxu1 }
  0xf7   :  { %900 = vpow2.f32 %v724_v18  ;;  %v514_v24 = vadd.f32 %v772_v19, %v1106_v42  ;;  %v526_v25 = vadd.f32 %v808_v21, %v1106_v42 }
  0xf8   :  { %v889_v26 = vpop.eup %888  ;;  %902 = vpow2.f32 %v736_v20  ;;  %v774_v27 = vpop.f32.mrf.mxu0 }
  0xf9   :  { %v810_v28 = vpop.f32.mrf.mxu1  ;;  %v891_v29 = vpop.eup %890  ;;  %v594_v30 = vadd.f32 1.0, %v889_v26  ;;  %v725_v31 = vmul.f32 -1.442695, %v514_v24  ;;  %v775_v32 = vadd.f32 %v774_v27, %v773_v22  ;;  %v737_v35 = vmul.f32 -1.442695, %v526_v25 }
  0xfa   :  { %v606_v33 = vadd.f32 1.0, %v891_v29  ;;  %v776_v34 = vpop.f32.mrf.mxu0  ;;  %v811_v36 = vadd.f32 %v810_v28, %v809_v23 }
  0xfb   :  { %v812_v37 = vpop.f32.mrf.mxu1  ;;  %904 = vrcp.f32 %v594_v30  ;;  %v515_v38 = vadd.f32 %v775_v32, %v1106_v42 }
  0xfc   :  { %v893_v39 = vpop.eup %892  ;;  %906 = vrcp.f32 %v606_v33  ;;  %v777_v40 = vpop.f32.mrf.mxu0  ;;  %v527_v41 = vadd.f32 %v811_v36, %v1106_v42 }
  0xfd   :  { %v813_v43 = vpop.f32.mrf.mxu1  ;;  %v895_v44 = vpop.eup %894  ;;  %v595_v45 = vadd.f32 1.0, %v893_v39  ;;  %908 = vpow2.f32 %v725_v31  ;;  %v726_v46 = vmul.f32 -1.442695, %v515_v38  ;;  %v778_v47 = vadd.f32 %v777_v40, %v776_v34 }
  0xfe   :  { %v607_v48 = vadd.f32 1.0, %v895_v44  ;;  %910 = vpow2.f32 %v737_v35  ;;  %v779_v49 = vpop.f32.mrf.mxu0  ;;  %v738_v50 = vmul.f32 -1.442695, %v527_v41  ;;  %v814_v51 = vadd.f32 %v813_v43, %v812_v37 }
  0xff   :  { %v815_v52 = vpop.f32.mrf.mxu1  ;;  %912 = vrcp.f32 %v595_v45  ;;  %v516_v53 = vadd.f32 %v778_v47, %v1106_v42 }
 0x100   :  { %v897_v54 = vpop.eup %896  ;;  %914 = vrcp.f32 %v607_v48  ;;  %v780_v55 = vpop.f32.mrf.mxu0  ;;  %v528_v56 = vadd.f32 %v814_v51, %v1106_v42 }
 0x101   :  { %v816_v57 = vpop.f32.mrf.mxu1  ;;  %v899_v58 = vpop.eup %898  ;;  %v596_v59 = vadd.f32 1.0, %v897_v54  ;;  %916 = vpow2.f32 %v726_v46  ;;  %v727_v60 = vmul.f32 -1.442695, %v516_v53  ;;  %v781_v61 = vadd.f32 %v780_v55, %v779_v49 }
 0x102   :  { %v608_v62 = vadd.f32 1.0, %v899_v58  ;;  %918 = vpow2.f32 %v738_v50  ;;  %v782_v63 = vpop.f32.mrf.mxu0  ;;  %v739_v0 = vmul.f32 -1.442695, %v528_v56  ;;  %v817_v1 = vadd.f32 %v816_v57, %v815_v52 }
 0x103   :  { %v818_v2 = vpop.f32.mrf.mxu1  ;;  %920 = vrcp.f32 %v596_v59  ;;  %v517_v3 = vadd.f32 %v781_v61, %v1106_v42 }
 0x104   :  { %v901_v4 = vpop.eup %900  ;;  %922 = vrcp.f32 %v608_v62  ;;  %v783_v5 = vpop.f32.mrf.mxu0  ;;  %v529_v6 = vadd.f32 %v817_v1, %v1106_v42 }
 0x105   :  { %v819_v7 = vpop.f32.mrf.mxu1  ;;  %v903_v8 = vpop.eup %902  ;;  %v597_v9 = vadd.f32 1.0, %v901_v4  ;;  %924 = vpow2.f32 %v727_v60  ;;  %v728_v10 = vmul.f32 -1.442695, %v517_v3  ;;  %v784_v11 = vadd.f32 %v783_v5, %v782_v63 }
 0x106   :  { %v609_v12 = vadd.f32 1.0, %v903_v8  ;;  %926 = vpow2.f32 %v739_v0  ;;  %v785_v13 = vpop.f32.mrf.mxu0  ;;  %v740_v14 = vmul.f32 -1.442695, %v529_v6  ;;  %v820_v15 = vadd.f32 %v819_v7, %v818_v2 }
 0x107   :  { %v821_v16 = vpop.f32.mrf.mxu1  ;;  %928 = vrcp.f32 %v597_v9  ;;  %v518_v17 = vadd.f32 %v784_v11, %v1106_v42 }
 0x108   :  { %v905_v18 = vpop.eup %904  ;;  %930 = vrcp.f32 %v609_v12  ;;  %v786_v19 = vpop.f32.mrf.mxu0  ;;  %v530_v20 = vadd.f32 %v820_v15, %v1106_v42 }
 0x109   :  { %v822_v21 = vpop.f32.mrf.mxu1  ;;  %v907_v22 = vpop.eup %906  ;;  %657 = vst [vmem:[%s1195_s3] sm:$0xff] %v905_v18  ;;  %932 = vpow2.f32 %v728_v10  ;;  %v729_v23 = vmul.f32 -1.442695, %v518_v17  ;;  %v787_v24 = vadd.f32 %v786_v19, %v785_v13 }
 0x10a   :  { %v909_v25 = vpop.eup %908  ;;  %669 = vst [vmem:[%s1195_s3 + $0x60] sm:$0xff] %v907_v22  ;;  %934 = vpow2.f32 %v740_v14  ;;  %v788_v26 = vpop.f32.mrf.mxu0  ;;  %v741_v27 = vmul.f32 -1.442695, %v530_v20 }
 0x10b   :  { %v911_v28 = vpop.eup %910  ;;  %v598_v29 = vadd.f32 1.0, %v909_v25  ;;  %936 = vpow2.f32 %v729_v23  ;;  %v519_v30 = vadd.f32 %v787_v24, %v1106_v42 }
 0x10c   :  { %v913_v31 = vpop.eup %912  ;;  %v610_v32 = vadd.f32 1.0, %v911_v28  ;;  %938 = vpow2.f32 %v741_v27  ;;  %v789_v33 = vpop.f32.mrf.mxu0 }
 0x10d   :  { %v915_v34 = vpop.eup %914  ;;  %658 = vst [vmem:[%s1195_s3 + $0x8] sm:$0xff] %v913_v31  ;;  %940 = vrcp.f32 %v598_v29  ;;  %v730_v35 = vmul.f32 -1.442695, %v519_v30  ;;  %v790_v36 = vadd.f32 %v789_v33, %v788_v26 }
 0x10e   :  { %v917_v37 = vpop.eup %916  ;;  %670 = vst [vmem:[%s1195_s3 + $0x68] sm:$0xff] %v915_v34  ;;  %942 = vrcp.f32 %v610_v32  ;;  %v791_v38 = vpop.f32.mrf.mxu0 }
 0x10f   :  { %v919_v39 = vpop.eup %918  ;;  %v599_v40 = vadd.f32 1.0, %v917_v37  ;;  %944 = vpow2.f32 %v730_v35  ;;  %v520_v41 = vadd.f32 %v790_v36, %v1106_v42 }
 0x110   :  { %v921_v43 = vpop.eup %920  ;;  %v611_v44 = vadd.f32 1.0, %v919_v39  ;;  %v792_v45 = vpop.f32.mrf.mxu0 }
 0x111   :  { %v923_v46 = vpop.eup %922  ;;  %659 = vst [vmem:[%s1195_s3 + $0x10] sm:$0xff] %v921_v43  ;;  %946 = vrcp.f32 %v599_v40  ;;  %v731_v47 = vmul.f32 -1.442695, %v520_v41  ;;  %v793_v48 = vadd.f32 %v792_v45, %v791_v38 }
 0x112   :  { %v925_v49 = vpop.eup %924  ;;  %671 = vst [vmem:[%s1195_s3 + $0x70] sm:$0xff] %v923_v46  ;;  %948 = vrcp.f32 %v611_v44 }
 0x113   :  { %v927_v50 = vpop.eup %926  ;;  %v600_v51 = vadd.f32 1.0, %v925_v49  ;;  %950 = vpow2.f32 %v731_v47  ;;  %v521_v52 = vadd.f32 %v793_v48, %v1106_v42 }
 0x114   :  { %v929_v53 = vpop.eup %928  ;;  %v612_v54 = vadd.f32 1.0, %v927_v50 }
 0x115   :  { %v931_v55 = vpop.eup %930  ;;  %660 = vst [vmem:[%s1195_s3 + $0x18] sm:$0xff] %v929_v53  ;;  %952 = vrcp.f32 %v600_v51  ;;  %v732_v56 = vmul.f32 -1.442695, %v521_v52 }
 0x116   :  { %v933_v57 = vpop.eup %932  ;;  %672 = vst [vmem:[%s1195_s3 + $0x78] sm:$0xff] %v931_v55  ;;  %954 = vrcp.f32 %v612_v54 }
 0x117   :  { %v935_v58 = vpop.eup %934  ;;  %v601_v59 = vadd.f32 1.0, %v933_v57  ;;  %956 = vpow2.f32 %v732_v56 }
 0x118   :  { %v937_v60 = vpop.eup %936  ;;  %v613_v42 = vadd.f32 1.0, %v935_v58 }
 0x119   :  { %v939_v61 = vpop.eup %938  ;;  %958 = vrcp.f32 %v601_v59  ;;  %v602_v62 = vadd.f32 1.0, %v937_v60 }
 0x11a   :  { %v941_v63 = vpop.eup %940  ;;  %960 = vrcp.f32 %v613_v42  ;;  %v614_v0 = vadd.f32 1.0, %v939_v61 }
 0x11b   :  { %v943_v1 = vpop.eup %942  ;;  %661 = vst [vmem:[%s1195_s3 + $0x20] sm:$0xff] %v941_v63  ;;  %962 = vrcp.f32 %v602_v62 }
 0x11c   :  { %v945_v2 = vpop.eup %944  ;;  %673 = vst [vmem:[%s1195_s3 + $0x80] sm:$0xff] %v943_v1  ;;  %964 = vrcp.f32 %v614_v0 }
 0x11d   :  { %v603_v3 = vadd.f32 1.0, %v945_v2 }
 0x11e   :  { %v947_v4 = vpop.eup %946 }
 0x11f   :  { %v949_v5 = vpop.eup %948  ;;  %662 = vst [vmem:[%s1195_s3 + $0x28] sm:$0xff] %v947_v4  ;;  %966 = vrcp.f32 %v603_v3 }
 0x120   :  { %v951_v6 = vpop.eup %950  ;;  %674 = vst [vmem:[%s1195_s3 + $0x88] sm:$0xff] %v949_v5 }
 0x121   :  { %v604_v7 = vadd.f32 1.0, %v951_v6 }
 0x122   :  { %v953_v8 = vpop.eup %952 }
 0x123   :  { %v955_v9 = vpop.eup %954  ;;  %663 = vst [vmem:[%s1195_s3 + $0x30] sm:$0xff] %v953_v8  ;;  %968 = vrcp.f32 %v604_v7 }
 0x124   :  { %v957_v10 = vpop.eup %956  ;;  %675 = vst [vmem:[%s1195_s3 + $0x90] sm:$0xff] %v955_v9 }
 0x125   :  { %v605_v11 = vadd.f32 1.0, %v957_v10 }
 0x126   :  { %v959_v12 = vpop.eup %958 }
 0x127   :  { %v961_v13 = vpop.eup %960  ;;  %664 = vst [vmem:[%s1195_s3 + $0x38] sm:$0xff] %v959_v12  ;;  %970 = vrcp.f32 %v605_v11 }
 0x128   :  { %v963_v14 = vpop.eup %962  ;;  %676 = vst [vmem:[%s1195_s3 + $0x98] sm:$0xff] %v961_v13 }
 0x129   :  { %v965_v15 = vpop.eup %964  ;;  %665 = vst [vmem:[%s1195_s3 + $0x40] sm:$0xff] %v963_v14 }
 0x12a   :  { %677 = vst [vmem:[%s1195_s3 + $0xa0] sm:$0xff] %v965_v15 }
 0x12c   :  { %v967_v16 = vpop.eup %966 }
 0x12d   :  { %666 = vst [vmem:[%s1195_s3 + $0x48] sm:$0xff] %v967_v16 }
 0x130   :  { %v969_v17 = vpop.eup %968 }
 0x131   :  { %667 = vst [vmem:[%s1195_s3 + $0x50] sm:$0xff] %v969_v17 }
 0x134   :  { %v971_v18 = vpop.eup %970 }
 0x135   :  { %668 = vst [vmem:[%s1195_s3 + $0x58] sm:$0xff] %v971_v18 }

</bundles_post_ra>
